<compile_context>
chip_gen: v5e
topology: v5e:2x2
jax: 0.10.0
libtpu: 0.0.40
codegen_flags: <defaults>
</compile_context>

<pallas_src>
import functools

import jax
import jax.numpy as jnp
from jax.experimental import pallas as pl
from jax.experimental.pallas import tpu as pltpu


def _round_up(x, m):
    return ((x + m - 1) // m) * m


def _vmem_bytes_per_step(tb, n_pad, e_pad, a_pad, d, cdt_bytes, out_bytes, enc_bufs=3):
    """Conservative per-grid-step VMEM estimate (buffers + resident weights + temps)."""
    enc_io = enc_bufs * tb * n_pad * e_pad * cdt_bytes            # multi-buffered encoder tile
    dec_io = 2 * tb * d * cdt_bytes                               # double-buffered decoder tile
    weights = 2 * (e_pad + d) * a_pad * cdt_bytes + 2 * 2 * a_pad * 4
    outs = 2 * tb * (e_pad + n_pad) * out_bytes
    temps = 2 * tb * n_pad * a_pad * 4                            # att1 / score (f32)
    temps += tb * n_pad * e_pad * 4                               # ctx product (f32)
    temps += 4 * tb * n_pad * 4                                   # e / p / att / mask
    return enc_io + dec_io + weights + outs + temps


def _choose_batch_tile(B, n_pad, e_pad, a_pad, d, cdt_bytes, out_bytes,
                       budget_bytes=40 * 1024 * 1024):
    """Largest TB (multiple of 8) whose per-step working set fits the VMEM budget."""
    cap = max(8, _round_up(B, 8))
    for cand in (64, 48, 32, 24, 16, 8):
        if cand > cap:
            continue
        if _vmem_bytes_per_step(cand, n_pad, e_pad, a_pad, d,
                                cdt_bytes, out_bytes) <= budget_bytes:
            return cand
    return 8


def _buffered_spec(shape, index_map, buffers):
    """BlockSpec with requested pipeline depth; falls back to default if unsupported."""
    if buffers and buffers > 1:
        try:
            return pl.BlockSpec(shape, index_map, pipeline_mode=pl.Buffered(buffers))
        except TypeError:
            pass
    return pl.BlockSpec(shape, index_map)


def _attention_kernel(enc_ref, dec_ref, we_ref, wd_ref, b_ref, wf_ref,
                      ctx_ref, att_ref, *, n_valid):
    tb, n_pad, e_pad = enc_ref.shape
    a = we_ref.shape[1]

    enc = enc_ref[...]                                   # (TB, N_pad, E_pad) compute dtype
    # Layout-preserving flatten (N_pad % 8 == 0, lane dim untouched).
    enc2d = enc.reshape(tb * n_pad, e_pad)

    # att1 = encoder_att(encoder_out): one big (TB*N_pad, E_pad) @ (E_pad, A_pad) matmul.
    att1 = jnp.dot(enc2d, we_ref[...], preferred_element_type=jnp.float32)
    att1 = att1.reshape(tb, n_pad, a)                    # (TB, N_pad, A_pad) f32

    # att2 = decoder_att(decoder_hidden) with the combined (be + bd) bias folded in,
    # computed once per batch row: (TB, D) @ (D, A_pad) + (1, A_pad).
    bias = jnp.dot(dec_ref[...], wd_ref[...],
                   preferred_element_type=jnp.float32) + b_ref[...]

    # score = relu(att1 + att2 + be + bd)   (single broadcast add, f32 on the VPU)
    score = jnp.maximum(att1 + bias[:, None, :], 0.0)

    # e = full_att(score).squeeze(-1) as a VPU multiply + lane reduce (no M=1 matmul,
    # no transpose). full_att bias is omitted: softmax is invariant to a constant shift.
    e = jnp.sum(score * wf_ref[...], axis=-1)            # (TB, N_pad) f32

    # Mask padded key positions so they get zero attention weight.
    if n_valid < n_pad:
        col = jax.lax.broadcasted_iota(jnp.int32, (tb, n_pad), 1)
        e = jnp.where(col < n_valid, e, -1e30)

    # Softmax over N (torch dim=1): EUP reciprocal + one Newton step (near-exact norm).
    m = jnp.max(e, axis=-1, keepdims=True)
    p = jnp.exp(e - m)
    s = jnp.sum(p, axis=-1, keepdims=True)
    inv = pl.reciprocal(s, approx=True)
    inv = inv * (2.0 - s * inv)
    att = p * inv

    # context_vector = sum_n att[b, n] * encoder_out[b, n, :]
    # VPU broadcast-multiply (f32 via promotion) + sublane/XLU reduce; keeps the MXU
    # free for the dominant projection and avoids TB separate M=1 matmuls.
    ctx = jnp.sum(att[:, :, None] * enc, axis=1)         # (TB, E_pad) f32

    att_ref[...] = att.astype(att_ref.dtype)
    ctx_ref[...] = ctx.astype(ctx_ref.dtype)


def attention_forward(encoder_out, decoder_hidden, params, *,
                      batch_tile=None, compute_dtype=jnp.bfloat16):
    """Returns (context_vector (B, E), att (B, N)) matching the torch module.

    compute_dtype controls the matmul-input dtype (bf16 by default: MXU-native on
    v5e/v6e/v7x and halves encoder DMA bytes); accumulation and all elementwise math
    stay in f32. Pass jnp.float32 for bit-tighter numerics.
    """
    B, N, E = encoder_out.shape
    D = decoder_hidden.shape[1]
    A = params["we"].shape[0]
    out_dtype = encoder_out.dtype

    cdt_bytes = jnp.dtype(compute_dtype).itemsize
    out_bytes = jnp.dtype(out_dtype).itemsize

    N_pad = _round_up(N, 128)      # lane-dense att output / sublane-aligned enc tile
    E_pad = _round_up(E, 128)      # lane-dense ctx output
    A_pad = _round_up(A, 128)      # lane-dense att1/score intermediates

    if batch_tile is None:
        TB = _choose_batch_tile(B, N_pad, E_pad, A_pad, D, cdt_bytes, out_bytes)
    else:
        TB = max(8, _round_up(batch_tile, 8))

    B_pad = _round_up(B, TB)
    if B_pad // TB < 2:
        B_pad = 2 * TB             # >= 2 grid steps so both v7x TensorCores get work
    grid_steps = B_pad // TB

    # Pad activations (zeros) and cast matmul inputs to compute_dtype.
    enc_p = jnp.pad(encoder_out,
                    ((0, B_pad - B), (0, N_pad - N), (0, E_pad - E))).astype(compute_dtype)
    dec_p = jnp.pad(decoder_hidden, ((0, B_pad - B), (0, 0))).astype(compute_dtype)

    # Pre-transposed (in, out) weights; zero-padded rows/cols leave results unchanged
    # (padded A columns give relu(0)*0 = 0 contribution to e).
    we_t = jnp.pad(params["we"].T,
                   ((0, E_pad - E), (0, A_pad - A))).astype(compute_dtype)   # (E_pad, A_pad)
    wd_t = jnp.pad(params["wd"].T,
                   ((0, 0), (0, A_pad - A))).astype(compute_dtype)           # (D, A_pad)
    bcomb = jnp.pad((params["be"] + params["bd"]).reshape(1, A),
                    ((0, 0), (0, A_pad - A))).astype(jnp.float32)            # (1, A_pad)
    wf = jnp.pad(params["wf"].reshape(1, A),
                 ((0, 0), (0, A_pad - A))).astype(jnp.float32)               # (1, A_pad)
    # params["bf"] intentionally unused: constant shift before softmax cancels.

    kernel = functools.partial(_attention_kernel, n_valid=N)

    # Explicit VMEM budget / limit (v7x has 64 MiB physical; stay well under).
    est = _vmem_bytes_per_step(TB, N_pad, E_pad, A_pad, D, cdt_bytes, out_bytes)
    vmem_limit = int(min(max(est * 3 // 2, 32 * 1024 * 1024), 56 * 1024 * 1024))

    flops = (2 * B_pad * N_pad * E_pad * A_pad       # encoder projection
             + 2 * B_pad * D * A_pad                 # decoder projection
             + 2 * B_pad * N_pad * A_pad             # full_att reduce
             + 2 * B_pad * N_pad * E_pad)            # context reduce
    bytes_accessed = (enc_p.size * cdt_bytes + dec_p.size * cdt_bytes
                      + (we_t.size + wd_t.size) * cdt_bytes
                      + (bcomb.size + wf.size) * 4
                      + B_pad * (E_pad + N_pad) * out_bytes)
    cost = pl.CostEstimate(flops=flops, transcendentals=B_pad * N_pad,
                           bytes_accessed=bytes_accessed)

    enc_spec = _buffered_spec((TB, N_pad, E_pad), lambda b: (b, 0, 0),
                              buffers=min(3, grid_steps))

    ctx_p, att_p = pl.pallas_call(
        kernel,
        out_shape=(jax.ShapeDtypeStruct((B_pad, E_pad), out_dtype),
                   jax.ShapeDtypeStruct((B_pad, N_pad), out_dtype)),
        grid_spec=pltpu.PrefetchScalarGridSpec(
            num_scalar_prefetch=0,
            grid=(grid_steps,),
            in_specs=[
                enc_spec,                                          # encoder_out tile
                pl.BlockSpec((TB, D),        lambda b: (b, 0)),    # decoder_hidden tile
                pl.BlockSpec((E_pad, A_pad), lambda b: (0, 0)),    # encoder_att W (in,out)
                pl.BlockSpec((D, A_pad),     lambda b: (0, 0)),    # decoder_att W (in,out)
                pl.BlockSpec((1, A_pad),     lambda b: (0, 0)),    # combined bias (be+bd)
                pl.BlockSpec((1, A_pad),     lambda b: (0, 0)),    # full_att W (row)
            ],
            out_specs=(pl.BlockSpec((TB, E_pad), lambda b: (b, 0)),
                       pl.BlockSpec((TB, N_pad), lambda b: (b, 0))),
        ),
        compiler_params=pltpu.CompilerParams(
            dimension_semantics=("parallel",),
            vmem_limit_bytes=vmem_limit),
        cost_estimate=cost,
    )(enc_p, dec_p, we_t, wd_t, bcomb, wf)

    # Strip batch / feature / key padding.
    return ctx_p[:B, :E], att_p[:B, :N]


def attention_reference(encoder_out, decoder_hidden, params):
    """Plain-JAX reference reproducing the torch forward exactly (incl. full_att bias)."""
    att1 = encoder_out @ params["we"].T + params["be"]                 # (B, N, A)
    att2 = decoder_hidden @ params["wd"].T + params["bd"]              # (B, A)
    score = jnp.maximum(att1 + att2[:, None, :], 0.0)                  # (B, N, A)
    e = (score @ params["wf"].T + params["bf"])[..., 0]                # (B, N)
    att = jax.nn.softmax(e, axis=1)                                    # (B, N)
    ctx = jnp.sum(att[..., None] * encoder_out, axis=1)                # (B, E)
    return ctx, att


def init_params(key, encoder_dim, decoder_dim, attention_dim):
    k = jax.random.split(key, 6)
    scale = 0.1
    return {
        "we": scale * jax.random.normal(k[0], (attention_dim, encoder_dim), jnp.float32),
        "be": scale * jax.random.normal(k[1], (attention_dim,), jnp.float32),
        "wd": scale * jax.random.normal(k[2], (attention_dim, decoder_dim), jnp.float32),
        "bd": scale * jax.random.normal(k[3], (attention_dim,), jnp.float32),
        "wf": scale * jax.random.normal(k[4], (1, attention_dim), jnp.float32),
        "bf": scale * jax.random.normal(k[5], (1,), jnp.float32),
    }


if __name__ == "__main__":
    B, N = 2, 8                       # batch, num encoder positions (e.g. pixels)
    encoder_dim, decoder_dim, attention_dim = 32, 64, 32

    key = jax.random.PRNGKey(0)
    k_enc, k_dec, k_par = jax.random.split(key, 3)

    encoder_out = jax.random.normal(k_enc, (B, N, encoder_dim), jnp.float32)
    decoder_hidden = jax.random.normal(k_dec, (B, decoder_dim), jnp.float32)
    params = init_params(k_par, encoder_dim, decoder_dim, attention_dim)

    ctx_ref_v, att_ref_v = attention_reference(encoder_out, decoder_hidden, params)

    # Default bf16 matmul-input path (MXU-native on v5e/v6e/v7x); elementwise math f32.
    ctx_bf, att_bf = attention_forward(encoder_out, decoder_hidden, params)
    ctx_bf, att_bf = jax.block_until_ready((ctx_bf, att_bf))
    assert ctx_bf.shape == (B, encoder_dim) and att_bf.shape == (B, N)
    assert jnp.allclose(ctx_bf, ctx_ref_v, atol=5e-2, rtol=5e-2)
    assert jnp.allclose(att_bf, att_ref_v, atol=5e-2, rtol=5e-2)
    assert jnp.allclose(jnp.sum(att_bf, axis=1), 1.0, atol=5e-3)

    # f32 matmul-input path (tight numerical check).
    ctx_f32, att_f32 = attention_forward(encoder_out, decoder_hidden, params,
                                         compute_dtype=jnp.float32)
    ctx_f32, att_f32 = jax.block_until_ready((ctx_f32, att_f32))
    assert jnp.allclose(ctx_f32, ctx_ref_v, atol=2e-3, rtol=2e-3)
    assert jnp.allclose(att_f32, att_ref_v, atol=2e-3, rtol=2e-3)
    assert jnp.allclose(jnp.sum(att_f32, axis=1), 1.0, atol=1e-3)

    print("KERNEL_OK")
</pallas_src>

<mosaic_0001>
module attributes {stable_mosaic.version = 11 : i64} {
  func.func @_attention_kernel(%arg0: i32, %arg1: memref<8x128x128xbf16, #tpu.memory_space<vmem>>, %arg2: memref<8x64xbf16, #tpu.memory_space<vmem>>, %arg3: memref<128x128xbf16, #tpu.memory_space<vmem>>, %arg4: memref<64x128xbf16, #tpu.memory_space<vmem>>, %arg5: memref<1x128xf32, #tpu.memory_space<vmem>>, %arg6: memref<1x128xf32, #tpu.memory_space<vmem>>, %arg7: memref<8x128xf32, #tpu.memory_space<vmem>>, %arg8: memref<8x128xf32, #tpu.memory_space<vmem>>) attributes {dimension_semantics = [#tpu.dimension_semantics<parallel>], iteration_bounds = array<i64: 2>, scalar_prefetch = 0 : i64, scratch_operands = 0 : i64, tpu.core_type = #tpu.core_type<tc>, window_params = [{pipeline_mode = #tpu.pipeline_mode<double_buffered>, transform_indices = @transform_0, window_bounds = array<i64: 8, 128, 128>}, {transform_indices = @transform_1, window_bounds = array<i64: 8, 64>}, {pipeline_mode = #tpu.pipeline_mode<synchronous>, transform_indices = @transform_2, window_bounds = array<i64: 128, 128>}, {pipeline_mode = #tpu.pipeline_mode<synchronous>, transform_indices = @transform_3, window_bounds = array<i64: 64, 128>}, {pipeline_mode = #tpu.pipeline_mode<synchronous>, transform_indices = @transform_4, window_bounds = array<i64: 1, 128>}, {pipeline_mode = #tpu.pipeline_mode<synchronous>, transform_indices = @transform_5, window_bounds = array<i64: 1, 128>}, {transform_indices = @transform_6, window_bounds = array<i64: 8, 128>}, {transform_indices = @transform_7, window_bounds = array<i64: 8, 128>}]} {
    %c0 = arith.constant 0 : index
    %c0_0 = arith.constant 0 : index
    %c0_1 = arith.constant 0 : index
    %0 = vector.load %arg1[%c0, %c0_0, %c0_1] : memref<8x128x128xbf16, #tpu.memory_space<vmem>>, vector<8x128x128xbf16>
    %1 = vector.shape_cast %0 : vector<8x128x128xbf16> to vector<1024x128xbf16>
    %c0_2 = arith.constant 0 : index
    %c0_3 = arith.constant 0 : index
    %2 = vector.load %arg3[%c0_2, %c0_3] : memref<128x128xbf16, #tpu.memory_space<vmem>>, vector<128x128xbf16>
    %cst = arith.constant dense<0.000000e+00> : vector<1024x128xf32>
    %3 = tpu.matmul %1, %2, %cst {dimension_numbers = #tpu.dot_dimension_numbers<[1], [0], [0], [1], [0, 0, 1, 1], [], []>} : vector<1024x128xbf16>, vector<128x128xbf16>, vector<1024x128xf32> -> vector<1024x128xf32>
    %4 = vector.shape_cast %3 : vector<1024x128xf32> to vector<8x128x128xf32>
    %c0_4 = arith.constant 0 : index
    %c0_5 = arith.constant 0 : index
    %5 = vector.load %arg2[%c0_4, %c0_5] : memref<8x64xbf16, #tpu.memory_space<vmem>>, vector<8x64xbf16>
    %c0_6 = arith.constant 0 : index
    %c0_7 = arith.constant 0 : index
    %6 = vector.load %arg4[%c0_6, %c0_7] : memref<64x128xbf16, #tpu.memory_space<vmem>>, vector<64x128xbf16>
    %cst_8 = arith.constant dense<0.000000e+00> : vector<8x128xf32>
    %7 = tpu.matmul %5, %6, %cst_8 {dimension_numbers = #tpu.dot_dimension_numbers<[1], [0], [0], [1], [0, 0, 1, 1], [], []>} : vector<8x64xbf16>, vector<64x128xbf16>, vector<8x128xf32> -> vector<8x128xf32>
    %c0_9 = arith.constant 0 : index
    %c0_10 = arith.constant 0 : index
    %8 = vector.load %arg5[%c0_9, %c0_10] : memref<1x128xf32, #tpu.memory_space<vmem>>, vector<1x128xf32>
    %9 = vector.broadcast %8 : vector<1x128xf32> to vector<8x128xf32>
    %10 = arith.addf %7, %9 : vector<8x128xf32>
    %11 = vector.shape_cast %10 : vector<8x128xf32> to vector<8x1x128xf32>
    %12 = vector.broadcast %11 : vector<8x1x128xf32> to vector<8x128x128xf32>
    %13 = arith.addf %4, %12 : vector<8x128x128xf32>
    %cst_11 = arith.constant 0.000000e+00 : f32
    %14 = vector.broadcast %cst_11 : f32 to vector<8x128x128xf32>
    %15 = arith.maximumf %13, %14 : vector<8x128x128xf32>
    %c0_12 = arith.constant 0 : index
    %c0_13 = arith.constant 0 : index
    %16 = vector.load %arg6[%c0_12, %c0_13] : memref<1x128xf32, #tpu.memory_space<vmem>>, vector<1x128xf32>
    %17 = vector.shape_cast %16 : vector<1x128xf32> to vector<1x1x128xf32>
    %18 = vector.broadcast %17 : vector<1x1x128xf32> to vector<8x128x128xf32>
    %19 = arith.mulf %15, %18 : vector<8x128x128xf32>
    %cst_14 = arith.constant dense<0.000000e+00> : vector<8x128xf32>
    %20 = vector.multi_reduction <add>, %19, %cst_14 [2] : vector<8x128x128xf32> to vector<8x128xf32>
    %21 = tpu.iota {dimensions = array<i32: 1>} : vector<8x128xi32>
    %c8_i32 = arith.constant 8 : i32
    %22 = vector.broadcast %c8_i32 : i32 to vector<8x128xi32>
    %23 = arith.cmpi slt, %21, %22 : vector<8x128xi32>
    %cst_15 = arith.constant -1.000000e+30 : f32
    %24 = vector.broadcast %cst_15 : f32 to vector<8x128xf32>
    %25 = arith.select %23, %20, %24 : vector<8x128xi1>, vector<8x128xf32>
    %cst_16 = arith.constant dense<0xFF800000> : vector<8xf32>
    %26 = vector.multi_reduction <maximumf>, %25, %cst_16 [1] : vector<8x128xf32> to vector<8xf32>
    %27 = vector.shape_cast %26 : vector<8xf32> to vector<8x1xf32>
    %28 = vector.broadcast %27 : vector<8x1xf32> to vector<8x128xf32>
    %29 = arith.subf %25, %28 : vector<8x128xf32>
    %30 = math.exp %29 : vector<8x128xf32>
    %cst_17 = arith.constant dense<0.000000e+00> : vector<8xf32>
    %31 = vector.multi_reduction <add>, %30, %cst_17 [1] : vector<8x128xf32> to vector<8xf32>
    %32 = vector.shape_cast %31 : vector<8xf32> to vector<8x1xf32>
    %33 = tpu.reciprocal %32 {approx = true} : vector<8x1xf32> -> vector<8x1xf32>
    %34 = arith.mulf %32, %33 : vector<8x1xf32>
    %cst_18 = arith.constant 2.000000e+00 : f32
    %35 = vector.broadcast %cst_18 : f32 to vector<8x1xf32>
    %36 = arith.subf %35, %34 : vector<8x1xf32>
    %37 = arith.mulf %33, %36 : vector<8x1xf32>
    %38 = vector.broadcast %37 : vector<8x1xf32> to vector<8x128xf32>
    %39 = arith.mulf %30, %38 : vector<8x128xf32>
    %40 = vector.shape_cast %39 : vector<8x128xf32> to vector<8x128x1xf32>
    %41 = arith.extf %0 : vector<8x128x128xbf16> to vector<8x128x128xf32>
    %42 = vector.broadcast %40 : vector<8x128x1xf32> to vector<8x128x128xf32>
    %43 = arith.mulf %42, %41 : vector<8x128x128xf32>
    %cst_19 = arith.constant dense<0.000000e+00> : vector<8x128xf32>
    %44 = vector.multi_reduction <add>, %43, %cst_19 [1] : vector<8x128x128xf32> to vector<8x128xf32>
    %c0_20 = arith.constant 0 : index
    %c0_21 = arith.constant 0 : index
    %45 = vector.load %arg8[%c0_20, %c0_21] : memref<8x128xf32, #tpu.memory_space<vmem>>, vector<8x128xf32>
    tpu.vector_store %arg8[%c0_20, %c0_21], %39 {strides = array<i32>} : memref<8x128xf32, #tpu.memory_space<vmem>>, vector<8x128xf32>,
    %c0_22 = arith.constant 0 : index
    %c0_23 = arith.constant 0 : index
    %46 = vector.load %arg7[%c0_22, %c0_23] : memref<8x128xf32, #tpu.memory_space<vmem>>, vector<8x128xf32>
    tpu.vector_store %arg7[%c0_22, %c0_23], %44 {strides = array<i32>} : memref<8x128xf32, #tpu.memory_space<vmem>>, vector<8x128xf32>,
    return
  }
  func.func @transform_0(%arg0: i32) -> (i32, i32, i32) {
    %c0_i32 = arith.constant 0 : i32
    %c0_i32_0 = arith.constant 0 : i32
    %c0_i32_1 = arith.constant 0 : i32
    return %arg0, %c0_i32, %c0_i32_0 : i32, i32, i32
  }
  func.func @transform_1(%arg0: i32) -> (i32, i32) {
    %c0_i32 = arith.constant 0 : i32
    %c0_i32_0 = arith.constant 0 : i32
    return %arg0, %c0_i32 : i32, i32
  }
  func.func @transform_2(%arg0: i32) -> (i32, i32) {
    %c0_i32 = arith.constant 0 : i32
    %c0_i32_0 = arith.constant 0 : i32
    %c0_i32_1 = arith.constant 0 : i32
    return %c0_i32, %c0_i32_0 : i32, i32
  }
  func.func @transform_3(%arg0: i32) -> (i32, i32) {
    %c0_i32 = arith.constant 0 : i32
    %c0_i32_0 = arith.constant 0 : i32
    %c0_i32_1 = arith.constant 0 : i32
    return %c0_i32, %c0_i32_0 : i32, i32
  }
  func.func @transform_4(%arg0: i32) -> (i32, i32) {
    %c0_i32 = arith.constant 0 : i32
    %c0_i32_0 = arith.constant 0 : i32
    %c0_i32_1 = arith.constant 0 : i32
    return %c0_i32, %c0_i32_0 : i32, i32
  }
  func.func @transform_5(%arg0: i32) -> (i32, i32) {
    %c0_i32 = arith.constant 0 : i32
    %c0_i32_0 = arith.constant 0 : i32
    %c0_i32_1 = arith.constant 0 : i32
    return %c0_i32, %c0_i32_0 : i32, i32
  }
  func.func @transform_6(%arg0: i32) -> (i32, i32) {
    %c0_i32 = arith.constant 0 : i32
    %c0_i32_0 = arith.constant 0 : i32
    return %arg0, %c0_i32 : i32, i32
  }
  func.func @transform_7(%arg0: i32) -> (i32, i32) {
    %c0_i32 = arith.constant 0 : i32
    %c0_i32_0 = arith.constant 0 : i32
    return %arg0, %c0_i32 : i32, i32
  }
}

</mosaic_0001>

<bundles_post_ra>
// kernel: tpu_custom_call.1
= control target key start
LH: loop header
LB: loop body
LE: loop exit
PB: predicated region body
PF: predicated region fallthrough
CT: control target
= control target key end

     0   :  { %s6632_s0 = inlined_call_operand.hbm [shape: bf16[16,128,128], index: 0, kind: input, shape index: {}]   ;;  %s6633_s1 = inlined_call_operand.hbm [shape: bf16[16,64], index: 1, kind: input, shape index: {}]   ;;  %s6634_s2 = inlined_call_operand.hbm [shape: bf16[128,128], index: 2, kind: input, shape index: {}]   ;;  %s6635_s3 = inlined_call_operand.hbm [shape: bf16[64,128], index: 3, kind: input, shape index: {}]   ;;  %s6636_s4 = inlined_call_operand.vmem [shape: f32[1,128], index: 4, kind: input, shape index: {}]   ;;  %s6637_s5 = inlined_call_operand.vmem [shape: f32[1,128], index: 5, kind: input, shape index: {}]   ;;  %s6638_s6 = inlined_call_operand.hbm [shape: f32[16,128], index: 6, kind: output, shape index: {0}]   ;;  %s6639_s7 = inlined_call_operand.hbm [shape: f32[16,128], index: 7, kind: output, shape index: {1}]  }
   0x1   :  { %6647 = sst [smem:[#allocation64_spill]] %s6634_s2 }
   0x2   :  { %6648 = sst [smem:[#allocation65_spill]] %s6635_s3 }
   0x3   :  { %13 = vsyncpa [#allocation3], 0 }
   0x4   :  { %15 = vsyncpa [#allocation3 + $0x1], 0 }
   0x5   :  { %16 = vsyncpa [#allocation6], 0 }
   0x6   :  { %18 = vsyncpa [#allocation6 + $0x1], 0 }
   0x7   :  { %19 = vsyncpa [#allocation9], 0 }
   0x8   :  { %20 = vsyncpa [#allocation4], 0 }
   0x9   :  { %22 = vsyncpa [#allocation4 + $0x1], 0 }
   0xa   :  { %23 = vsyncpa [#allocation12], 0 }
   0xb   :  { %25 = vsyncpa [#allocation12 + $0x1], 0  ;;  %s4769_s24 = smov 0   ;;  %s4771_s25 = smov 0  }
   0xc   :  { %s4773_s26 = smov 0   ;;  %s4775_s27 = smov 0  }
   0xd LB: > { %6649 = sst [smem:[#allocation19_spill]] %s4719_s26  ;;  %s4790_s28 = sadd.s32 4294967295, %s4723_s27   ;;  %s4723_s27 = sphi %s4775_s27, %s6781_s27   ;;  %s4719_s26 = sphi %s4773_s26, %s6783_s26   ;;  %s4715_s25 = sphi %s4771_s25, %s6785_s25   ;;  %s4711_s24 = sphi %s4769_s24, %s6784_s24  }
   0xe   : > { %s3847_s29 = sadd.s32 4294967294, %s4723_s27   ;;  %p51_p0 = scmp.ne.s32.totalorder %s4715_s25, %s4711_s24 }
   0xf   : > { %p52_p1 = scmp.eq.s32.totalorder %s4790_s28, 0  ;;  %p185_p2 = scmp.eq.s32.totalorder %s4790_s28, 1 }
  0x10   : > { %p191_p3 = scmp.eq.s32.totalorder %s3847_s29, 1  ;;  %p3848_p5 = scmp.ge.s32.totalorder %s4723_s27, 1 }
  0x11   : > { %p4799_p4 = por %p52_p1, %p51_p0  ;;  %p224_p7 = scmp.lt.s32.totalorder %s4723_s27, 3 }
  0x12   : > { %p4804_p6 = por %p191_p3, %p51_p0  ;;  %s6653_s2 = sld [smem:[#allocation64_spill]] }
  0x13   : > { %p4812_p8 = pnand %p3848_p5, %p224_p7  ;;  %s4725_s13 = smov [#allocation7]  }
  0x14   : > { %s6651_s8 = scalar_select %p4804_p6, 1, 0 }
  0x15   : > { %p4294_p9 = pneg %p4812_p8  ;;  %s237_s14 = sshll.u32 %s4725_s13, 4  ;;  %s238_s14 = int_to_ptr.vmem [resolvable:$true] %s237_s14 }
  0x16   : > { %6652 = sst [smem:[#allocation20_spill]] %s6651_s8  ;;  %s6640_s18 = smov 64  }
  0x17   : > { %p4295_p10 = pnand %p4294_p9, %p52_p1  ;;  %s6655_s3 = sld [smem:[#allocation65_spill]] }
  0x18   : > { %s235_s11 = sshll.u32 %s6653_s2, 4  ;;  %s6641_s19 = smov 4   ;;  %s236_s11 = int_to_ptr.hbm [resolvable:$true] %s235_s11 }
  0x19   : > { %4297 = dma.hbm_to_vmem [thread:$0]  (!%p4295_p10), %s236_s11, 1024, %s238_s14, [#allocation6], %s6640_s18, %s6640_s18, %s6641_s19  }
  0x1a   : > { %s4728_s20 = smov [#allocation8]   ;;  %s4831_s22 = sadd.s32 1, %s4723_s27  }
  0x1b   : > { %s251_s21 = sshll.u32 %s4728_s20, 4  ;;  %6656 = sst [smem:[#allocation21_spill]] %s4831_s22  ;;  %s252_s21 = int_to_ptr.vmem [resolvable:$true] %s251_s21 }
  0x1c   : > { %s38_s23 = sadd.s32 1, %s4719_s26  ;;  %s35_s29 = ssub.s32 %s4723_s27, %s4831_s22 }
  0x1d   : > { %s249_s17 = sshll.u32 %s6655_s3, 4  ;;  %p45_p12 = scmp.ne.s32.totalorder %s4719_s26, %s4715_s25  ;;  %s250_s17 = int_to_ptr.hbm [resolvable:$true] %s249_s17 }
  0x1e   : > { %4300 = dma.hbm_to_vmem [thread:$0]  (!%p4295_p10), %s250_s17, 512, %s252_s21, [#allocation9], %s6640_s18, %s6640_s18, %s6641_s19  }
  0x1f   : > { %p36_p13 = scmp.eq.s32.totalorder %s35_s29, 0  ;;  %p46_p0 = scmp.eq.s32.totalorder %s4723_s27, 0 }
  0x20   : > { %p4841_p3 = por %p185_p2, %p45_p12  ;;  %p4317_p5 = scmp.lt.s32.totalorder %s4723_s27, 2 }
  0x21   : > { %s4847_s10 = scalar_select %p36_p13, %s4719_s26, %s38_s23  }
  0x22   : > { %p47_p7 = por %p46_p0, %p45_p12  ;;  %s4850_s11 = sand.u32 1, %s4719_s26  }
  0x23   : > { %6658 = sst [smem:[#allocation22_spill]] %s4847_s10  ;;  %s3852_s13 = sshll.u32 %s4850_s11, 9 }
  0x24   : > { %s4177_s14 = sshll.u32 %s4723_s27, 9  ;;  %s275_s20 = scalar_lea.vmem [#allocation2], %s3852_s13 }
  0x25   : > { %s281_s17 = scalar_lea.hbm %s6632_s0, %s4177_s14  ;;  %s284_s21 = sshll.u32 %s275_s20, 4  ;;  %s285_s21 = int_to_ptr.vmem [resolvable:$true] %s284_s21 }
  0x26   : > { %s282_s29 = sshll.u32 %s281_s17, 4  ;;  %p4857_p2 = pnand %p4317_p5, %p47_p7  ;;  %s283_s29 = int_to_ptr.hbm [resolvable:$true] %s282_s29 }
  0x27   : > { %s294_s18 = sand.u32 1, %s4723_s27   ;;  %s3856_s19 = sshll.u32 %s4850_s11, 2 }
  0x28   : > { %s272_s2 = scalar_lea.sflag [#allocation3], %s4850_s11  ;;  %s4553_s3 = sshra.s32 %s283_s29, 4  ;;  %s4554_s3 = int_to_ptr.hbm [resolvable:$true] %s4553_s3 }
  0x29   : > { %s4555_s10 = scalar_lea.hbm %s4554_s3, 512  ;;  %p4557_p10 = pneg %p4857_p2 }
  0x2a   : > { %p4556_p9 = scmp.ne.s32.totalorder %s4554_s3, %s4555_s10  ;;  %s4560_s15 = scalar_lea.hbm %s6632_s0, 1024 }
  0x2b   : > { %p4561_p0 = scmp.lt.s32.totalorder %s4554_s3, %s6632_s0  ;;  %p4562_p5 = scmp.lt.s32.totalorder %s4560_s15, %s4555_s10 }
  0x2c   : > { %p4558_p12 = pnand %p4557_p10, %p4556_p9 }
  0x2d   : > { %p4563_p7 = por %p4562_p5, %p4561_p0 }
  0x2e   : > { %p4559_p13 = pneg %p4558_p12 }
  0x30   : > { %p4564_p11 = pnand %p4563_p7, %p4559_p13 }
  0x32   : > { %4567 = shalt.err (!%p4564_p11)
}
  0x33   : > { %s6660_s11 = smov 4   ;;  %s6661_s20 = smov 64  }
  0x34   : > { %4304 = dma.hbm_to_vmem [thread:$0]  (!%p4857_p2), %s283_s29, 8192, %s285_s21, %s272_s2, %s6661_s20, %s6661_s20, %s6660_s11  }
  0x35   : > { %s3857_s26 = sshll.u32 %s4723_s27, 2  ;;  %s298_s8 = scalar_lea.vmem [#allocation5], %s3856_s19 }
  0x36   : > { %s302_s14 = scalar_lea.hbm %s6633_s1, %s3857_s26  ;;  %s306_s16 = sshll.u32 %s298_s8, 4  ;;  %s307_s16 = int_to_ptr.vmem [resolvable:$true] %s306_s16 }
  0x37   : > { %s304_s3 = sshll.u32 %s302_s14, 4  ;;  %s295_s10 = scalar_lea.sflag [#allocation6], %s294_s18  ;;  %s305_s3 = int_to_ptr.hbm [resolvable:$true] %s304_s3 }
  0x38   : > { %s4583_s15 = sshra.s32 %s305_s3, 4  ;;  %s4590_s29 = scalar_lea.hbm %s6633_s1, 8  ;;  %s4584_s15 = int_to_ptr.hbm [resolvable:$true] %s4583_s15 }
  0x39   : > { %s4585_s17 = scalar_lea.hbm %s4584_s15, 4  ;;  %p4591_p13 = scmp.lt.s32.totalorder %s4584_s15, %s6633_s1 }
  0x3a   : > { %p4586_p11 = scmp.ne.s32.totalorder %s4584_s15, %s4585_s17  ;;  %p4592_p0 = scmp.lt.s32.totalorder %s4590_s29, %s4585_s17 }
  0x3c   : > { %p4588_p9 = pnand %p4586_p11, %p4557_p10  ;;  %p4593_p5 = por %p4592_p0, %p4591_p13 }
  0x3e   : > { %p4589_p12 = pneg %p4588_p9 }
  0x40   : > { %p4594_p7 = pnand %p4593_p5, %p4589_p12 }
  0x42   : > { %4597 = shalt.err (!%p4594_p7)
}
  0x43   : > { %4307 = dma.hbm_to_vmem [thread:$0]  (!%p4857_p2), %s305_s3, 64, %s307_s16, %s295_s10  }
  0x44   : > { %315 = sbr.rel (%p4812_p8) target bundleno = 2148 (0x864), region = 44 }
  0x49   : > { %s4898_s8 = sand.u32 1, %s4715_s25  }
  0x4a   : > { %s3859_s18 = sshll.u32 %s4898_s8, 9  ;;  %s318_s19 = scalar_lea.sflag [#allocation3], %s4898_s8 }
  0x4b   : > { %s4902_s11 = scalar_lea.vmem [#allocation2], %s3859_s18 }
  0x4c   : > { %4686 = dma.done.wait (%p4799_p4), %s318_s19, 8192  }
  0x4d   : > { %4688 = vsyncadd (%p4799_p4), %s318_s19, 4294959104  ;;  %s327_s12 = sand.u32 1, %s4790_s28   ;;  %s3860_s23 = sshll.u32 %s4898_s8, 2 }
  0x4e   : > { %s328_s20 = scalar_lea.sflag [#allocation6], %s327_s12  ;;  %s4910_s13 = scalar_lea.vmem [#allocation5], %s3860_s23 }
  0x4f   : > { %4690 = dma.done.wait (%p4799_p4), %s328_s20, 64  }
  0x50   : > { %4692 = vsyncadd (%p4799_p4), %s328_s20, 4294967232 }
  0x51   : > { %4694 = dma.done.wait (%p52_p1), [#allocation6], 1024  }
  0x52   : > { %4696 = vsyncadd (%p52_p1), [#allocation6], 4294966272 }
  0x53   : > { %4698 = dma.done.wait (%p52_p1), [#allocation9], 512  }
  0x54   : > { %4700 = vsyncadd (%p52_p1), [#allocation9], 4294966784  ;;  %v4249_v0 = vld [vmem:[#allocation7 + $0x38] sm:$0xff]  ;;  %v4248_v1 = vld [vmem:[#allocation7 + $0x30] sm:$0xff]  ;;  %vm1327_vm0 = vcmask 523264   ;;  %vm2146_vm1 = vcmask 130112  }
  0x55   : > { %961 = vmatpush.bf16.msra.mxu0 %v4249_v0  ;;  %4254 = vmatpush.bf16.msra.mxu1 %v4249_v0  ;;  %v4247_v2 = vld [vmem:[#allocation7 + $0x28] sm:$0xff]  ;;  %v4246_v3 = vld [vmem:[#allocation7 + $0x20] sm:$0xff]  ;;  %v4245_v4 = vld [vmem:[#allocation7 + $0x18] sm:$0xff]  ;;  %vm2150_vm2 = vcmask 195712   ;;  %vm2154_vm3 = vcmask 261312   ;;  %vm2158_vm4 = vcmask 326912  }
  0x56   : > { %4255 = vmatpush.bf16.msra.mxu2 %v4249_v0  ;;  %4256 = vmatpush.bf16.msra.mxu3 %v4249_v0  ;;  %v4244_v5 = vld [vmem:[#allocation7 + $0x10] sm:$0xff]  ;;  %v4243_v6 = vld [vmem:[#allocation7 + $0x8] sm:$0xff]  ;;  %v4242_v7 = vld [vmem:[#allocation7] sm:$0xff]  ;;  %vm2162_vm5 = vcmask 392512   ;;  %vm2166_vm6 = vcmask 458112   ;;  %vm2170_vm7 = vcmask 523712  }
  0x57   : > { %v4253_v8 = vld [vmem:[#allocation8 + $0x18] sm:$0xff]  ;;  %v4209_v11 = vld [vmem:[%s4902_s11 + $0xf8] sm:$0xff]  ;;  %v4179_v13 = vld [vmem:[%s4902_s11 + $0x8] sm:$0xff]  ;;  %vm2174_vm8 = vcmask 589312   ;;  %vm2178_vm9 = vcmask 654912   ;;  %vm2182_vm10 = vcmask 720512  }
  0x58   : > { %v4178_v9 = vld [vmem:[%s4902_s11] sm:$0xff]  ;;  %v4225_v12 = vld [vmem:[%s4902_s11 + $0x178] sm:$0xff]  ;;  %v4195_v14 = vld [vmem:[%s4902_s11 + $0x88] sm:$0xff]  ;;  %vm2186_vm11 = vcmask 786112   ;;  %vm2190_vm12 = vcmask 851712   ;;  %vm2194_vm13 = vcmask 917312  }
  0x59   : > { %962 = vmatpush.bf16.msra.mxu0 %v4248_v1  ;;  %4257 = vmatpush.bf16.msra.mxu1 %v4248_v1  ;;  %v4194_v10 = vld [vmem:[%s4902_s11 + $0x80] sm:$0xff]  ;;  %v4252_v17 = vld [vmem:[#allocation8 + $0x10] sm:$0xff]  ;;  %v4180_v18 = vld [vmem:[%s4902_s11 + $0x10] sm:$0xff]  ;;  %vm2198_vm14 = vcmask 982912   ;;  %vm2202_vm15 = vcmask 1048512   ;;  %s3863_s17 = sshll.u32 %s4898_s8, 3 }
  0x5a   : > { %4258 = vmatpush.bf16.msra.mxu2 %v4248_v1  ;;  %4259 = vmatpush.bf16.msra.mxu3 %v4248_v1  ;;  %v4210_v15 = vld [vmem:[%s4902_s11 + $0x100] sm:$0xff]  ;;  %v4196_v19 = vld [vmem:[%s4902_s11 + $0x90] sm:$0xff]  ;;  %v4211_v20 = vld [vmem:[%s4902_s11 + $0x108] sm:$0xff]  ;;  %s6173_s2 = scalar_lea.vmem [#allocation11], %s3863_s17  ;;  %s4172_s21 = sshll.u32 %s4790_s28, 3 }
  0x5b   : > { %v4226_v16 = vld [vmem:[%s4902_s11 + $0x180] sm:$0xff]  ;;  %v4227_v21 = vld [vmem:[%s4902_s11 + $0x188] sm:$0xff]  ;;  %v4181_v22 = vld [vmem:[%s4902_s11 + $0x18] sm:$0xff]  ;;  %s3697_s26 = scalar_lea.hbm %s6639_s7, %s4172_s21  ;;  %s3699_s18 = sshll.u32 %s6173_s2, 4  ;;  %s3700_s18 = int_to_ptr.vmem [resolvable:$true] %s3699_s18 }
  0x5c   : > { %v4197_v23 = vld [vmem:[%s4902_s11 + $0x98] sm:$0xff]  ;;  %v4212_v24 = vld [vmem:[%s4902_s11 + $0x110] sm:$0xff]  ;;  %v4182_v26 = vld [vmem:[%s4902_s11 + $0x20] sm:$0xff]  ;;  %s3701_s19 = sshll.u32 %s3697_s26, 4  ;;  %s3673_s12 = scalar_lea.sflag [#allocation12], %s4898_s8  ;;  %s3702_s19 = int_to_ptr.hbm [resolvable:$true] %s3701_s19 }
  0x5d   : > { %963 = vmatpush.bf16.msra.mxu0 %v4247_v2  ;;  %4260 = vmatpush.bf16.msra.mxu1 %v4247_v2  ;;  %v4228_v25 = vld [vmem:[%s4902_s11 + $0x190] sm:$0xff]  ;;  %v4198_v27 = vld [vmem:[%s4902_s11 + $0xa0] sm:$0xff]  ;;  %v4213_v28 = vld [vmem:[%s4902_s11 + $0x118] sm:$0xff]  ;;  %s4627_s23 = sshra.s32 %s3702_s19, 4  ;;  %s4633_s14 = scalar_lea.hbm %s6639_s7, 16  ;;  %s4628_s23 = int_to_ptr.hbm [resolvable:$true] %s4627_s23 }
  0x5e   : > { %4261 = vmatpush.bf16.msra.mxu2 %v4247_v2  ;;  %4262 = vmatpush.bf16.msra.mxu3 %v4247_v2  ;;  %v4229_v29 = vld [vmem:[%s4902_s11 + $0x198] sm:$0xff]  ;;  %v4183_v30 = vld [vmem:[%s4902_s11 + $0x28] sm:$0xff]  ;;  %v4214_v32 = vld [vmem:[%s4902_s11 + $0x120] sm:$0xff]  ;;  %s4629_s20 = scalar_lea.hbm %s4628_s23, 8  ;;  %p4634_p2 = scmp.lt.s32.totalorder %s4628_s23, %s6639_s7 }
  0x5f   : > { %v4199_v31 = vld [vmem:[%s4902_s11 + $0xa8] sm:$0xff]  ;;  %v4230_v33 = vld [vmem:[%s4902_s11 + $0x1a0] sm:$0xff]  ;;  %v4251_v34 = vld [vmem:[#allocation8 + $0x8] sm:$0xff]  ;;  %p4630_p1 = scmp.ne.s32.totalorder %s4628_s23, %s4629_s20  ;;  %p4635_p10 = scmp.lt.s32.totalorder %s4633_s14, %s4629_s20 }
  0x60   : > { %v4184_v35 = vld [vmem:[%s4902_s11 + $0x30] sm:$0xff]  ;;  %v4215_v37 = vld [vmem:[%s4902_s11 + $0x128] sm:$0xff]  ;;  %v4185_v39 = vld [vmem:[%s4902_s11 + $0x38] sm:$0xff] }
  0x61   : > { %964 = vmatpush.bf16.msra.mxu0 %v4246_v3  ;;  %4263 = vmatpush.bf16.msra.mxu1 %v4246_v3  ;;  %v4200_v36 = vld [vmem:[%s4902_s11 + $0xb0] sm:$0xff]  ;;  %v4231_v38 = vld [vmem:[%s4902_s11 + $0x1a8] sm:$0xff]  ;;  %v4201_v40 = vld [vmem:[%s4902_s11 + $0xb8] sm:$0xff]  ;;  %p4631_p4 = pnand %p4630_p1, %p4841_p3  ;;  %p4636_p11 = por %p4635_p10, %p4634_p2 }
  0x62   : > { %4264 = vmatpush.bf16.msra.mxu2 %v4246_v3  ;;  %4265 = vmatpush.bf16.msra.mxu3 %v4246_v3  ;;  %v4216_v41 = vld [vmem:[%s4902_s11 + $0x130] sm:$0xff]  ;;  %v4186_v43 = vld [vmem:[%s4902_s11 + $0x40] sm:$0xff]  ;;  %v4217_v46 = vld [vmem:[%s4902_s11 + $0x138] sm:$0xff] }
  0x63   : > { %v4232_v42 = vld [vmem:[%s4902_s11 + $0x1b0] sm:$0xff]  ;;  %v4202_v44 = vld [vmem:[%s4902_s11 + $0xc0] sm:$0xff]  ;;  %v4233_v47 = vld [vmem:[%s4902_s11 + $0x1b8] sm:$0xff]  ;;  %p4632_p8 = pneg %p4631_p4 }
  0x64   : > { %v4187_v49 = vld [vmem:[%s4902_s11 + $0x48] sm:$0xff]  ;;  %v4218_v52 = vld [vmem:[%s4902_s11 + $0x140] sm:$0xff]  ;;  %v4188_v58 = vld [vmem:[%s4902_s11 + $0x50] sm:$0xff] }
  0x65   : > { %965 = vmatpush.bf16.msra.mxu0 %v4245_v4  ;;  %4266 = vmatpush.bf16.msra.mxu1 %v4245_v4  ;;  %v4203_v50 = vld [vmem:[%s4902_s11 + $0xc8] sm:$0xff]  ;;  %v4234_v53 = vld [vmem:[%s4902_s11 + $0x1c0] sm:$0xff]  ;;  %v4204_v59 = vld [vmem:[%s4902_s11 + $0xd0] sm:$0xff]  ;;  %p4637_p9 = pnand %p4636_p11, %p4632_p8 }
  0x66   : > { %4267 = vmatpush.bf16.msra.mxu2 %v4245_v4  ;;  %4268 = vmatpush.bf16.msra.mxu3 %v4245_v4  ;;  %v4250_v55 = vld [vmem:[#allocation8] sm:$0xff]  ;;  %v4189_v3 = vld [vmem:[%s4902_s11 + $0x58] sm:$0xff] }
  0x67   : > { %v4219_v61 = vld [vmem:[%s4902_s11 + $0x148] sm:$0xff]  ;;  %v4205_v4 = vld [vmem:[%s4902_s11 + $0xd8] sm:$0xff] }
  0x68   : > { %v4235_v62 = vld [vmem:[%s4902_s11 + $0x1c8] sm:$0xff] }
  0x69   : > { %966 = vmatpush.bf16.msra.mxu0 %v4244_v5  ;;  %4269 = vmatpush.bf16.msra.mxu1 %v4244_v5 }
  0x6a   : > { %4270 = vmatpush.bf16.msra.mxu2 %v4244_v5  ;;  %4271 = vmatpush.bf16.msra.mxu3 %v4244_v5 }
  0x6d   : > { %967 = vmatpush.bf16.msra.mxu0 %v4243_v6  ;;  %4272 = vmatpush.bf16.msra.mxu1 %v4243_v6 }
  0x6e   : > { %4273 = vmatpush.bf16.msra.mxu2 %v4243_v6  ;;  %4274 = vmatpush.bf16.msra.mxu3 %v4243_v6  ;;  %v4220_v6 = vld [vmem:[%s4902_s11 + $0x150] sm:$0xff] }
  0x71   : > { %968 = vmatpush.bf16.msra.mxu0 %v4242_v7  ;;  %4275 = vmatpush.bf16.msra.mxu1 %v4242_v7 }
  0x72   : > { %4276 = vmatpush.bf16.msra.mxu2 %v4242_v7  ;;  %4277 = vmatpush.bf16.msra.mxu3 %v4242_v7  ;;  %v4236_v7 = vld [vmem:[%s4902_s11 + $0x1d0] sm:$0xff] }
  0x74   : > { %969 = vmatmul.bf16.vlgmr.msra.gmra.mxu0 %v4178_v9  ;;  %1049 = vmatmul.bf16.vlgmr.msra.gmra.mxu1 %v4194_v10 }
  0x75   : > { %1335 = vmatpush.bf16.msrb.mxu1 %v4253_v8  ;;  %1124 = vmatmul.bf16.vlgmr.msra.gmra.mxu2 %v4209_v11 }
  0x76   : > { %1204 = vmatmul.bf16.vlgmr.msra.gmra.mxu3 %v4225_v12 }
  0x79   : > { %1336 = vmatpush.bf16.msrb.mxu1 %v4252_v17  ;;  %v4221_v17 = vld [vmem:[%s4902_s11 + $0x158] sm:$0xff] }
  0x7d   : > { %1337 = vmatpush.bf16.msrb.mxu1 %v4251_v34 }
  0x81   : > { %1338 = vmatpush.bf16.msrb.mxu1 %v4250_v55  ;;  %v1290_v55 = vld [vmem:[%s4910_s13] sm:$0xf] }
  0x84   : > { %974 = vmatmul.bf16.gmra.mxu0 %v4179_v13  ;;  %1054 = vmatmul.bf16.gmra.mxu1 %v4195_v14  ;;  %v4190_v14 = vld [vmem:[%s4902_s11 + $0x60] sm:$0xff] }
  0x85   : > { %1129 = vmatmul.bf16.gmra.mxu2 %v4210_v15  ;;  %v4206_v15 = vld [vmem:[%s4902_s11 + $0xe0] sm:$0xff] }
  0x86   : > { %1209 = vmatmul.bf16.gmra.mxu3 %v4226_v16 }
  0x94   : > { %979 = vmatmul.bf16.gmra.mxu0 %v4180_v18  ;;  %1059 = vmatmul.bf16.gmra.mxu1 %v4196_v19  ;;  %v4237_v18 = vld [vmem:[%s4902_s11 + $0x1d8] sm:$0xff] }
  0x95   : > { %1134 = vmatmul.bf16.gmra.mxu2 %v4211_v20 }
  0x96   : > { %1214 = vmatmul.bf16.gmra.mxu3 %v4227_v21 }
  0xa4   : > { %984 = vmatmul.bf16.gmra.mxu0 %v4181_v22  ;;  %1064 = vmatmul.bf16.gmra.mxu1 %v4197_v23 }
  0xa5   : > { %1139 = vmatmul.bf16.gmra.mxu2 %v4212_v24  ;;  %v4191_v24 = vld [vmem:[%s4902_s11 + $0x68] sm:$0xff] }
  0xa6   : > { %1219 = vmatmul.bf16.gmra.mxu3 %v4228_v25  ;;  %v4207_v25 = vld [vmem:[%s4902_s11 + $0xe8] sm:$0xff] }
  0xb4   : > { %989 = vmatmul.bf16.gmra.mxu0 %v4182_v26  ;;  %1069 = vmatmul.bf16.gmra.mxu1 %v4198_v27  ;;  %v4222_v27 = vld [vmem:[%s4902_s11 + $0x160] sm:$0xff] }
  0xb5   : > { %1144 = vmatmul.bf16.gmra.mxu2 %v4213_v28  ;;  %v4238_v28 = vld [vmem:[%s4902_s11 + $0x1e0] sm:$0xff] }
  0xb6   : > { %1224 = vmatmul.bf16.gmra.mxu3 %v4229_v29 }
  0xc4   : > { %994 = vmatmul.bf16.gmra.mxu0 %v4183_v30  ;;  %1074 = vmatmul.bf16.gmra.mxu1 %v4199_v31 }
  0xc5   : > { %1149 = vmatmul.bf16.gmra.mxu2 %v4214_v32 }
  0xc6   : > { %1229 = vmatmul.bf16.gmra.mxu3 %v4230_v33 }
  0xd4   : > { %999 = vmatmul.bf16.gmra.mxu0 %v4184_v35  ;;  %1079 = vmatmul.bf16.gmra.mxu1 %v4200_v36  ;;  %v4192_v35 = vld [vmem:[%s4902_s11 + $0x70] sm:$0xff] }
  0xd5   : > { %1154 = vmatmul.bf16.gmra.mxu2 %v4215_v37  ;;  %v4208_v36 = vld [vmem:[%s4902_s11 + $0xf0] sm:$0xff] }
  0xd6   : > { %1234 = vmatmul.bf16.gmra.mxu3 %v4231_v38 }
  0xe4   : > { %1004 = vmatmul.bf16.gmra.mxu0 %v4185_v39  ;;  %1084 = vmatmul.bf16.gmra.mxu1 %v4201_v40  ;;  %v4223_v39 = vld [vmem:[%s4902_s11 + $0x168] sm:$0xff] }
  0xe5   : > { %1159 = vmatmul.bf16.gmra.mxu2 %v4216_v41  ;;  %v4239_v40 = vld [vmem:[%s4902_s11 + $0x1e8] sm:$0xff] }
  0xe6   : > { %1239 = vmatmul.bf16.gmra.mxu3 %v4232_v42 }
  0xf1   : > { %v4958_v45 = vpop.f32.mrf.mxu1  ;;  %v4970_v54 = vpop.f32.mrf.mxu0 }
  0xf4   : > { %1009 = vmatmul.bf16.gmra.mxu0 %v4186_v43  ;;  %1089 = vmatmul.bf16.gmra.mxu1 %v4202_v44 }
  0xf5   : > { %1164 = vmatmul.bf16.gmra.mxu2 %v4217_v46 }
  0xf6   : > { %1244 = vmatmul.bf16.gmra.mxu3 %v4233_v47  ;;  %v4193_v47 = vld [vmem:[%s4902_s11 + $0x78] sm:$0xff] }
  0xf8   : > { %v4988_v2 = vpop.f32.mrf.mxu2 }
  0xf9   : > { %v4962_v48 = vpop.f32.mrf.mxu1  ;;  %v4974_v57 = vpop.f32.mrf.mxu0  ;;  %6663 = vst [vmem:[#allocation24_spill] sm:$0xff] %v4988_v2 }
  0xfa   : > { %v4986_v1 = vpop.f32.mrf.mxu3 }
  0xfb   : > { %6662 = vst [vmem:[#allocation23_spill] sm:$0xff] %v4986_v1  ;;  %v4486_v1 = vld [vmem:[%s6636_s4] ss:$0 sm:$0xff] }
 0x100   : > { %v5000_v10 = vpop.f32.mrf.mxu2 }
 0x101   : > { %v4966_v51 = vpop.f32.mrf.mxu1  ;;  %v4984_v0 = vpop.f32.mrf.mxu0  ;;  %6665 = vst [vmem:[#allocation26_spill] sm:$0xff] %v5000_v10 }
 0x102   : > { %v4998_v9 = vpop.f32.mrf.mxu3 }
 0x103   : > { %6664 = vst [vmem:[#allocation25_spill] sm:$0xff] %v4998_v9 }
 0x104   : > { %1014 = vmatmul.bf16.gmra.mxu0 %v4187_v49  ;;  %1094 = vmatmul.bf16.gmra.mxu1 %v4203_v50 }
 0x105   : > { %1169 = vmatmul.bf16.gmra.mxu2 %v4218_v52  ;;  %v4224_v52 = vld [vmem:[%s4902_s11 + $0x170] sm:$0xff] }
 0x106   : > { %1249 = vmatmul.bf16.gmra.mxu3 %v4234_v53  ;;  %v4240_v53 = vld [vmem:[%s4902_s11 + $0x1f0] sm:$0xff] }
 0x108   : > { %v5014_v19 = vpop.f32.mrf.mxu2 }
 0x109   : > { %v4972_v56 = vpop.f32.mrf.mxu1  ;;  %v4996_v8 = vpop.f32.mrf.mxu0  ;;  %6667 = vst [vmem:[#allocation28_spill] sm:$0xff] %v5014_v19 }
 0x10a   : > { %v5006_v13 = vpop.f32.mrf.mxu3 }
 0x10b   : > { %6666 = vst [vmem:[#allocation27_spill] sm:$0xff] %v5006_v13 }
 0x110   : > { %v5022_v23 = vpop.f32.mrf.mxu2 }
 0x111   : > { %v4978_v60 = vpop.f32.mrf.mxu1  ;;  %v5004_v12 = vpop.f32.mrf.mxu0  ;;  %6669 = vst [vmem:[#allocation30_spill] sm:$0xff] %v5022_v23 }
 0x112   : > { %v5018_v21 = vpop.f32.mrf.mxu3 }
 0x113   : > { %6668 = vst [vmem:[#allocation29_spill] sm:$0xff] %v5018_v21 }
 0x114   : > { %1019 = vmatmul.bf16.gmra.mxu0 %v4188_v58  ;;  %1099 = vmatmul.bf16.gmra.mxu1 %v4204_v59 }
 0x115   : > { %1174 = vmatmul.bf16.gmra.mxu2 %v4219_v61 }
 0x116   : > { %1254 = vmatmul.bf16.gmra.mxu3 %v4235_v62 }
 0x118   : > { %v5034_v31 = vpop.f32.mrf.mxu2 }
 0x119   : > { %v4982_v63 = vpop.f32.mrf.mxu1  ;;  %v5016_v20 = vpop.f32.mrf.mxu0  ;;  %6671 = vst [vmem:[#allocation32_spill] sm:$0xff] %v5034_v31 }
 0x11a   : > { %v5032_v30 = vpop.f32.mrf.mxu3 }
 0x11b   : > { %6670 = vst [vmem:[#allocation31_spill] sm:$0xff] %v5032_v30 }
 0x120   : > { %v5044_v37 = vpop.f32.mrf.mxu2 }
 0x121   : > { %v4992_v5 = vpop.f32.mrf.mxu1  ;;  %v5030_v29 = vpop.f32.mrf.mxu0  ;;  %6673 = vst [vmem:[#allocation34_spill] sm:$0xff] %v5044_v37 }
 0x122   : > { %v5040_v34 = vpop.f32.mrf.mxu3 }
 0x123   : > { %6672 = vst [vmem:[#allocation33_spill] sm:$0xff] %v5040_v34 }
 0x124   : > { %1024 = vmatmul.bf16.gmra.mxu0 %v4189_v3  ;;  %1104 = vmatmul.bf16.gmra.mxu1 %v4205_v4  ;;  %v4241_v4 = vld [vmem:[%s4902_s11 + $0x1f8] sm:$0xff] }
 0x125   : > { %1179 = vmatmul.bf16.gmra.mxu2 %v4220_v6 }
 0x126   : > { %1259 = vmatmul.bf16.gmra.mxu3 %v4236_v7 }
 0x128   : > { %v5056_v44 = vpop.f32.mrf.mxu2 }
 0x129   : > { %v5002_v11 = vpop.f32.mrf.mxu1  ;;  %v5038_v33 = vpop.f32.mrf.mxu0  ;;  %6675 = vst [vmem:[#allocation36_spill] sm:$0xff] %v5056_v44 }
 0x12a   : > { %v5052_v42 = vpop.f32.mrf.mxu3 }
 0x12b   : > { %6674 = vst [vmem:[#allocation35_spill] sm:$0xff] %v5052_v42 }
 0x130   : > { %v5068_v58 = vpop.f32.mrf.mxu2 }
 0x131   : > { %v5010_v16 = vpop.f32.mrf.mxu1  ;;  %v5050_v41 = vpop.f32.mrf.mxu0  ;;  %6677 = vst [vmem:[#allocation38_spill] sm:$0xff] %v5068_v58 }
 0x132   : > { %v5061_v49 = vpop.f32.mrf.mxu3 }
 0x133   : > { %6676 = vst [vmem:[#allocation37_spill] sm:$0xff] %v5061_v49 }
 0x134   : > { %1029 = vmatmul.bf16.gmra.mxu0 %v4190_v14  ;;  %1109 = vmatmul.bf16.gmra.mxu1 %v4206_v15 }
 0x135   : > { %1184 = vmatmul.bf16.gmra.mxu2 %v4221_v17 }
 0x136   : > { %1264 = vmatmul.bf16.gmra.mxu3 %v4237_v18 }
 0x139   : > { %v5020_v22 = vpop.f32.mrf.mxu1  ;;  %v5058_v46 = vpop.f32.mrf.mxu0 }
 0x13a   : > { %v5074_v62 = vpop.f32.mrf.mxu3 }
 0x13b   : > { %6678 = vst [vmem:[#allocation39_spill] sm:$0xff] %v5074_v62 }
 0x141   : > { %v5026_v26 = vpop.f32.mrf.mxu1  ;;  %v5072_v61 = vpop.f32.mrf.mxu0 }
 0x142   : > { %v5081_v7 = vpop.f32.mrf.mxu3 }
 0x143   : > { %6679 = vst [vmem:[#allocation40_spill] sm:$0xff] %v5081_v7  ;;  %v5119_v7 = vpop.f32.mrf.mxu2 }
 0x144   : > { %1034 = vmatmul.bf16.gmra.mxu0 %v4191_v24  ;;  %1114 = vmatmul.bf16.gmra.mxu1 %v4207_v25  ;;  %6682 = vst [vmem:[#allocation43_spill] sm:$0xff] %v5119_v7 }
 0x145   : > { %1189 = vmatmul.bf16.gmra.mxu2 %v4222_v27 }
 0x146   : > { %1269 = vmatmul.bf16.gmra.mxu3 %v4238_v28 }
 0x149   : > { %v5036_v32 = vpop.f32.mrf.mxu1  ;;  %v5079_v6 = vpop.f32.mrf.mxu0 }
 0x14b   : > { %v5125_v34 = vpop.f32.mrf.mxu2 }
 0x14c   : > { %6684 = vst [vmem:[#allocation45_spill] sm:$0xff] %v5125_v34 }
 0x151   : > { %v5046_v38 = vpop.f32.mrf.mxu1  ;;  %v5085_v15 = vpop.f32.mrf.mxu0 }
 0x153   : > { %v5133_v13 = vpop.f32.mrf.mxu2 }
 0x154   : > { %1039 = vmatmul.bf16.gmra.mxu0 %v4192_v35  ;;  %1119 = vmatmul.bf16.gmra.mxu1 %v4208_v36  ;;  %6685 = vst [vmem:[#allocation46_spill] sm:$0xff] %v5133_v13  ;;  %v5152_v13 = vld [vmem:[%s6637_s5] ss:$0 sm:$0xff] }
 0x155   : > { %1194 = vmatmul.bf16.gmra.mxu2 %v4223_v39 }
 0x156   : > { %1274 = vmatmul.bf16.gmra.mxu3 %v4239_v40 }
 0x159   : > { %v5054_v43 = vpop.f32.mrf.mxu1  ;;  %v5089_v18 = vpop.f32.mrf.mxu0 }
 0x15b   : > { %v5142_v31 = vpop.f32.mrf.mxu2 }
 0x15c   : > { %6686 = vst [vmem:[#allocation47_spill] sm:$0xff] %v5142_v31 }
 0x161   : > { %v5063_v50 = vpop.f32.mrf.mxu1  ;;  %v5095_v27 = vpop.f32.mrf.mxu0 }
 0x164   : > { %1044 = vmatmul.bf16.gmra.mxu0 %v4193_v47  ;;  %4169 = vmatmul.msk.bf16.vlgmr.msrb.gmra.mxu1 %vm1327_vm0, %v1290_v55  ;;  %vm2421_vm0 = vcmask 1041409  }
 0x165   : > { %1199 = vmatmul.bf16.gmra.mxu2 %v4224_v52 }
 0x166   : > { %1279 = vmatmul.bf16.gmra.mxu3 %v4240_v53 }
 0x169   : > { %v5070_v59 = vpop.f32.mrf.mxu1  ;;  %v5099_v35 = vpop.f32.mrf.mxu0 }
 0x171   : > { %v5076_v3 = vpop.f32.mrf.mxu1  ;;  %v5103_v39 = vpop.f32.mrf.mxu0 }
 0x176   : > { %1284 = vmatmul.bf16.gmra.mxu3 %v4241_v4 }
 0x179   : > { %v5083_v14 = vpop.f32.mrf.mxu1  ;;  %v5107_v47 = vpop.f32.mrf.mxu0 }
 0x181   : > { %v5087_v17 = vpop.f32.mrf.mxu1  ;;  %v5113_v55 = vpop.f32.mrf.mxu0 }
 0x189   : > { %v5091_v24 = vpop.f32.mrf.mxu1  ;;  %v5117_v49 = vpop.f32.mrf.mxu0 }
 0x191   : > { %v5093_v25 = vpop.f32.mrf.mxu1  ;;  %v5123_v30 = vpop.f32.mrf.mxu0 }
 0x199   : > { %v5097_v28 = vpop.f32.mrf.mxu1  ;;  %v5129_v9 = vpop.f32.mrf.mxu0 }
 0x1a1   : > { %v5101_v36 = vpop.f32.mrf.mxu1  ;;  %v5138_v44 = vpop.f32.mrf.mxu0 }
 0x1a9   : > { %v5105_v40 = vpop.f32.mrf.mxu1 }
 0x1b1   : > { %v5109_v52 = vpop.f32.mrf.mxu1 }
 0x1b2   : > { %6680 = vst [vmem:[#allocation41_spill] sm:$0xff] %v5109_v52 }
 0x1b9   : > { %v5111_v53 = vpop.f32.mrf.mxu1 }
 0x1ba   : > { %6681 = vst [vmem:[#allocation42_spill] sm:$0xff] %v5111_v53 }
 0x1c1   : > { %v5115_v4 = vpop.f32.mrf.mxu1 }
 0x1c9   : > { %v5121_v62 = vpop.f32.mrf.mxu1 }
 0x1ca   : > { %6683 = vst [vmem:[#allocation44_spill] sm:$0xff] %v5121_v62  ;;  %v5161_v62 = vpop.f32.mrf.mxu0 }
 0x1d1   : > { %v5127_v42 = vpop.f32.mrf.mxu1 }
 0x1d9   : > { %v5131_v21 = vpop.f32.mrf.mxu1 }
 0x1e1   : > { %v1340_v58 = vpop.f32.mrf.mxu1 }
 0x1e2   : > { %v5140_v7 = vadd.f32 %v4486_v1, %v1340_v58 }
 0x1e4   : > { %v5145_v34 = vperm.slane %v5140_v7, 0 }
 0x1e6   : > { %v1368_v23 = vadd.f32 %v5145_v34, %v4970_v54  ;;  %v1370_v37 = vadd.f32 %v5145_v34, %v4984_v0  ;;  %v1372_v1 = vadd.f32 %v5145_v34, %v5004_v12  ;;  %v1369_v54 = vadd.f32 %v5145_v34, %v4974_v57 }
 0x1e7   : > { %v1371_v0 = vadd.f32 %v5145_v34, %v4996_v8  ;;  %v1373_v12 = vadd.f32 %v5145_v34, %v5016_v20  ;;  %v1375_v20 = vadd.f32 %v5145_v34, %v5038_v33 }
 0x1e8   : > { %v1496_v10 = vmax.f32 %v1368_v23, 0.0  ;;  %v1498_v31 = vmax.f32 %v1370_v37, 0.0  ;;  %v1500_v2 = vmax.f32 %v1372_v1, 0.0  ;;  %v5169_v23 = vpop.f32.mrf.mxu2 }
 0x1e9   : > { %v1342_v58 = vpop.f32.mrf.mxu1  ;;  %v1499_v37 = vmax.f32 %v1371_v0, 0.0  ;;  %v1501_v57 = vmax.f32 %v1373_v12, 0.0  ;;  %v1377_v12 = vadd.f32 %v5145_v34, %v5058_v46  ;;  %v1345_v46 = vrot.slane %v5140_v7, 1 }
 0x1ea   : > { %v1628_v19 = vmul.f32 %v5152_v13, %v1496_v10  ;;  %v1630_v53 = vmul.f32 %v5152_v13, %v1498_v31  ;;  %v1632_v52 = vmul.f32 %v5152_v13, %v1500_v2  ;;  %v1497_v10 = vmax.f32 %v1369_v54, 0.0 }
 0x1eb   : > { %v1374_v31 = vadd.f32 %v5145_v34, %v5030_v29  ;;  %v1631_v2 = vmul.f32 %v5152_v13, %v1499_v37  ;;  %v1633_v8 = vmul.f32 %v5152_v13, %v1501_v57  ;;  %v1503_v54 = vmax.f32 %v1375_v20, 0.0 }
 0x1ec   : > { %1756 = vadd.xlane.f32.xlu0 %v1628_v19  ;;  %1760 = vadd.xlane.f32.xlu1 %v1630_v53  ;;  %v1629_v1 = vmul.f32 %v5152_v13, %v1497_v10  ;;  %v1376_v19 = vadd.f32 %v5145_v34, %v5050_v41  ;;  %v1378_v41 = vadd.f32 %v5145_v34, %v5072_v61  ;;  %v1505_v57 = vmax.f32 %v1377_v12, 0.0 }
 0x1ed   : > { %1764 = vadd.xlane.f32.xlu2 %v1632_v52  ;;  %v5180_v52 = vpop.f32.mrf.mxu0  ;;  %v1502_v53 = vmax.f32 %v1374_v31, 0.0  ;;  %v1635_v33 = vmul.f32 %v5152_v13, %v1503_v54  ;;  %v1379_v37 = vadd.f32 %v5145_v34, %v5079_v6  ;;  %v1380_v61 = vadd.f32 %v5145_v34, %v5085_v15 }
 0x1ee   : > { %v1504_v29 = vmax.f32 %v1376_v19, 0.0  ;;  %v1506_v31 = vmax.f32 %v1378_v41, 0.0  ;;  %v1637_v20 = vmul.f32 %v5152_v13, %v1505_v57  ;;  %v1382_v54 = vadd.f32 %v5145_v34, %v5095_v27 }
 0x1ef   : > { %v1634_v0 = vmul.f32 %v5152_v13, %v1502_v53  ;;  %v1381_v53 = vadd.f32 %v5145_v34, %v5089_v18  ;;  %v1347_v15 = vrot.slane %v5140_v7, 3 }
 0x1f0   : > { %v5182_v58 = vpop.f32.mrf.mxu2  ;;  %v1636_v10 = vmul.f32 %v5152_v13, %v1504_v29  ;;  %v1638_v19 = vmul.f32 %v5152_v13, %v1506_v31  ;;  %v1508_v29 = vmax.f32 %v1380_v61, 0.0 }
 0x1f1   : > { %v1509_v12 = vmax.f32 %v1381_v53, 0.0 }
 0x1f2   : > { %v1640_v41 = vmul.f32 %v5152_v13, %v1508_v29 }
 0x1f3   : > { %v1641_v27 = vmul.f32 %v5152_v13, %v1509_v12 }
 0x1f4   : > { %1758 = vadd.xlane.f32.xlu0 %v1629_v1  ;;  %1762 = vadd.xlane.f32.xlu1 %v1631_v2  ;;  %v1507_v2 = vmax.f32 %v1379_v37, 0.0  ;;  %v1383_v37 = vadd.f32 %v5145_v34, %v5099_v35 }
 0x1f5   : > { %1766 = vadd.xlane.f32.xlu2 %v1633_v8  ;;  %v5193_v1 = vpop.f32.mrf.mxu0 }
 0x1f6   : > { %v1639_v6 = vmul.f32 %v5152_v13, %v1507_v2 }
 0x1f8   : > { %v5195_v8 = vpop.f32.mrf.mxu2 }
 0x1fc   : > { %1768 = vadd.xlane.f32.xlu0 %v1634_v0  ;;  %1770 = vadd.xlane.f32.xlu1 %v1635_v33  ;;  %v5207_v0 = vperm.slane %v1345_v46, 0  ;;  %v1510_v33 = vmax.f32 %v1382_v54, 0.0  ;;  %v1511_v46 = vmax.f32 %v1383_v37, 0.0 }
 0x1fd   : > { %1772 = vadd.xlane.f32.xlu2 %v1636_v10  ;;  %v1035_v10 = vpop.f32.mrf.mxu0 }
 0x1fe   : > { %v1642_v57 = vmul.f32 %v5152_v13, %v1510_v33  ;;  %v1384_v31 = vadd.f32 %v5207_v0, %v5103_v39  ;;  %v1385_v2 = vadd.f32 %v5207_v0, %v5107_v47  ;;  %v1643_v35 = vmul.f32 %v5152_v13, %v1511_v46 }
 0x1ff   : > { %v1388_v54 = vadd.f32 %v5207_v0, %v5123_v30 }
 0x200   : > { %v5213_v18 = vpop.f32.mrf.mxu2  ;;  %v1512_v61 = vmax.f32 %v1384_v31, 0.0  ;;  %v1513_v34 = vmax.f32 %v1385_v2, 0.0  ;;  %v1391_v31 = vadd.f32 %v5207_v0, %v5161_v62 }
 0x202   : > { %v1644_v53 = vmul.f32 %v5152_v13, %v1512_v61  ;;  %v1645_v47 = vmul.f32 %v5152_v13, %v1513_v34 }
 0x204   : > { %1774 = vadd.xlane.f32.xlu0 %v1637_v20  ;;  %1776 = vadd.xlane.f32.xlu1 %v1638_v19  ;;  %v5221_v20 = vperm.slane %v1347_v15, 0  ;;  %v1386_v19 = vadd.f32 %v5207_v0, %v5113_v55 }
 0x205   : > { %1778 = vadd.xlane.f32.xlu2 %v1639_v6  ;;  %v1387_v6 = vadd.f32 %v5207_v0, %v5117_v49  ;;  %v1037_v39 = vpop.f32.mrf.mxu0  ;;  %v1516_v49 = vmax.f32 %v1388_v54, 0.0 }
 0x206   : > { %v5234_v29 = vadd.f32 %v5221_v20, %v5131_v21  ;;  %v1514_v55 = vmax.f32 %v1386_v19, 0.0  ;;  %v5240_v15 = vadd.f32 %v5221_v20, %v5127_v42  ;;  %v1389_v21 = vadd.f32 %v5207_v0, %v5129_v9 }
 0x207   : > { %v1515_v33 = vmax.f32 %v1387_v6, 0.0  ;;  %v1519_v9 = vmax.f32 %v1391_v31, 0.0 }
 0x208   : > { %v5236_v12 = vpop.f32.mrf.mxu2  ;;  %v1646_v30 = vmul.f32 %v5152_v13, %v1514_v55  ;;  %v1517_v46 = vmax.f32 %v1389_v21, 0.0 }
 0x209   : > { %v1647_v37 = vmul.f32 %v5152_v13, %v1515_v33  ;;  %v1651_v6 = vmul.f32 %v5152_v13, %v1519_v9 }
 0x20a   : > { %v1649_v19 = vmul.f32 %v5152_v13, %v1517_v46 }
 0x20c   : > { %1780 = vadd.xlane.f32.xlu0 %v1640_v41  ;;  %1782 = vadd.xlane.f32.xlu1 %v1641_v27  ;;  %v1348_v41 = vrot.slane %v5140_v7, 4  ;;  %v1648_v27 = vmul.f32 %v5152_v13, %v1516_v49 }
 0x20d   : > { %1784 = vadd.xlane.f32.xlu2 %v1642_v57  ;;  %v1390_v57 = vadd.f32 %v5207_v0, %v5138_v44  ;;  %v1040_v42 = vpop.f32.mrf.mxu0  ;;  %v1392_v44 = vadd.f32 %v5207_v0, %v5180_v52 }
 0x20e   : > { %v5252_v2 = vperm.slane %v1348_v41, 0  ;;  %v1346_v41 = vrot.slane %v5140_v7, 2 }
 0x20f   : > { %v1518_v34 = vmax.f32 %v1390_v57, 0.0  ;;  %v1520_v54 = vmax.f32 %v1392_v44, 0.0 }
 0x210   : > { %v1167_v61 = vpop.f32.mrf.mxu2  ;;  %v5272_v57 = vperm.slane %v1346_v41, 0 }
 0x211   : > { %v1650_v62 = vmul.f32 %v5152_v13, %v1518_v34  ;;  %v1652_v52 = vmul.f32 %v5152_v13, %v1520_v54 }
 0x212   : > { %v1400_v44 = vadd.f32 %v5272_v57, %v4958_v45  ;;  %v1401_v54 = vadd.f32 %v5272_v57, %v4962_v48  ;;  %v1403_v45 = vadd.f32 %v5272_v57, %v4972_v56  ;;  %v1404_v48 = vadd.f32 %v5272_v57, %v4978_v60 }
 0x213   : > { %v1406_v56 = vadd.f32 %v5272_v57, %v4992_v5  ;;  %v1411_v5 = vadd.f32 %v5272_v57, %v5036_v32 }
 0x214   : > { %1786 = vadd.xlane.f32.xlu0 %v1643_v35  ;;  %1788 = vadd.xlane.f32.xlu1 %v1644_v53  ;;  %v5255_v35 = vadd.f32 %v5252_v2, %v1167_v61  ;;  %v1393_v53 = vadd.f32 %v5207_v0, %v5193_v1  ;;  %v1396_v1 = vadd.f32 %v5207_v0, %v1040_v42 }
 0x215   : > { %1790 = vadd.xlane.f32.xlu2 %v1645_v47  ;;  %v1394_v47 = vadd.f32 %v5207_v0, %v1035_v10  ;;  %v1042_v55 = vpop.f32.mrf.mxu0  ;;  %v1402_v42 = vadd.f32 %v5272_v57, %v4966_v51  ;;  %v1405_v51 = vadd.f32 %v5272_v57, %v4982_v63  ;;  %v1408_v63 = vadd.f32 %v5272_v57, %v5010_v16 }
 0x216   : > { %v1521_v33 = vmax.f32 %v1393_v53, 0.0  ;;  %v1397_v10 = vadd.f32 %v5207_v0, %v1042_v55  ;;  %v1524_v31 = vmax.f32 %v1396_v1, 0.0  ;;  %v1528_v53 = vmax.f32 %v1400_v44, 0.0 }
 0x217   : > { %v1522_v49 = vmax.f32 %v1394_v47, 0.0  ;;  %v1533_v41 = vmax.f32 %v1405_v51, 0.0  ;;  %v1532_v1 = vmax.f32 %v1404_v48, 0.0 }
 0x218   : > { %v1653_v21 = vmul.f32 %v5152_v13, %v1521_v33  ;;  %v1525_v46 = vmax.f32 %v1397_v10, 0.0  ;;  %v1656_v9 = vmul.f32 %v5152_v13, %v1524_v31  ;;  %v1660_v33 = vmul.f32 %v5152_v13, %v1528_v53  ;;  %v5300_v31 = vpop.f32.mrf.mxu3 }
 0x219   : > { %v1536_v10 = vmax.f32 %v1408_v63, 0.0  ;;  %v1664_v60 = vmul.f32 %v5152_v13, %v1532_v1  ;;  %v1418_v1 = vadd.f32 %v5221_v20, %v5087_v17 }
 0x21c   : > { %1792 = vadd.xlane.f32.xlu0 %v1646_v30  ;;  %1794 = vadd.xlane.f32.xlu1 %v1647_v37  ;;  %v1395_v30 = vadd.f32 %v5207_v0, %v1037_v39  ;;  %v1654_v37 = vmul.f32 %v5152_v13, %v1522_v49  ;;  %v1529_v49 = vmax.f32 %v1401_v54, 0.0 }
 0x21d   : > { %1796 = vadd.xlane.f32.xlu2 %v1648_v27  ;;  %v1045_v61 = vpop.f32.mrf.mxu0 }
 0x21e   : > { %v1523_v27 = vmax.f32 %v1395_v30, 0.0  ;;  %v1398_v39 = vadd.f32 %v5207_v0, %v1045_v61  ;;  %v1661_v30 = vmul.f32 %v5152_v13, %v1529_v49  ;;  %v1668_v61 = vmul.f32 %v5152_v13, %v1536_v10 }
 0x220   : > { %v1655_v34 = vmul.f32 %v5152_v13, %v1523_v27  ;;  %v1534_v27 = vmax.f32 %v1406_v56, 0.0  ;;  %v5314_v44 = vpop.f32.mrf.mxu3  ;;  %v1420_v56 = vadd.f32 %v5221_v20, %v5093_v25  ;;  %v1419_v25 = vadd.f32 %v5221_v20, %v5091_v24 }
 0x222   : > { %v1666_v16 = vmul.f32 %v5152_v13, %v1534_v27 }
 0x224   : > { %1798 = vadd.xlane.f32.xlu0 %v1649_v19  ;;  %1800 = vadd.xlane.f32.xlu1 %v1650_v62  ;;  %v1657_v19 = vmul.f32 %v5152_v13, %v1525_v46  ;;  %v1526_v62 = vmax.f32 %v1398_v39, 0.0  ;;  %v1407_v46 = vadd.f32 %v5272_v57, %v5002_v11  ;;  %v1410_v11 = vadd.f32 %v5272_v57, %v5026_v26 }
 0x225   : > { %1802 = vadd.xlane.f32.xlu2 %v1651_v6  ;;  %v1530_v6 = vmax.f32 %v1402_v42, 0.0 }
 0x226   : > { %v1658_v47 = vmul.f32 %v5152_v13, %v1526_v62  ;;  %v1535_v39 = vmax.f32 %v1407_v46, 0.0  ;;  %v1538_v53 = vmax.f32 %v1410_v11, 0.0  ;;  %v1548_v46 = vmax.f32 %v1420_v56, 0.0  ;;  %v6694_v56 = vld [vmem:[#allocation44_spill] sm:$0xff] }
 0x227   : > { %v1662_v55 = vmul.f32 %v5152_v13, %v1530_v6  ;;  %v1412_v6 = vadd.f32 %v5272_v57, %v5046_v38  ;;  %v1417_v38 = vadd.f32 %v5221_v20, %v5083_v14 }
 0x228   : > { %v1667_v42 = vmul.f32 %v5152_v13, %v1535_v39  ;;  %v5333_v49 = vpop.f32.mrf.mxu3 }
 0x229   : > { %v1540_v26 = vmax.f32 %v1412_v6, 0.0 }
 0x22c   : > { %1804 = vadd.xlane.f32.xlu0 %v1652_v52  ;;  %1806 = vadd.xlane.f32.xlu1 %v1653_v21  ;;  %v1531_v52 = vmax.f32 %v1403_v45, 0.0  ;;  %v1665_v21 = vmul.f32 %v5152_v13, %v1533_v41  ;;  %v1415_v45 = vadd.f32 %v5272_v57, %v5070_v59  ;;  %v1416_v59 = vadd.f32 %v5221_v20, %v5076_v3 }
 0x22d   : > { %1808 = vadd.xlane.f32.xlu2 %v1654_v37  ;;  %v1546_v3 = vmax.f32 %v1418_v1, 0.0  ;;  %v1427_v1 = vadd.f32 %v5221_v20, %v6694_v56  ;;  %v6703_v56 = vld [vmem:[#allocation30_spill] sm:$0xff] }
 0x22e   : > { %v1663_v37 = vmul.f32 %v5152_v13, %v1531_v52  ;;  %v1544_v10 = vmax.f32 %v1416_v59, 0.0 }
 0x22f   : > { %v1678_v39 = vmul.f32 %v5152_v13, %v1546_v3 }
 0x230   : > { %v5352_v27 = vpop.f32.mrf.mxu3 }
 0x234   : > { %1810 = vadd.xlane.f32.xlu0 %v1655_v34  ;;  %1812 = vadd.xlane.f32.xlu1 %v1656_v9  ;;  %v1409_v34 = vadd.f32 %v5272_v57, %v5020_v22  ;;  %v1539_v9 = vmax.f32 %v1411_v5, 0.0  ;;  %v1414_v22 = vadd.f32 %v5272_v57, %v5063_v50  ;;  %v1672_v50 = vmul.f32 %v5152_v13, %v1540_v26 }
 0x235   : > { %1814 = vadd.xlane.f32.xlu2 %v1657_v19  ;;  %v1676_v5 = vmul.f32 %v5152_v13, %v1544_v10  ;;  %v1426_v26 = vadd.f32 %v5221_v20, %v5115_v4  ;;  %v6693_v4 = vld [vmem:[#allocation42_spill] sm:$0xff] }
 0x236   : > { %v1537_v19 = vmax.f32 %v1409_v34, 0.0  ;;  %v1671_v62 = vmul.f32 %v5152_v13, %v1539_v9  ;;  %v1542_v54 = vmax.f32 %v1414_v22, 0.0  ;;  %v1680_v34 = vmul.f32 %v5152_v13, %v1548_v46 }
 0x237   : > { %v1423_v9 = vadd.f32 %v5221_v20, %v5105_v40  ;;  %v1422_v40 = vadd.f32 %v5221_v20, %v5101_v36 }
 0x238   : > { %v1669_v32 = vmul.f32 %v5152_v13, %v1537_v19  ;;  %v1674_v51 = vmul.f32 %v5152_v13, %v1542_v54  ;;  %v1421_v19 = vadd.f32 %v5221_v20, %v5097_v28  ;;  %v5377_v6 = vpop.f32.mrf.mxu3 }
 0x23a   : > { %v1549_v24 = vmax.f32 %v1421_v19, 0.0 }
 0x23c   : > { %1816 = vadd.xlane.f32.xlu0 %v1658_v47  ;;  %1824 = vadd.xlane.f32.xlu1 %v1662_v55  ;;  %v5322_v47 = vpop.f32.mrf.mxu2  ;;  %v1670_v55 = vmul.f32 %v5152_v13, %v1538_v53  ;;  %v1681_v54 = vmul.f32 %v5152_v13, %v1549_v24 }
 0x23d   : > { %1820 = vadd.xlane.f32.xlu2 %v1660_v33  ;;  %v1413_v33 = vadd.f32 %v5272_v57, %v5054_v43  ;;  %v1543_v43 = vmax.f32 %v1415_v45, 0.0  ;;  %v1554_v45 = vmax.f32 %v1426_v26, 0.0 }
 0x23f   : > { %v1541_v41 = vmax.f32 %v1413_v33, 0.0  ;;  %v1675_v63 = vmul.f32 %v5152_v13, %v1543_v43 }
 0x240   : > { %v5399_v59 = vpop.f32.mrf.mxu3 }
 0x241   : > { %v1673_v14 = vmul.f32 %v5152_v13, %v1541_v41 }
 0x244   : > { %1822 = vadd.xlane.f32.xlu0 %v1661_v30  ;;  %1830 = vadd.xlane.f32.xlu1 %v1665_v21  ;;  %v1545_v30 = vmax.f32 %v1417_v38, 0.0 }
 0x245   : > { %1826 = vadd.xlane.f32.xlu2 %v1663_v37  ;;  %v5341_v37 = vpop.f32.mrf.mxu2 }
 0x246   : > { %v1677_v57 = vmul.f32 %v5152_v13, %v1545_v30 }
 0x24c   : > { %1828 = vadd.xlane.f32.xlu0 %v1664_v60  ;;  %1836 = vadd.xlane.f32.xlu1 %v1668_v61 }
 0x24d   : > { %1832 = vadd.xlane.f32.xlu2 %v1666_v16  ;;  %v5363_v17 = vpop.f32.mrf.mxu2 }
 0x254   : > { %1834 = vadd.xlane.f32.xlu0 %v1667_v42  ;;  %1842 = vadd.xlane.f32.xlu1 %v1671_v62  ;;  %v1547_v42 = vmax.f32 %v1419_v25, 0.0  ;;  %v1551_v62 = vmax.f32 %v1423_v9, 0.0  ;;  %v1555_v25 = vmax.f32 %v1427_v1, 0.0  ;;  %v1433_v1 = vadd.f32 %v5252_v2, %v6703_v56 }
 0x255   : > { %1838 = vadd.xlane.f32.xlu2 %v1669_v32 }
 0x256   : > { %v1679_v53 = vmul.f32 %v5152_v13, %v1547_v42  ;;  %v1683_v28 = vmul.f32 %v5152_v13, %v1551_v62  ;;  %v1687_v42 = vmul.f32 %v5152_v13, %v1555_v25  ;;  %v6698_v62 = vld [vmem:[#allocation28_spill] sm:$0xff] }
 0x257   : > { %v1432_v24 = vadd.f32 %v5252_v2, %v6698_v62 }
 0x259   : > { %v1560_v26 = vmax.f32 %v1432_v24, 0.0  ;;  %v6705_v24 = vld [vmem:[#allocation32_spill] sm:$0xff] }
 0x25c   : > { %1840 = vadd.xlane.f32.xlu0 %v1670_v55  ;;  %1848 = vadd.xlane.f32.xlu1 %v1674_v51  ;;  %v6689_v55 = vld [vmem:[#allocation41_spill] sm:$0xff]  ;;  %v5388_v51 = vpop.f32.mrf.mxu2 }
 0x25d   : > { %1844 = vadd.xlane.f32.xlu2 %v1672_v50  ;;  %v1424_v33 = vadd.f32 %v5221_v20, %v6689_v55  ;;  %v1550_v50 = vmax.f32 %v1422_v40, 0.0 }
 0x25f   : > { %v5335_v52 = vpop.xlane.xlu0 %1756  ;;  %v5337_v48 = vpop.xlane.xlu1 %1760  ;;  %v1552_v36 = vmax.f32 %v1424_v33, 0.0  ;;  %v1682_v43 = vmul.f32 %v5152_v13, %v1550_v50 }
 0x260   : > { %v5339_v21 = vpop.xlane.xlu2 %1764 }
 0x264   : > { %1846 = vadd.xlane.f32.xlu0 %v1673_v14  ;;  %1854 = vadd.xlane.f32.xlu1 %v1677_v57  ;;  %v1425_v14 = vadd.f32 %v5221_v20, %v6693_v4  ;;  %v1686_v57 = vmul.f32 %v5152_v13, %v1554_v45  ;;  %v5405_v46 = vpop.f32.mrf.mxu2 }
 0x265   : > { %1850 = vadd.xlane.f32.xlu2 %v1675_v63  ;;  %v1684_v63 = vmul.f32 %v5152_v13, %v1552_v36 }
 0x266   : > { %v1553_v10 = vmax.f32 %v1425_v14, 0.0  ;;  %v1692_v14 = vmul.f32 %v5152_v13, %v1560_v26 }
 0x267   : > { %v5354_v60 = vpop.xlane.xlu0 %1758  ;;  %v5356_v61 = vpop.xlane.xlu1 %1762 }
 0x268   : > { %v5358_v16 = vpop.xlane.xlu2 %1766  ;;  %v1685_v9 = vmul.f32 %v5152_v13, %v1553_v10 }
 0x26c   : > { %1852 = vadd.xlane.f32.xlu0 %v1676_v5  ;;  %1860 = vadd.xlane.f32.xlu1 %v1680_v34  ;;  %v1557_v5 = vmax.f32 %v5234_v29, 0.0  ;;  %v1556_v29 = vmax.f32 %v5240_v15, 0.0  ;;  %v5430_v45 = vpop.f32.mrf.mxu2  ;;  %v6702_v15 = vld [vmem:[#allocation34_spill] sm:$0xff] }
 0x26d   : > { %1856 = vadd.xlane.f32.xlu2 %v1678_v39 }
 0x26e   : > { %v1689_v19 = vmul.f32 %v5152_v13, %v1557_v5  ;;  %v1688_v36 = vmul.f32 %v5152_v13, %v1556_v29 }
 0x26f   : > { %v5371_v11 = vpop.xlane.xlu0 %1768  ;;  %v5373_v32 = vpop.xlane.xlu1 %1770 }
 0x270   : > { %6687 = vst [vmem:[#allocation48_spill] sm:$0xff] %v5373_v32  ;;  %v5375_v22 = vpop.xlane.xlu2 %1772 }
 0x271   : > { %6688 = vst [vmem:[#allocation49_spill] sm:$0xff] %v5375_v22 }
 0x274   : > { %1858 = vadd.xlane.f32.xlu0 %v1679_v53  ;;  %1866 = vadd.xlane.f32.xlu1 %v1683_v28  ;;  %v6699_v53 = vld [vmem:[#allocation24_spill] sm:$0xff]  ;;  %v5421_v28 = vpop.f32.mrf.mxu3 }
 0x275   : > { %1862 = vadd.xlane.f32.xlu2 %v1681_v54  ;;  %v1430_v40 = vadd.f32 %v5221_v20, %v6699_v53  ;;  %v1434_v53 = vadd.f32 %v5252_v2, %v6705_v24 }
 0x277   : > { %v5390_v38 = vpop.xlane.xlu0 %1774  ;;  %v5392_v41 = vpop.xlane.xlu1 %1776  ;;  %v1558_v55 = vmax.f32 %v1430_v40, 0.0 }
 0x278   : > { %6690 = vst [vmem:[#allocation41_spill] sm:$0xff] %v5390_v38  ;;  %v5394_v30 = vpop.xlane.xlu2 %1778  ;;  %v5452_v40 = vpop.f32.mrf.mxu2  ;;  %v6742_v38 = vld [vmem:[#allocation40_spill] sm:$0xff] }
 0x279   : > { %6691 = vst [vmem:[#allocation50_spill] sm:$0xff] %v5392_v41  ;;  %v6739_v41 = vld [vmem:[#allocation33_spill] sm:$0xff] }
 0x27a   : > { %6692 = vst [vmem:[#allocation51_spill] sm:$0xff] %v5394_v30 }
 0x27c   : > { %1864 = vadd.xlane.f32.xlu0 %v1682_v43  ;;  %1872 = vadd.xlane.f32.xlu1 %v1686_v57  ;;  %v6701_v43 = vld [vmem:[#allocation26_spill] sm:$0xff]  ;;  %v1690_v57 = vmul.f32 %v5152_v13, %v1558_v55  ;;  %v5441_v5 = vpop.f32.mrf.mxu3  ;;  %v6706_v55 = vld [vmem:[#allocation43_spill] sm:$0xff] }
 0x27d   : > { %1868 = vadd.xlane.f32.xlu2 %v1684_v63  ;;  %v1431_v4 = vadd.f32 %v5221_v20, %v6701_v43  ;;  %v1435_v63 = vadd.f32 %v5252_v2, %v6702_v15  ;;  %v1561_v20 = vmax.f32 %v1433_v1, 0.0  ;;  %v6707_v43 = vld [vmem:[#allocation36_spill] sm:$0xff] }
 0x27f   : > { %v5407_v3 = vpop.xlane.xlu0 %1780  ;;  %v5410_v34 = vpop.xlane.xlu1 %1782  ;;  %v1559_v10 = vmax.f32 %v1431_v4, 0.0  ;;  %v1693_v26 = vmul.f32 %v5152_v13, %v1561_v20  ;;  %v1436_v4 = vadd.f32 %v5252_v2, %v6707_v43  ;;  %v6711_v20 = vld [vmem:[#allocation38_spill] sm:$0xff] }
 0x280   : > { %6695 = vst [vmem:[#allocation42_spill] sm:$0xff] %v5407_v3  ;;  %v5412_v39 = vpop.xlane.xlu2 %1784  ;;  %v1437_v24 = vadd.f32 %v5252_v2, %v6711_v20  ;;  %v5477_v43 = vpop.f32.mrf.mxu2 }
 0x281   : > { %6696 = vst [vmem:[#allocation44_spill] sm:$0xff] %v5410_v34  ;;  %v1691_v62 = vmul.f32 %v5152_v13, %v1559_v10 }
 0x282   : > { %6697 = vst [vmem:[#allocation52_spill] sm:$0xff] %v5412_v39 }
 0x284   : > { %1870 = vadd.xlane.f32.xlu0 %v1685_v9  ;;  %1878 = vadd.xlane.f32.xlu1 %v1689_v19  ;;  %v1563_v9 = vmax.f32 %v1435_v63, 0.0  ;;  %v1564_v63 = vmax.f32 %v1436_v4, 0.0  ;;  %v5466_v10 = vpop.f32.mrf.mxu3  ;;  %v1565_v4 = vmax.f32 %v1437_v24, 0.0  ;;  %v1444_v24 = vadd.f32 %v5252_v2, %v5195_v8 }
 0x285   : > { %1874 = vadd.xlane.f32.xlu2 %v1687_v42  ;;  %v1443_v8 = vadd.f32 %v5252_v2, %v5182_v58  ;;  %v1575_v58 = vmax.f32 %v5255_v35, 0.0 }
 0x286   : > { %v1695_v29 = vmul.f32 %v5152_v13, %v1563_v9 }
 0x287   : > { %v5424_v54 = vpop.xlane.xlu0 %1786  ;;  %v5426_v33 = vpop.xlane.xlu1 %1788 }
 0x288   : > { %6700 = vst [vmem:[#allocation28_spill] sm:$0xff] %v5424_v54  ;;  %v5428_v50 = vpop.xlane.xlu2 %1790 }
 0x28c   : > { %1876 = vadd.xlane.f32.xlu0 %v1688_v36  ;;  %1884 = vadd.xlane.f32.xlu1 %v1692_v14  ;;  %v1438_v36 = vadd.f32 %v5252_v2, %v6706_v55  ;;  %v1562_v14 = vmax.f32 %v1434_v53, 0.0  ;;  %v6712_v53 = vld [vmem:[#allocation47_spill] sm:$0xff]  ;;  %v6713_v55 = vld [vmem:[#allocation45_spill] sm:$0xff] }
 0x28d   : > { %1880 = vadd.xlane.f32.xlu2 %v1690_v57 }
 0x28e   : > { %v1566_v15 = vmax.f32 %v1438_v36, 0.0  ;;  %v1694_v9 = vmul.f32 %v5152_v13, %v1562_v14  ;;  %v1439_v36 = vadd.f32 %v5252_v2, %v6713_v55  ;;  %v5488_v55 = vpop.f32.mrf.mxu3 }
 0x28f   : > { %v5443_v25 = vpop.xlane.xlu0 %1792  ;;  %v5445_v19 = vpop.xlane.xlu1 %1794 }
 0x290   : > { %v5447_v42 = vpop.xlane.xlu2 %1796  ;;  %v1567_v20 = vmax.f32 %v1439_v36, 0.0  ;;  %v1190_v36 = vpop.f32.mrf.mxu2 }
 0x291   : > { %6704 = vst [vmem:[#allocation24_spill] sm:$0xff] %v5447_v42 }
 0x294   : > { %1882 = vadd.xlane.f32.xlu0 %v1691_v62  ;;  %1890 = vadd.xlane.f32.xlu1 %v1695_v29  ;;  %v1698_v62 = vmul.f32 %v5152_v13, %v1566_v15  ;;  %v1696_v29 = vmul.f32 %v5152_v13, %v1564_v63  ;;  %v1697_v63 = vmul.f32 %v5152_v13, %v1565_v4 }
 0x295   : > { %1886 = vadd.xlane.f32.xlu2 %v1693_v26  ;;  %v1441_v26 = vadd.f32 %v5252_v2, %v6712_v53  ;;  %v6717_v53 = vld [vmem:[#allocation46_spill] sm:$0xff] }
 0x296   : > { %v1440_v34 = vadd.f32 %v5252_v2, %v6717_v53  ;;  %v1572_v53 = vmax.f32 %v1444_v24, 0.0  ;;  %v1571_v24 = vmax.f32 %v1443_v8, 0.0 }
 0x297   : > { %v5460_v57 = vpop.xlane.xlu0 %1798  ;;  %v5462_v56 = vpop.xlane.xlu1 %1800  ;;  %v1569_v54 = vmax.f32 %v1441_v26, 0.0 }
 0x298   : > { %6708 = vst [vmem:[#allocation26_spill] sm:$0xff] %v5460_v57  ;;  %v5464_v1 = vpop.xlane.xlu2 %1802  ;;  %v1568_v26 = vmax.f32 %v1440_v34, 0.0 }
 0x299   : > { %6709 = vst [vmem:[#allocation34_spill] sm:$0xff] %v5462_v56  ;;  %v6741_v56 = vld [vmem:[#allocation39_spill] sm:$0xff] }
 0x29a   : > { %6710 = vst [vmem:[#allocation30_spill] sm:$0xff] %v5464_v1 }
 0x29c   : > { %1888 = vadd.xlane.f32.xlu0 %v1694_v9  ;;  %1896 = vadd.xlane.f32.xlu1 %v1698_v62  ;;  %v1701_v9 = vmul.f32 %v5152_v13, %v1569_v54  ;;  %v1699_v62 = vmul.f32 %v5152_v13, %v1567_v20  ;;  %v1700_v20 = vmul.f32 %v5152_v13, %v1568_v26 }
 0x29d   : > { %1892 = vadd.xlane.f32.xlu2 %v1696_v29  ;;  %v1442_v29 = vadd.f32 %v5252_v2, %v5169_v23  ;;  %v1349_v23 = vrot.slane %v5140_v7, 5 }
 0x29f   : > { %v5479_v14 = vpop.xlane.xlu0 %1804  ;;  %v5481_v39 = vpop.xlane.xlu1 %1806 }
 0x2a0   : > { %6714 = vst [vmem:[#allocation32_spill] sm:$0xff] %v5479_v14  ;;  %v5483_v15 = vpop.xlane.xlu2 %1808 }
 0x2a1   : > { %6715 = vst [vmem:[#allocation43_spill] sm:$0xff] %v5481_v39 }
 0x2a2   : > { %6716 = vst [vmem:[#allocation36_spill] sm:$0xff] %v5483_v15  ;;  %v1570_v15 = vmax.f32 %v1442_v29, 0.0  ;;  %v5512_v29 = vperm.slane %v1349_v23, 0 }
 0x2a4   : > { %1894 = vadd.xlane.f32.xlu0 %v1697_v63  ;;  %1902 = vadd.xlane.f32.xlu1 %v1701_v9  ;;  %v1704_v63 = vmul.f32 %v5152_v13, %v1572_v53  ;;  %v1702_v34 = vmul.f32 %v5152_v13, %v1570_v15  ;;  %v1445_v9 = vadd.f32 %v5252_v2, %v5213_v18  ;;  %v1192_v15 = vpop.f32.mrf.mxu2 }
 0x2a5   : > { %1898 = vadd.xlane.f32.xlu2 %v1699_v62  ;;  %v5510_v62 = vpop.f32.mrf.mxu3  ;;  %v1703_v18 = vmul.f32 %v5152_v13, %v1571_v24  ;;  %v1450_v23 = vadd.f32 %v5512_v29, %v5363_v17  ;;  %v1448_v35 = vadd.f32 %v5512_v29, %v5322_v47  ;;  %v1449_v17 = vadd.f32 %v5512_v29, %v5341_v37 }
 0x2a7   : > { %v5496_v4 = vpop.xlane.xlu0 %1810  ;;  %v5498_v3 = vpop.xlane.xlu1 %1812 }
 0x2a8   : > { %6718 = vst [vmem:[#allocation38_spill] sm:$0xff] %v5496_v4  ;;  %v5500_v54 = vpop.xlane.xlu2 %1814 }
 0x2a9   : > { %6719 = vst [vmem:[#allocation47_spill] sm:$0xff] %v5498_v3 }
 0x2aa   : > { %6720 = vst [vmem:[#allocation45_spill] sm:$0xff] %v5500_v54  ;;  %v1573_v54 = vmax.f32 %v1445_v9, 0.0 }
 0x2ac   : > { %1900 = vadd.xlane.f32.xlu0 %v1700_v20  ;;  %1908 = vadd.xlane.f32.xlu1 %v1704_v63  ;;  %v1446_v20 = vadd.f32 %v5252_v2, %v5236_v12  ;;  %v1707_v63 = vmul.f32 %v5152_v13, %v1575_v58  ;;  %v1705_v8 = vmul.f32 %v5152_v13, %v1573_v54  ;;  %v1576_v12 = vmax.f32 %v1448_v35, 0.0  ;;  %v1195_v47 = vpop.f32.mrf.mxu2 }
 0x2ad   : > { %1904 = vadd.xlane.f32.xlu2 %v1702_v34  ;;  %v5530_v9 = vpop.f32.mrf.mxu3 }
 0x2ae   : > { %v1574_v34 = vmax.f32 %v1446_v20, 0.0  ;;  %v1708_v20 = vmul.f32 %v5152_v13, %v1576_v12 }
 0x2af   : > { %v5514_v26 = vpop.xlane.xlu0 %1816  ;;  %v5517_v3 = vpop.xlane.xlu1 %1824 }
 0x2b0   : > { %6721 = vst [vmem:[#allocation46_spill] sm:$0xff] %v5514_v26  ;;  %v5519_v53 = vpop.xlane.xlu2 %1820  ;;  %v1578_v26 = vmax.f32 %v1450_v23, 0.0  ;;  %v1706_v54 = vmul.f32 %v5152_v13, %v1574_v34  ;;  %v1577_v23 = vmax.f32 %v1449_v17, 0.0  ;;  %v1456_v17 = vadd.f32 %v5512_v29, %v1190_v36 }
 0x2b1   : > { %v1455_v36 = vadd.f32 %v5512_v29, %v5477_v43 }
 0x2b2   : > { %v1709_v12 = vmul.f32 %v5152_v13, %v1577_v23  ;;  %v1584_v23 = vmax.f32 %v1456_v17, 0.0 }
 0x2b4   : > { %1906 = vadd.xlane.f32.xlu0 %v1703_v18  ;;  %1914 = vadd.xlane.f32.xlu1 %v1707_v63  ;;  %v1710_v18 = vmul.f32 %v5152_v13, %v1578_v26  ;;  %v1453_v63 = vadd.f32 %v5512_v29, %v5430_v45  ;;  %v1452_v45 = vadd.f32 %v5512_v29, %v5405_v46 }
 0x2b5   : > { %1910 = vadd.xlane.f32.xlu2 %v1705_v8  ;;  %v1451_v8 = vadd.f32 %v5512_v29, %v5388_v51  ;;  %v5553_v26 = vpop.f32.mrf.mxu3 }
 0x2b6   : > { %v1581_v34 = vmax.f32 %v1453_v63, 0.0  ;;  %v1580_v63 = vmax.f32 %v1452_v45, 0.0 }
 0x2b7   : > { %v5532_v24 = vpop.xlane.xlu0 %1822  ;;  %v5534_v2 = vpop.xlane.xlu1 %1830  ;;  %v1579_v4 = vmax.f32 %v1451_v8, 0.0 }
 0x2b8   : > { %6722 = vst [vmem:[#allocation53_spill] sm:$0xff] %v5534_v2  ;;  %v5536_v58 = vpop.xlane.xlu2 %1826  ;;  %v1713_v51 = vmul.f32 %v5152_v13, %v1581_v34 }
 0x2b9   : > { %6723 = vst [vmem:[#allocation54_spill] sm:$0xff] %v5536_v58 }
 0x2bc   : > { %1912 = vadd.xlane.f32.xlu0 %v1706_v54  ;;  %1920 = vadd.xlane.f32.xlu1 %v1710_v18  ;;  %v1711_v54 = vmul.f32 %v5152_v13, %v1579_v4  ;;  %v1454_v18 = vadd.f32 %v5512_v29, %v5452_v40  ;;  %v1712_v4 = vmul.f32 %v5152_v13, %v1580_v63 }
 0x2bd   : > { %1916 = vadd.xlane.f32.xlu2 %v1708_v20  ;;  %v1197_v20 = vpop.f32.mrf.mxu2  ;;  %v5572_v34 = vpop.f32.mrf.mxu3  ;;  %v1716_v40 = vmul.f32 %v5152_v13, %v1584_v23  ;;  %v1350_v23 = vrot.slane %v5140_v7, 6 }
 0x2be   : > { %v1459_v45 = vadd.f32 %v5512_v29, %v1197_v20  ;;  %v1458_v20 = vadd.f32 %v5512_v29, %v1195_v47 }
 0x2bf   : > { %v5547_v35 = vpop.xlane.xlu0 %1828  ;;  %v5549_v37 = vpop.xlane.xlu1 %1836 }
 0x2c0   : > { %6724 = vst [vmem:[#allocation55_spill] sm:$0xff] %v5549_v37  ;;  %v5551_v39 = vpop.xlane.xlu2 %1832  ;;  %v1582_v37 = vmax.f32 %v1454_v18, 0.0  ;;  %v1587_v63 = vmax.f32 %v1459_v45, 0.0 }
 0x2c1   : > { %6725 = vst [vmem:[#allocation56_spill] sm:$0xff] %v5551_v39  ;;  %v6738_v39 = vld [vmem:[#allocation35_spill] sm:$0xff] }
 0x2c4   : > { %1918 = vadd.xlane.f32.xlu0 %v1709_v12  ;;  %1926 = vadd.xlane.f32.xlu1 %v1713_v51  ;;  %v1714_v12 = vmul.f32 %v5152_v13, %v1582_v37  ;;  %v1457_v51 = vadd.f32 %v5512_v29, %v1192_v15 }
 0x2c5   : > { %1922 = vadd.xlane.f32.xlu2 %v1711_v54  ;;  %v1583_v54 = vmax.f32 %v1455_v36, 0.0  ;;  %v1200_v17 = vpop.f32.mrf.mxu2  ;;  %v5592_v45 = vpop.f32.mrf.mxu3 }
 0x2c6   : > { %v1460_v15 = vadd.f32 %v5512_v29, %v1200_v17 }
 0x2c7   : > { %v5563_v8 = vpop.xlane.xlu0 %1834  ;;  %v5565_v1 = vpop.xlane.xlu1 %1842  ;;  %v1715_v37 = vmul.f32 %v5152_v13, %v1583_v54 }
 0x2c8   : > { %6726 = vst [vmem:[#allocation57_spill] sm:$0xff] %v5563_v8  ;;  %v5567_v46 = vpop.xlane.xlu2 %1838  ;;  %v1588_v54 = vmax.f32 %v1460_v15, 0.0 }
 0x2c9   : > { %6727 = vst [vmem:[#allocation58_spill] sm:$0xff] %v5565_v1  ;;  %v1585_v1 = vmax.f32 %v1457_v51, 0.0  ;;  %v5594_v51 = vperm.slane %v1350_v23, 0 }
 0x2ca   : > { %6728 = vst [vmem:[#allocation59_spill] sm:$0xff] %v5567_v46 }
 0x2cb   : > { %v1717_v36 = vmul.f32 %v5152_v13, %v1585_v1 }
 0x2cc   : > { %1924 = vadd.xlane.f32.xlu0 %v1712_v4  ;;  %1932 = vadd.xlane.f32.xlu1 %v1716_v40  ;;  %v1719_v4 = vmul.f32 %v5152_v13, %v1587_v63  ;;  %v6732_v40 = vld [vmem:[#allocation23_spill] sm:$0xff] }
 0x2cd   : > { %1928 = vadd.xlane.f32.xlu2 %v1714_v12  ;;  %v1462_v12 = vadd.f32 %v5512_v29, %v6732_v40  ;;  %v6735_v63 = vld [vmem:[#allocation27_spill] sm:$0xff] }
 0x2ce   : > { %v1464_v40 = vadd.f32 %v5594_v51, %v6735_v63 }
 0x2cf   : > { %v5578_v18 = vpop.xlane.xlu0 %1840  ;;  %v5580_v43 = vpop.xlane.xlu1 %1848  ;;  %v1590_v47 = vmax.f32 %v1462_v12, 0.0 }
 0x2d0   : > { %6729 = vst [vmem:[#allocation60_spill] sm:$0xff] %v5578_v18  ;;  %v5582_v46 = vpop.xlane.xlu2 %1844  ;;  %v1592_v12 = vmax.f32 %v1464_v40, 0.0 }
 0x2d1   : > { %6730 = vst [vmem:[#allocation61_spill] sm:$0xff] %v5580_v43  ;;  %v1586_v43 = vmax.f32 %v1458_v20, 0.0  ;;  %v6737_v20 = vld [vmem:[#allocation25_spill] sm:$0xff] }
 0x2d2   : > { %6731 = vst [vmem:[#allocation62_spill] sm:$0xff] %v5582_v46  ;;  %v1463_v15 = vadd.f32 %v5512_v29, %v6737_v20  ;;  %v1467_v20 = vadd.f32 %v5594_v51, %v6739_v41 }
 0x2d3   : > { %v1718_v1 = vmul.f32 %v5152_v13, %v1586_v43  ;;  %v6646_v43 = vlaneseq }
 0x2d4   : > { %1930 = vadd.xlane.f32.xlu0 %v1715_v37  ;;  %1938 = vadd.xlane.f32.xlu1 %v1719_v4  ;;  %v1722_v37 = vmul.f32 %v5152_v13, %v1590_v47  ;;  %v1720_v4 = vmul.f32 %v5152_v13, %v1588_v54  ;;  %v1591_v63 = vmax.f32 %v1463_v15, 0.0  ;;  %v1724_v54 = vmul.f32 %v5152_v13, %v1592_v12 }
 0x2d5   : > { %1934 = vadd.xlane.f32.xlu2 %v1717_v36  ;;  %v6736_v36 = vld [vmem:[#allocation29_spill] sm:$0xff]  ;;  %v1595_v12 = vmax.f32 %v1467_v20, 0.0 }
 0x2d6   : > { %v1465_v23 = vadd.f32 %v5594_v51, %v6736_v36  ;;  %v1468_v36 = vadd.f32 %v5594_v51, %v6738_v39 }
 0x2d7   : > { %v5596_v46 = vpop.xlane.xlu0 %1846  ;;  %v1855_v17 = vpop.xlane.xlu1 %1854 }
 0x2d8   : > { %6733 = vst [vmem:[#allocation23_spill] sm:$0xff] %v5596_v46  ;;  %v5598_v18 = vpop.xlane.xlu2 %1850  ;;  %v1593_v30 = vmax.f32 %v1465_v23, 0.0  ;;  %v1596_v8 = vmax.f32 %v1468_v36, 0.0  ;;  %v5642_v36 = vld [vmem:[%s6637_s5] ss:$0 sm:$0xff] }
 0x2d9   : > { %6734 = vst [vmem:[#allocation63_spill] sm:$0xff] %v5598_v18  ;;  %v5609_v18 = vpop.f32.mrf.mxu3 }
 0x2da   : > { %v1725_v40 = vmul.f32 %v5152_v13, %v1593_v30  ;;  %v1728_v22 = vmul.f32 %v5642_v36, %v1596_v8 }
 0x2dc   : > { %1936 = vadd.xlane.f32.xlu0 %v1718_v1  ;;  %1944 = vadd.xlane.f32.xlu1 %v1722_v37  ;;  %v5617_v1 = vand.u32 127, %v6646_v43  ;;  %v1723_v37 = vmul.f32 %v5152_v13, %v1591_v63 }
 0x2dd   : > { %1940 = vadd.xlane.f32.xlu2 %v1720_v4  ;;  %v6740_v4 = vld [vmem:[#allocation31_spill] sm:$0xff] }
 0x2de   : > { %v1466_v23 = vadd.f32 %v5594_v51, %v6740_v4  ;;  %v5624_v15 = vadd.s32 4294967288, %v5617_v1  ;;  %v5628_v41 = vadd.s32 4294967280, %v5617_v1  ;;  %v5631_v13 = vadd.s32 4294967272, %v5617_v1 }
 0x2df   : > { %v1853_v46 = vpop.xlane.xlu0 %1852  ;;  %v1861_v14 = vpop.xlane.xlu1 %1860 }
 0x2e0   : > { %v1857_v47 = vpop.xlane.xlu2 %1856  ;;  %v2266_v39 = vperm.slane %v1853_v46, %v5617_v1  ;;  %v1594_v30 = vmax.f32 %v1466_v23, 0.0  ;;  %v2267_v63 = vperm.slane %v1855_v17, %v5624_v15  ;;  %v1727_v23 = vmul.f32 %v5642_v36, %v1595_v12 }
 0x2e1   : > { %v2269_v4 = vperm.slane %v1857_v47, %v5628_v41  ;;  %v1470_v17 = vadd.f32 %v5594_v51, %v6741_v56  ;;  %v1471_v47 = vadd.f32 %v5594_v51, %v6742_v38 }
 0x2e2   : > { %v2268_v46 = vsel %vm2146_vm1, %v2267_v63, %v2266_v39  ;;  %v1726_v2 = vmul.f32 %v5642_v36, %v1594_v30  ;;  %v6743_v39 = vld [vmem:[#allocation37_spill] sm:$0xff]  ;;  %v5654_v63 = vadd.s32 4294967264, %v5617_v1  ;;  %v5659_v30 = vadd.s32 4294967248, %v5617_v1 }
 0x2e3   : > { %v2270_v12 = vsel %vm2150_vm2, %v2269_v4, %v2268_v46  ;;  %v1598_v8 = vmax.f32 %v1470_v17, 0.0 }
 0x2e4   : > { %1948 = vadd.xlane.f32.xlu0 %v1724_v54  ;;  %1950 = vadd.xlane.f32.xlu1 %v1725_v40  ;;  %v2273_v38 = vperm.slane %v1861_v14, %v5654_v63  ;;  %v1474_v14 = vadd.f32 %v5594_v51, %v5333_v49 }
 0x2e5   : > { %1946 = vadd.xlane.f32.xlu2 %v1723_v37  ;;  %v5634_v37 = vpop.f32.mrf.mxu3  ;;  %v1730_v46 = vmul.f32 %v5642_v36, %v1598_v8 }
 0x2e7   : > { %v1859_v43 = vpop.xlane.xlu0 %1858  ;;  %v1867_v54 = vpop.xlane.xlu1 %1866 }
 0x2e8   : > { %v1863_v40 = vpop.xlane.xlu2 %1862  ;;  %v2271_v20 = vperm.slane %v1859_v43, %v5631_v13  ;;  %v1469_v43 = vadd.f32 %v5594_v51, %v6743_v39  ;;  %v1599_v39 = vmax.f32 %v1471_v47, 0.0 }
 0x2ea   : > { %v2272_v56 = vsel %vm2154_vm3, %v2271_v20, %v2270_v12  ;;  %v1597_v57 = vmax.f32 %v1469_v43, 0.0  ;;  %v1473_v20 = vadd.f32 %v5594_v51, %v5314_v44  ;;  %v1731_v47 = vmul.f32 %v5642_v36, %v1599_v39 }
 0x2eb   : > { %v5685_v44 = vadd.s32 4294967224, %v5617_v1 }
 0x2ec   : > { %1954 = vadd.xlane.f32.xlu0 %v1727_v23  ;;  %1956 = vadd.xlane.f32.xlu1 %v1728_v22  ;;  %v5663_v23 = vadd.s32 4294967256, %v5617_v1  ;;  %v2274_v22 = vsel %vm2158_vm4, %v2273_v38, %v2272_v56  ;;  %v1729_v43 = vmul.f32 %v5642_v36, %v1597_v57  ;;  %v1602_v57 = vmax.f32 %v1474_v14, 0.0 }
 0x2ed   : > { %1952 = vadd.xlane.f32.xlu2 %v1726_v2  ;;  %v5673_v17 = vpop.f32.mrf.mxu3  ;;  %v1601_v8 = vmax.f32 %v1473_v20, 0.0  ;;  %v1476_v14 = vadd.f32 %v5594_v51, %v5377_v6 }
 0x2ee   : > { %v2275_v4 = vperm.slane %v1863_v40, %v5663_v23  ;;  %v5680_v40 = vadd.s32 4294967240, %v5617_v1  ;;  %v1734_v20 = vmul.f32 %v5642_v36, %v1602_v57 }
 0x2ef   : > { %v1865_v42 = vpop.xlane.xlu0 %1864  ;;  %v1873_v58 = vpop.xlane.xlu1 %1872 }
 0x2f0   : > { %v1869_v32 = vpop.xlane.xlu2 %1868  ;;  %v2277_v2 = vperm.slane %v1865_v42, %v5659_v30  ;;  %v1472_v42 = vadd.f32 %v5594_v51, %v5300_v31  ;;  %v2276_v12 = vsel %vm2162_vm5, %v2275_v4, %v2274_v22  ;;  %v2279_v56 = vperm.slane %v1867_v54, %v5680_v40 }
 0x2f1   : > { %v5689_v31 = vadd.s32 4294967232, %v5617_v1  ;;  %v1477_v54 = vadd.f32 %v5594_v51, %v5399_v59 }
 0x2f2   : > { %v2278_v49 = vsel %vm2166_vm6, %v2277_v2, %v2276_v12  ;;  %v1600_v39 = vmax.f32 %v1472_v42, 0.0  ;;  %v1733_v42 = vmul.f32 %v5642_v36, %v1601_v8  ;;  %v1475_v12 = vadd.f32 %v5594_v51, %v5352_v27 }
 0x2f3   : > { %v2280_v22 = vsel %vm2170_vm7, %v2279_v56, %v2278_v49  ;;  %v5704_v49 = vadd.s32 4294967216, %v5617_v1  ;;  %v1604_v27 = vmax.f32 %v1476_v14, 0.0  ;;  %v5715_v8 = vadd.s32 4294967208, %v5617_v1 }
 0x2f4   : > { %1960 = vadd.xlane.f32.xlu0 %v1730_v46  ;;  %1962 = vadd.xlane.f32.xlu1 %v1731_v47  ;;  %v1351_v47 = vrot.slane %v5140_v7, 7 }
 0x2f5   : > { %1958 = vadd.xlane.f32.xlu2 %v1729_v43  ;;  %v2281_v43 = vperm.slane %v1869_v32, %v5689_v31  ;;  %v1732_v32 = vmul.f32 %v5642_v36, %v1600_v39  ;;  %v5709_v6 = vpop.f32.mrf.mxu3  ;;  %v2285_v57 = vperm.slane %v1873_v58, %v5704_v49  ;;  %v1736_v14 = vmul.f32 %v5642_v36, %v1604_v27 }
 0x2f6   : > { %v5711_v56 = vperm.slane %v1351_v47, 0  ;;  %v1478_v27 = vadd.f32 %v5594_v51, %v5421_v28 }
 0x2f7   : > { %v1871_v38 = vpop.xlane.xlu0 %1870  ;;  %v1879_v4 = vpop.xlane.xlu1 %1878  ;;  %v2282_v7 = vsel %vm2174_vm8, %v2281_v43, %v2280_v22  ;;  %v1603_v43 = vmax.f32 %v1475_v12, 0.0 }
 0x2f8   : > { %v1875_v46 = vpop.xlane.xlu2 %1874  ;;  %v2283_v2 = vperm.slane %v1871_v38, %v5685_v44  ;;  %v5718_v38 = vadd.s32 4294967200, %v5617_v1 }
 0x2f9   : > { %v2287_v47 = vperm.slane %v1875_v46, %v5715_v8 }
 0x2fa   : > { %v2284_v59 = vsel %vm2178_vm9, %v2283_v2, %v2282_v7  ;;  %v1605_v2 = vmax.f32 %v1477_v54, 0.0  ;;  %v1479_v54 = vadd.f32 %v5594_v51, %v5441_v5  ;;  %v5742_v5 = vadd.s32 4294967176, %v5617_v1 }
 0x2fb   : > { %v2286_v39 = vsel %vm2182_vm10, %v2285_v57, %v2284_v59  ;;  %v1735_v57 = vmul.f32 %v5642_v36, %v1603_v43 }
 0x2fc   : > { %1966 = vadd.xlane.f32.xlu0 %v1733_v42  ;;  %1968 = vadd.xlane.f32.xlu1 %v1734_v20  ;;  %v1480_v20 = vadd.f32 %v5711_v56, %v5466_v10  ;;  %v2288_v59 = vsel %vm2186_vm11, %v2287_v47, %v2286_v39  ;;  %v1737_v12 = vmul.f32 %v5642_v36, %v1605_v2  ;;  %v1607_v2 = vmax.f32 %v1479_v54, 0.0 }
 0x2fd   : > { %1964 = vadd.xlane.f32.xlu2 %v1732_v32  ;;  %v5727_v32 = vadd.s32 4294967192, %v5617_v1  ;;  %v5745_v47 = vpop.f32.mrf.mxu3 }
 0x2fe   : > { %v1608_v51 = vmax.f32 %v1480_v20, 0.0  ;;  %v1739_v54 = vmul.f32 %v5642_v36, %v1607_v2 }
 0x2ff   : > { %v1877_v22 = vpop.xlane.xlu0 %1876  ;;  %v1885_v42 = vpop.xlane.xlu1 %1884  ;;  %v2291_v10 = vperm.slane %v1879_v4, %v5727_v32  ;;  %v1606_v4 = vmax.f32 %v1478_v27, 0.0  ;;  %v1483_v27 = vadd.f32 %v5711_v56, %v5530_v9 }
 0x300   : > { %v1881_v7 = vpop.xlane.xlu2 %1880  ;;  %v2289_v58 = vperm.slane %v1877_v22, %v5718_v38  ;;  %v5739_v22 = vadd.s32 4294967184, %v5617_v1 }
 0x301   : > { %v1738_v20 = vmul.f32 %v5642_v36, %v1606_v4 }
 0x302   : > { %v2290_v46 = vsel %vm2190_vm12, %v2289_v58, %v2288_v59  ;;  %v2293_v43 = vperm.slane %v1881_v7, %v5739_v22  ;;  %v1740_v7 = vmul.f32 %v5642_v36, %v1608_v51 }
 0x303   : > { %v2292_v39 = vsel %vm2194_vm13, %v2291_v10, %v2290_v46  ;;  %v1482_v46 = vadd.f32 %v5711_v56, %v5510_v62  ;;  %v1481_v10 = vadd.f32 %v5711_v56, %v5488_v55  ;;  %v2297_v62 = vperm.slane %v1885_v42, %v5617_v1 }
 0x304   : > { %1972 = vadd.xlane.f32.xlu0 %v1736_v14  ;;  %1974 = vadd.xlane.f32.xlu1 %v1737_v12  ;;  %v2294_v12 = vsel %vm2198_vm14, %v2293_v43, %v2292_v39 }
 0x305   : > { %1970 = vadd.xlane.f32.xlu2 %v1735_v57  ;;  %v1610_v43 = vmax.f32 %v1482_v46, 0.0 }
 0x307   : > { %v1883_v28 = vpop.xlane.xlu0 %1882  ;;  %v1891_v58 = vpop.xlane.xlu1 %1890  ;;  %v1742_v55 = vmul.f32 %v5642_v36, %v1610_v43 }
 0x308   : > { %v1887_v14 = vpop.xlane.xlu2 %1886  ;;  %v2295_v59 = vperm.slane %v1883_v28, %v5742_v5  ;;  %v1611_v28 = vmax.f32 %v1483_v27, 0.0  ;;  %v2302_v27 = vperm.slane %v1891_v58, %v5631_v13 }
 0x309   : > { %v2298_v39 = vperm.slane %v1887_v14, %v5624_v15  ;;  %v1485_v14 = vadd.f32 %v5711_v56, %v5572_v34 }
 0x30a   : > { %v5751_v57 = vsel %vm2202_vm15, %v2295_v59, %v2294_v12  ;;  %v1609_v59 = vmax.f32 %v1481_v10, 0.0 }
 0x30b   : > { %6744 = vst [vmem:[#allocation27_spill] sm:$0xff] %v5751_v57  ;;  %v1280_v57 = vpop.f32.mrf.mxu3  ;;  %v2299_v9 = vsel %vm2146_vm1, %v2298_v39, %v2297_v62 }
 0x30c   : > { %1978 = vadd.xlane.f32.xlu0 %v1739_v54  ;;  %1980 = vadd.xlane.f32.xlu1 %v1740_v7  ;;  %v1486_v54 = vadd.f32 %v5711_v56, %v5592_v45  ;;  %v1743_v7 = vmul.f32 %v5642_v36, %v1611_v28  ;;  %v1741_v42 = vmul.f32 %v5642_v36, %v1609_v59  ;;  %v1613_v45 = vmax.f32 %v1485_v14, 0.0 }
 0x30d   : > { %1976 = vadd.xlane.f32.xlu2 %v1738_v20  ;;  %v1484_v20 = vadd.f32 %v5711_v56, %v5553_v26 }
 0x30e   : > { %v1614_v43 = vmax.f32 %v1486_v54, 0.0  ;;  %v1745_v58 = vmul.f32 %v5642_v36, %v1613_v45  ;;  %v1489_v54 = vadd.f32 %v5711_v56, %v5673_v17 }
 0x30f   : > { %v1889_v2 = vpop.xlane.xlu0 %1888  ;;  %v1897_v51 = vpop.xlane.xlu1 %1896 }
 0x310   : > { %v1893_v12 = vpop.xlane.xlu2 %1892  ;;  %v2300_v4 = vperm.slane %v1889_v2, %v5628_v41  ;;  %v1612_v2 = vmax.f32 %v1484_v20, 0.0  ;;  %v1746_v14 = vmul.f32 %v5642_v36, %v1614_v43 }
 0x311   : > { %v2304_v39 = vperm.slane %v1893_v12, %v5654_v63 }
 0x312   : > { %v2301_v46 = vsel %vm2150_vm2, %v2300_v4, %v2299_v9  ;;  %v1488_v9 = vadd.f32 %v5711_v56, %v5634_v37  ;;  %v1744_v12 = vmul.f32 %v5642_v36, %v1612_v2  ;;  %v1491_v2 = vadd.f32 %v5711_v56, %v5745_v47 }
 0x313   : > { %v2303_v10 = vsel %vm2154_vm3, %v2302_v27, %v2301_v46  ;;  %v1487_v46 = vadd.f32 %v5711_v56, %v5609_v18 }
 0x314   : > { %1984 = vadd.xlane.f32.xlu0 %v1742_v55  ;;  %1986 = vadd.xlane.f32.xlu1 %v1743_v7  ;;  %v2305_v4 = vsel %vm2158_vm4, %v2304_v39, %v2303_v10  ;;  %v1282_v55 = vpop.f32.mrf.mxu3  ;;  %v2308_v7 = vperm.slane %v1897_v51, %v5659_v30  ;;  %v1616_v20 = vmax.f32 %v1488_v9, 0.0  ;;  %v1617_v10 = vmax.f32 %v1489_v54, 0.0 }
 0x315   : > { %1982 = vadd.xlane.f32.xlu2 %v1741_v42  ;;  %v1615_v45 = vmax.f32 %v1487_v46, 0.0  ;;  %v1619_v54 = vmax.f32 %v1491_v2, 0.0  ;;  %v1202_v46 = vpop.f32.mrf.mxu2 }
 0x316   : > { %v1748_v51 = vmul.f32 %v5642_v36, %v1616_v20 }
 0x317   : > { %v1895_v34 = vpop.xlane.xlu0 %1894  ;;  %v1903_v62 = vpop.xlane.xlu1 %1902 }
 0x318   : > { %v1899_v28 = vpop.xlane.xlu2 %1898  ;;  %v2306_v59 = vperm.slane %v1895_v34, %v5663_v23 }
 0x319   : > { %v2310_v37 = vperm.slane %v1899_v28, %v5680_v40  ;;  %v1749_v28 = vmul.f32 %v5642_v36, %v1617_v10 }
 0x31a   : > { %v2307_v26 = vsel %vm2162_vm5, %v2306_v59, %v2305_v4  ;;  %v1492_v59 = vadd.f32 %v5711_v56, %v1280_v57  ;;  %v1747_v4 = vmul.f32 %v5642_v36, %v1615_v45  ;;  %v1751_v45 = vmul.f32 %v5642_v36, %v1619_v54 }
 0x31b   : > { %v2309_v42 = vsel %vm2166_vm6, %v2308_v7, %v2307_v26  ;;  %v1490_v26 = vadd.f32 %v5711_v56, %v5709_v6 }
 0x31c   : > { %1990 = vadd.xlane.f32.xlu0 %v1745_v58  ;;  %1992 = vadd.xlane.f32.xlu1 %v1746_v14  ;;  %v2311_v43 = vsel %vm2170_vm7, %v2310_v37, %v2309_v42  ;;  %v2314_v58 = vperm.slane %v1903_v62, %v5685_v44  ;;  %v1285_v9 = vpop.f32.mrf.mxu3  ;;  %v1047_v14 = vpop.f32.mrf.mxu0  ;;  %v1620_v47 = vmax.f32 %v1492_v59, 0.0 }
 0x31d   : > { %1988 = vadd.xlane.f32.xlu2 %v1744_v12  ;;  %v1618_v42 = vmax.f32 %v1490_v26, 0.0 }
 0x31f   : > { %v1901_v27 = vpop.xlane.xlu0 %1900  ;;  %v1909_v39 = vpop.xlane.xlu1 %1908 }
 0x320   : > { %v1905_v34 = vpop.xlane.xlu2 %1904  ;;  %v2312_v17 = vperm.slane %v1901_v27, %v5689_v31  ;;  %v1461_v27 = vadd.f32 %v5512_v29, %v1202_v46 }
 0x321   : > { %v2316_v57 = vperm.slane %v1905_v34, %v5704_v49  ;;  %v1752_v34 = vmul.f32 %v5642_v36, %v1620_v47 }
 0x322   : > { %v2313_v18 = vsel %vm2174_vm8, %v2312_v17, %v2311_v43  ;;  %v1399_v17 = vadd.f32 %v5207_v0, %v1047_v14  ;;  %v1493_v43 = vadd.f32 %v5711_v56, %v1282_v55  ;;  %v1589_v2 = vmax.f32 %v1461_v27, 0.0 }
 0x323   : > { %v2315_v12 = vsel %vm2178_vm9, %v2314_v58, %v2313_v18  ;;  %v1750_v18 = vmul.f32 %v5642_v36, %v1618_v42 }
 0x324   : > { %1996 = vadd.xlane.f32.xlu0 %v1748_v51  ;;  %1998 = vadd.xlane.f32.xlu1 %v1749_v28  ;;  %v2317_v62 = vsel %vm2182_vm10, %v2316_v57, %v2315_v12  ;;  %v2320_v51 = vperm.slane %v1909_v39, %v5718_v38  ;;  %v1527_v59 = vmax.f32 %v1399_v17, 0.0  ;;  %v1621_v28 = vmax.f32 %v1493_v43, 0.0 }
 0x325   : > { %1994 = vadd.xlane.f32.xlu2 %v1747_v4  ;;  %v1287_v4 = vpop.f32.mrf.mxu3  ;;  %v1494_v39 = vadd.f32 %v5711_v56, %v1285_v9  ;;  %v1721_v47 = vmul.f32 %v5642_v36, %v1589_v2 }
 0x326   : > { %v1495_v46 = vadd.f32 %v5711_v56, %v1287_v4  ;;  %v1753_v57 = vmul.f32 %v5642_v36, %v1621_v28 }
 0x327   : > { %v1907_v7 = vpop.xlane.xlu0 %1906  ;;  %v5808_v20 = vpop.xlane.xlu1 %1914  ;;  %v1622_v42 = vmax.f32 %v1494_v39, 0.0 }
 0x328   : > { %v1911_v37 = vpop.xlane.xlu2 %1910  ;;  %v2318_v6 = vperm.slane %v1907_v7, %v5715_v8  ;;  %v1659_v7 = vmul.f32 %v5642_v36, %v1527_v59 }
 0x329   : > { %v2322_v26 = vperm.slane %v1911_v37, %v5727_v32  ;;  %v1623_v37 = vmax.f32 %v1495_v46, 0.0 }
 0x32a   : > { %v2319_v10 = vsel %vm2186_vm11, %v2318_v6, %v2317_v62 }
 0x32b   : > { %v2321_v29 = vsel %vm2190_vm12, %v2320_v51, %v2319_v10  ;;  %v1755_v17 = vmul.f32 %v5642_v36, %v1623_v37 }
 0x32c   : > { %2002 = vadd.xlane.f32.xlu0 %v1751_v45  ;;  %2004 = vadd.xlane.f32.xlu1 %v1752_v34  ;;  %v2323_v12 = vsel %vm2194_vm13, %v2322_v26, %v2321_v29  ;;  %v1754_v45 = vmul.f32 %v5642_v36, %v1622_v42 }
 0x32d   : > { %2000 = vadd.xlane.f32.xlu2 %v1750_v18 }
 0x32f   : > { %v1913_v0 = vpop.xlane.xlu0 %1912  ;;  %v1921_v58 = vpop.xlane.xlu1 %1920 }
 0x330   : > { %v1917_v55 = vpop.xlane.xlu2 %1916  ;;  %v2324_v14 = vperm.slane %v1913_v0, %v5739_v22  ;;  %v2331_v43 = vperm.slane %v1921_v58, %v5628_v41 }
 0x331   : > { %v2328_v10 = vperm.slane %v1917_v55, %v5617_v1 }
 0x332   : > { %v5826_v54 = vsel %vm2198_vm14, %v2324_v14, %v2323_v12 }
 0x334   : > { %1942 = vadd.xlane.f32.xlu0 %v1721_v47  ;;  %1818 = vadd.xlane.f32.xlu1 %v1659_v7 }
 0x335   : > { %2006 = vadd.xlane.f32.xlu2 %v1753_v57 }
 0x337   : > { %v1919_v6 = vpop.xlane.xlu0 %1918  ;;  %v1927_v62 = vpop.xlane.xlu1 %1926 }
 0x338   : > { %v1923_v27 = vpop.xlane.xlu2 %1922  ;;  %v2329_v9 = vperm.slane %v1919_v6, %v5624_v15  ;;  %v2337_v26 = vperm.slane %v1927_v62, %v5663_v23 }
 0x339   : > { %v2333_v18 = vperm.slane %v1923_v27, %v5631_v13 }
 0x33a   : > { %v2330_v56 = vsel %vm2146_vm1, %v2329_v9, %v2328_v10 }
 0x33b   : > { %v2332_v34 = vsel %vm2150_vm2, %v2331_v43, %v2330_v56 }
 0x33c   : > { %2008 = vadd.xlane.f32.xlu0 %v1754_v45  ;;  %2010 = vadd.xlane.f32.xlu1 %v1755_v17  ;;  %v2334_v28 = vsel %vm2154_vm3, %v2333_v18, %v2332_v34 }
 0x33f   : > { %v1925_v51 = vpop.xlane.xlu0 %1924  ;;  %v1933_v2 = vpop.xlane.xlu1 %1932 }
 0x340   : > { %v1929_v29 = vpop.xlane.xlu2 %1928  ;;  %v2335_v59 = vperm.slane %v1925_v51, %v5654_v63  ;;  %v2343_v46 = vperm.slane %v1933_v2, %v5689_v31 }
 0x341   : > { %v2339_v0 = vperm.slane %v1929_v29, %v5659_v30 }
 0x342   : > { %v2336_v4 = vsel %vm2158_vm4, %v2335_v59, %v2334_v28 }
 0x343   : > { %v2338_v36 = vsel %vm2162_vm5, %v2337_v26, %v2336_v4 }
 0x344   : > { %v2340_v39 = vsel %vm2166_vm6, %v2339_v0, %v2338_v36 }
 0x347   : > { %v1931_v58 = vpop.xlane.xlu0 %1930  ;;  %v5846_v55 = vpop.xlane.xlu1 %1938 }
 0x348   : > { %v1935_v14 = vpop.xlane.xlu2 %1934  ;;  %v2341_v12 = vperm.slane %v1931_v58, %v5680_v40 }
 0x349   : > { %v2345_v7 = vperm.slane %v1935_v14, %v5685_v44 }
 0x34a   : > { %v2342_v47 = vsel %vm2170_vm7, %v2341_v12, %v2340_v39 }
 0x34b   : > { %v2344_v57 = vsel %vm2174_vm8, %v2343_v46, %v2342_v47  ;;  %v2145_v47 = vperm.slane %v5354_v60, %v5624_v15  ;;  %v2236_v60 = vperm.slane %v5532_v24, %v5624_v15  ;;  %v2207_v24 = vperm.slane %v5443_v25, %v5628_v41 }
 0x34c   : > { %v2346_v27 = vsel %vm2178_vm9, %v2345_v7, %v2344_v57  ;;  %v2143_v7 = vperm.slane %v5335_v52, %v5617_v1 }
 0x34f   : > { %v1937_v42 = vpop.xlane.xlu0 %1936  ;;  %v5854_v37 = vpop.xlane.xlu1 %1944 }
 0x350   : > { %v5856_v6 = vpop.xlane.xlu2 %1940  ;;  %v2347_v62 = vperm.slane %v1937_v42, %v5704_v49  ;;  %v2147_v42 = vsel %vm2146_vm1, %v2145_v47, %v2143_v7  ;;  %v2242_v47 = vperm.slane %v5547_v35, %v5654_v63 }
 0x352   : > { %v5861_v9 = vsel %vm2182_vm10, %v2347_v62, %v2346_v27  ;;  %v2149_v62 = vperm.slane %v5337_v48, %v5628_v41  ;;  %v2205_v48 = vperm.slane %v5428_v50, %v5624_v15  ;;  %v2161_v50 = vperm.slane %v5358_v16, %v5663_v23  ;;  %v6746_v16 = vld [vmem:[#allocation54_spill] sm:$0xff] }
 0x354   : > { %v2151_v27 = vsel %vm2150_vm2, %v2149_v62, %v2147_v42  ;;  %v2240_v62 = vperm.slane %v6746_v16, %v5631_v13 }
 0x357   : > { %v1949_v10 = vpop.xlane.xlu0 %1948  ;;  %v1951_v45 = vpop.xlane.xlu1 %1950 }
 0x358   : > { %v5863_v56 = vpop.xlane.xlu2 %1946  ;;  %v2360_v17 = vperm.slane %v1951_v45, %v5624_v15  ;;  %v2359_v43 = vperm.slane %v1949_v10, %v5617_v1  ;;  %v2153_v45 = vperm.slane %v5356_v61, %v5631_v13  ;;  %v2157_v61 = vperm.slane %v5339_v21, %v5654_v63 }
 0x359   : > { %v2209_v21 = vperm.slane %v5445_v19, %v5631_v13 }
 0x35a   : > { %v2361_v59 = vsel %vm2146_vm1, %v2360_v17, %v2359_v43  ;;  %v2155_v52 = vsel %vm2154_vm3, %v2153_v45, %v2151_v27 }
 0x35f   : > { %v1955_v34 = vpop.xlane.xlu0 %1954  ;;  %v5867_v18 = vpop.xlane.xlu1 %1956 }
 0x360   : > { %v1953_v51 = vpop.xlane.xlu2 %1952  ;;  %v2364_v2 = vperm.slane %v1955_v34, %v5631_v13  ;;  %v2204_v34 = vperm.slane %v5426_v33, %v5617_v1  ;;  %v2238_v33 = vperm.slane %v5517_v3, %v5628_v41  ;;  %v6745_v3 = vld [vmem:[#allocation48_spill] sm:$0xff] }
 0x361   : > { %v2362_v29 = vperm.slane %v1953_v51, %v5628_v41  ;;  %v2235_v51 = vperm.slane %v5519_v53, %v5617_v1  ;;  %v2169_v42 = vperm.slane %v6745_v3, %v5680_v40  ;;  %v6753_v3 = vld [vmem:[#allocation57_spill] sm:$0xff] }
 0x362   : > { %v2206_v53 = vsel %vm2146_vm1, %v2205_v48, %v2204_v34  ;;  %v6748_v48 = vld [vmem:[#allocation24_spill] sm:$0xff] }
 0x363   : > { %v2363_v28 = vsel %vm2150_vm2, %v2362_v29, %v2361_v59  ;;  %v2159_v29 = vsel %vm2158_vm4, %v2157_v61, %v2155_v52  ;;  %v2165_v59 = vperm.slane %v5371_v11, %v5659_v30  ;;  %v2208_v25 = vsel %vm2150_vm2, %v2207_v24, %v2206_v53  ;;  %v6747_v52 = vld [vmem:[#allocation26_spill] sm:$0xff] }
 0x364   : > { %v5874_v4 = vsel %vm2154_vm3, %v2364_v2, %v2363_v28  ;;  %v2237_v2 = vsel %vm2146_vm1, %v2236_v60, %v2235_v51  ;;  %v2163_v11 = vsel %vm2162_vm5, %v2161_v50, %v2159_v29  ;;  %v2210_v60 = vsel %vm2154_vm3, %v2209_v21, %v2208_v25  ;;  %v6751_v50 = vld [vmem:[#allocation49_spill] sm:$0xff]  ;;  %v6752_v25 = vld [vmem:[#allocation34_spill] sm:$0xff] }
 0x365   : > { %v2239_v28 = vsel %vm2150_vm2, %v2238_v33, %v2237_v2  ;;  %v2167_v19 = vsel %vm2166_vm6, %v2165_v59, %v2163_v11  ;;  %v2213_v34 = vperm.slane %v6747_v52, %v5663_v23  ;;  %v2211_v51 = vperm.slane %v6748_v48, %v5654_v63  ;;  %v6749_v2 = vld [vmem:[#allocation41_spill] sm:$0xff]  ;;  %v6755_v52 = vld [vmem:[#allocation56_spill] sm:$0xff] }
 0x366   : > { %v2241_v35 = vsel %vm2154_vm3, %v2240_v62, %v2239_v28  ;;  %v2171_v24 = vsel %vm2170_vm7, %v2169_v42, %v2167_v19  ;;  %v2177_v29 = vperm.slane %v6749_v2, %v5685_v44  ;;  %v6750_v33 = vld [vmem:[#allocation53_spill] sm:$0xff]  ;;  %v2173_v53 = vperm.slane %v6751_v50, %v5689_v31  ;;  %v6754_v62 = vld [vmem:[#allocation50_spill] sm:$0xff]  ;;  %v6756_v2 = vld [vmem:[#allocation32_spill] sm:$0xff] }
 0x367   : > { %v5876_v26 = vpop.xlane.xlu0 %1960  ;;  %v5878_v36 = vpop.xlane.xlu1 %1962  ;;  %v2243_v61 = vsel %vm2158_vm4, %v2242_v47, %v2241_v35  ;;  %v2244_v59 = vperm.slane %v6750_v33, %v5663_v23  ;;  %v2212_v21 = vsel %vm2158_vm4, %v2211_v51, %v2210_v60  ;;  %v2215_v28 = vperm.slane %v6752_v25, %v5659_v30  ;;  %v6757_v50 = vld [vmem:[#allocation51_spill] sm:$0xff] }
 0x368   : > { %v5880_v0 = vpop.xlane.xlu2 %1958  ;;  %v2214_v11 = vsel %vm2162_vm5, %v2213_v34, %v2212_v21  ;;  %v2248_v42 = vperm.slane %v6753_v3, %v5680_v40  ;;  %v2175_v16 = vsel %vm2174_vm8, %v2173_v53, %v2171_v24  ;;  %v2181_v19 = vperm.slane %v6754_v62, %v5704_v49  ;;  %v6758_v21 = vld [vmem:[#allocation30_spill] sm:$0xff] }
 0x369   : > { %v2245_v47 = vsel %vm2162_vm5, %v2244_v59, %v2243_v61  ;;  %v2246_v35 = vperm.slane %v6755_v52, %v5659_v30  ;;  %v2179_v60 = vsel %vm2178_vm9, %v2177_v29, %v2175_v16  ;;  %v2216_v61 = vsel %vm2166_vm6, %v2215_v28, %v2214_v11  ;;  %v6759_v16 = vld [vmem:[#allocation55_spill] sm:$0xff] }
 0x36a   : > { %v2219_v33 = vperm.slane %v6756_v2, %v5689_v31  ;;  %v2185_v53 = vperm.slane %v6757_v50, %v5715_v8  ;;  %v2217_v25 = vperm.slane %v6758_v21, %v5680_v40  ;;  %v2183_v3 = vsel %vm2182_vm10, %v2181_v19, %v2179_v60  ;;  %v6761_v60 = vld [vmem:[#allocation60_spill] sm:$0xff] }
 0x36b   : > { %v2247_v24 = vsel %vm2166_vm6, %v2246_v35, %v2245_v47  ;;  %v2250_v28 = vperm.slane %v6759_v16, %v5689_v31  ;;  %v2368_v11 = vperm.slane %v5880_v0, %v5663_v23  ;;  %v2366_v52 = vperm.slane %v5867_v18, %v5654_v63 }
 0x36c   : > { %v2249_v29 = vsel %vm2170_vm7, %v2248_v42, %v2247_v24  ;;  %v2254_v0 = vperm.slane %v6761_v60, %v5704_v49  ;;  %v6763_v24 = vld [vmem:[#allocation59_spill] sm:$0xff]  ;;  %v2372_v60 = vperm.slane %v5878_v36, %v5680_v40 }
 0x36d   : > { %v2251_v35 = vsel %vm2174_vm8, %v2250_v28, %v2249_v29  ;;  %v2252_v50 = vperm.slane %v6763_v24, %v5685_v44  ;;  %v2367_v18 = vsel %vm2158_vm4, %v2366_v52, %v5874_v4 }
 0x36f   : > { %v5882_v58 = vpop.xlane.xlu0 %1966  ;;  %v5884_v14 = vpop.xlane.xlu1 %1968  ;;  %v2253_v16 = vsel %vm2178_vm9, %v2252_v50, %v2251_v35 }
 0x370   : > { %v5886_v12 = vpop.xlane.xlu2 %1964 }
 0x377   : > { %v5888_v39 = vpop.xlane.xlu0 %1972  ;;  %v5892_v46 = vpop.xlane.xlu1 %1974 }
 0x378   : > { %v5894_v57 = vpop.xlane.xlu2 %1970 }
 0x37f   : > { %v5902_v10 = vpop.xlane.xlu0 %1978  ;;  %v5908_v17 = vpop.xlane.xlu1 %1980 }
 0x380   : > { %v5910_v43 = vpop.xlane.xlu2 %1976  ;;  %v2390_v47 = vperm.slane %v5908_v17, %v5617_v1  ;;  %v6762_v17 = vld [vmem:[#allocation42_spill] sm:$0xff] }
 0x387   : > { %v1985_v7 = vpop.xlane.xlu0 %1984  ;;  %v5943_v27 = vpop.xlane.xlu1 %1986 }
 0x388   : > { %v1983_v45 = vpop.xlane.xlu2 %1982  ;;  %v2393_v42 = vperm.slane %v1985_v7, %v5628_v41  ;;  %v2370_v41 = vperm.slane %v5876_v26, %v5659_v30  ;;  %v2187_v7 = vsel %vm2186_vm11, %v2185_v53, %v2183_v3  ;;  %v6765_v53 = vld [vmem:[#allocation36_spill] sm:$0xff] }
 0x389   : > { %v2391_v59 = vperm.slane %v1983_v45, %v5624_v15  ;;  %v2218_v15 = vsel %vm2170_vm7, %v2217_v25, %v2216_v61  ;;  %v6760_v45 = vld [vmem:[#allocation43_spill] sm:$0xff]  ;;  %v2189_v61 = vperm.slane %v6762_v17, %v5718_v38  ;;  %v2369_v25 = vsel %vm2162_vm5, %v2368_v11, %v2367_v18  ;;  %v6770_v18 = vld [vmem:[#allocation62_spill] sm:$0xff] }
 0x38a   : > { %v2221_v62 = vperm.slane %v6760_v45, %v5685_v44  ;;  %v2220_v19 = vsel %vm2174_vm8, %v2219_v33, %v2218_v15  ;;  %v6764_v33 = vld [vmem:[#allocation44_spill] sm:$0xff]  ;;  %v2223_v3 = vperm.slane %v6765_v53, %v5704_v49  ;;  %v6766_v15 = vld [vmem:[#allocation38_spill] sm:$0xff]  ;;  %v2255_v11 = vsel %vm2182_vm10, %v2254_v0, %v2253_v16 }
 0x38b   : > { %v2392_v2 = vsel %vm2146_vm1, %v2391_v59, %v2390_v47  ;;  %v2193_v21 = vperm.slane %v6764_v33, %v5727_v32  ;;  %v2225_v45 = vperm.slane %v6766_v15, %v5715_v8  ;;  %v2191_v52 = vsel %vm2190_vm12, %v2189_v61, %v2187_v7  ;;  %v6769_v61 = vld [vmem:[#allocation23_spill] sm:$0xff]  ;;  %v6772_v53 = vld [vmem:[#allocation28_spill] sm:$0xff] }
 0x38c   : > { %v2222_v29 = vsel %vm2178_vm9, %v2221_v62, %v2220_v19  ;;  %v2394_v28 = vsel %vm2150_vm2, %v2393_v42, %v2392_v2  ;;  %v2395_v62 = vperm.slane %v5943_v27, %v5631_v13  ;;  %v6767_v42 = vld [vmem:[#allocation58_spill] sm:$0xff]  ;;  %v6768_v27 = vld [vmem:[#allocation47_spill] sm:$0xff]  ;;  %v2260_v24 = vperm.slane %v6769_v61, %v5727_v32 }
 0x38d   : > { %v2256_v19 = vperm.slane %v6767_v42, %v5715_v8  ;;  %v2224_v35 = vsel %vm2182_vm10, %v2223_v3, %v2222_v29  ;;  %v2227_v2 = vperm.slane %v6768_v27, %v5718_v38  ;;  %v2258_v36 = vperm.slane %v6770_v18, %v5718_v38  ;;  %v6774_v42 = vld [vmem:[#allocation61_spill] sm:$0xff] }
 0x38e   : > { %v2396_v0 = vsel %vm2154_vm3, %v2395_v62, %v2394_v28  ;;  %v2226_v50 = vsel %vm2186_vm11, %v2225_v45, %v2224_v35  ;;  %v2201_v3 = vperm.slane %v6772_v53, %v5742_v5  ;;  %v6773_v62 = vld [vmem:[#allocation46_spill] sm:$0xff]  ;;  %v2382_v61 = vperm.slane %v5888_v39, %v5718_v38 }
 0x38f   : > { %v5972_v48 = vpop.xlane.xlu0 %1990  ;;  %v5975_v51 = vpop.xlane.xlu1 %1992  ;;  %v2257_v17 = vsel %vm2186_vm11, %v2256_v19, %v2255_v11  ;;  %v2228_v15 = vsel %vm2190_vm12, %v2227_v2, %v2226_v50  ;;  %v2380_v19 = vperm.slane %v5894_v57, %v5715_v8  ;;  %v6776_v2 = vld [vmem:[#allocation63_spill] sm:$0xff]  ;;  %v2351_v50 = vperm.slane %v5856_v6, %v5718_v38 }
 0x390   : > { %v1989_v34 = vpop.xlane.xlu2 %1988  ;;  %v2399_v13 = vperm.slane %v5972_v48, %v5663_v23  ;;  %v2376_v23 = vperm.slane %v5882_v58, %v5685_v44  ;;  %v6771_v48 = vld [vmem:[#allocation52_spill] sm:$0xff]  ;;  %v2259_v29 = vsel %vm2190_vm12, %v2258_v36, %v2257_v17  ;;  %v2401_v45 = vperm.slane %v5975_v51, %v5659_v30 }
 0x391   : > { %v2397_v4 = vperm.slane %v1989_v34, %v5654_v63  ;;  %v2371_v63 = vsel %vm2166_vm6, %v2370_v41, %v2369_v25  ;;  %v2374_v34 = vperm.slane %v5886_v12, %v5689_v31  ;;  %v2197_v7 = vperm.slane %v6771_v48, %v5739_v22 }
 0x392   : > { %v2373_v41 = vsel %vm2170_vm7, %v2372_v60, %v2371_v63  ;;  %v2195_v25 = vsel %vm2194_vm13, %v2193_v21, %v2191_v52  ;;  %v2261_v58 = vsel %vm2194_vm13, %v2260_v24, %v2259_v29  ;;  %v2231_v52 = vperm.slane %v6773_v62, %v5739_v22  ;;  %v6775_v63 = vld [vmem:[#allocation45_spill] sm:$0xff] }
 0x393   : > { %v2398_v12 = vsel %vm2158_vm4, %v2397_v4, %v2396_v0  ;;  %v2375_v33 = vsel %vm2174_vm8, %v2374_v34, %v2373_v41  ;;  %v2229_v34 = vperm.slane %v6775_v63, %v5727_v32  ;;  %v2378_v30 = vperm.slane %v5884_v14, %v5704_v49 }
 0x394   : > { %v2400_v16 = vsel %vm2162_vm5, %v2399_v13, %v2398_v12  ;;  %v2199_v60 = vsel %vm2198_vm14, %v2197_v7, %v2195_v25  ;;  %v2349_v13 = vperm.slane %v5846_v55, %v5715_v8  ;;  %v2264_v17 = vperm.slane %v6776_v2, %v5742_v5 }
 0x395   : > { %v2402_v51 = vsel %vm2166_vm6, %v2401_v45, %v2400_v16  ;;  %v2230_v27 = vsel %vm2194_vm13, %v2229_v34, %v2228_v15  ;;  %v2326_v39 = vperm.slane %v5808_v20, %v5742_v5  ;;  %v2355_v41 = vperm.slane %v5854_v37, %v5739_v22 }
 0x396   : > { %v2350_v24 = vsel %vm2186_vm11, %v2349_v13, %v5861_v9  ;;  %v2384_v9 = vperm.slane %v5892_v46, %v5727_v32  ;;  %v2386_v6 = vperm.slane %v5910_v43, %v5739_v22  ;;  %vm2423_vm1 = vcmask 1042434  }
 0x397   : > { %v6017_v59 = vpop.xlane.xlu0 %1996  ;;  %v6023_v47 = vpop.xlane.xlu1 %1998  ;;  %vm2425_vm2 = vcmask 1043459   ;;  %vm2427_vm3 = vcmask 1044484   ;;  %vm2429_vm4 = vcmask 1045509   ;;  %vm2431_vm5 = vcmask 1046534  }
 0x398   : > { %v1995_v26 = vpop.xlane.xlu2 %1994  ;;  %v2405_v35 = vperm.slane %v6017_v59, %v5689_v31  ;;  %v2203_v31 = vsel %vm2202_vm15, %v2201_v3, %v2199_v60  ;;  %v2232_v59 = vsel %vm2198_vm14, %v2231_v52, %v2230_v27  ;;  %vm2433_vm6 = vcmask 1047559  }
 0x399   : > { %v2403_v28 = vperm.slane %v1995_v26, %v5680_v40  ;;  %v2262_v40 = vperm.slane %v6774_v42, %v5739_v22  ;;  %v2377_v26 = vsel %vm2178_vm9, %v2376_v23, %v2375_v33  ;;  %v2407_v23 = vperm.slane %v6023_v47, %v5685_v44 }
 0x39a   : > { %v2379_v14 = vsel %vm2182_vm10, %v2378_v30, %v2377_v26  ;;  %v2357_v44 = vperm.slane %v5863_v56, %v5742_v5 }
 0x39b   : > { %v2263_v0 = vsel %vm2198_vm14, %v2262_v40, %v2261_v58  ;;  %v2404_v57 = vsel %vm2170_vm7, %v2403_v28, %v2402_v51  ;;  %v2381_v55 = vsel %vm2186_vm11, %v2380_v19, %v2379_v14  ;;  %v2388_v28 = vperm.slane %v5902_v10, %v5742_v5 }
 0x39c   : > { %v2265_v12 = vsel %vm2202_vm15, %v2264_v17, %v2263_v0  ;;  %v2406_v18 = vsel %vm2174_vm8, %v2405_v35, %v2404_v57  ;;  %v2383_v7 = vsel %vm2190_vm12, %v2382_v61, %v2381_v55  ;;  %v2327_v10 = vsel %vm2202_vm15, %v2326_v39, %v5826_v54 }
 0x39d   : > { %v2408_v25 = vsel %vm2178_vm9, %v2407_v23, %v2406_v18  ;;  %v2385_v16 = vsel %vm2194_vm13, %v2384_v9, %v2383_v7  ;;  %vm2014_vm7 = vcmp.lt.s32.totalorder %v5617_v1, 8 }
 0x39f   : > { %v2003_v4 = vpop.xlane.xlu0 %2002  ;;  %v6069_v11 = vpop.xlane.xlu1 %2004 }
 0x3a0   : > { %v2001_v21 = vpop.xlane.xlu2 %2000  ;;  %v2411_v37 = vperm.slane %v2003_v4, %v5715_v8  ;;  %v2387_v8 = vsel %vm2198_vm14, %v2386_v6, %v2385_v16  ;;  %v2413_v45 = vperm.slane %v6069_v11, %v5718_v38 }
 0x3a1   : > { %v2409_v36 = vperm.slane %v2001_v21, %v5704_v49  ;;  %v2352_v49 = vsel %vm2190_vm12, %v2351_v50, %v2350_v24  ;;  %v6777_v21 = vld [vmem:[#allocation27_spill] sm:$0xff] }
 0x3a3   : > { %v2410_v47 = vsel %vm2182_vm10, %v2409_v36, %v2408_v25 }
 0x3a4   : > { %v2412_v3 = vsel %vm2186_vm11, %v2411_v37, %v2410_v47 }
 0x3a5   : > { %v2414_v26 = vsel %vm2190_vm12, %v2413_v45, %v2412_v3 }
 0x3a7   : > { %v1943_v48 = vpop.xlane.xlu0 %1942  ;;  %v1819_v20 = vpop.xlane.xlu1 %1818 }
 0x3a8   : > { %v2353_v33 = vperm.slane %v1943_v48, %v5727_v32  ;;  %v2233_v46 = vperm.slane %v1819_v20, %v5742_v5  ;;  %v2007_v29 = vpop.xlane.xlu2 %2006 }
 0x3a9   : > { %v2415_v15 = vperm.slane %v2007_v29, %v5727_v32  ;;  %v2389_v32 = vsel %vm2202_vm15, %v2388_v28, %v2387_v8 }
 0x3aa   : > { %v2354_v43 = vsel %vm2194_vm13, %v2353_v33, %v2352_v49  ;;  %v2234_v53 = vsel %vm2202_vm15, %v2233_v46, %v2232_v59  ;;  %v385_v46 = vld [vmem:[%s4902_s11] sm:$0xf] }
 0x3ab   : > { %v2356_v4 = vsel %vm2198_vm14, %v2355_v41, %v2354_v43  ;;  %v2422_v56 = vsel %vm2421_vm0, %v2234_v53, %v2203_v31  ;;  %v2416_v38 = vsel %vm2194_vm13, %v2415_v15, %v2414_v26  ;;  %v3225_v47 = vunpack.c.l.bf16 %v385_v46 }
 0x3ac   : > { %v2424_v58 = vsel %vm2423_vm1, %v2265_v12, %v2422_v56  ;;  %v2358_v42 = vsel %vm2202_vm15, %v2357_v44, %v2356_v4  ;;  %v386_v44 = vld [vmem:[%s4902_s11 + $0x4] sm:$0xff]   ;;  %v388_v4 = vld [vmem:[%s4902_s11 + $0xc] sm:$0xff]  }
 0x3ad   : > { %v2426_v62 = vsel %vm2425_vm2, %v6777_v21, %v2424_v58  ;;  %v3226_v43 = vunpack.c.l.bf16 %v386_v44  ;;  %v3227_v8 = vunpack.c.h.bf16 %v386_v44  ;;  %v3228_v15 = vunpack.c.l.bf16 %v388_v4 }
 0x3ae   : > { %v2428_v40 = vsel %vm2427_vm3, %v2327_v10, %v2426_v62  ;;  %v3229_v10 = vunpack.c.h.bf16 %v388_v4  ;;  %v390_v62 = vld [vmem:[%s4902_s11 + $0x14] sm:$0xff]  }
 0x3af   : > { %v2009_v52 = vpop.xlane.xlu0 %2008  ;;  %v2011_v63 = vpop.xlane.xlu1 %2010  ;;  %v2430_v54 = vsel %vm2429_vm4, %v2358_v42, %v2428_v40  ;;  %v3230_v26 = vunpack.c.l.bf16 %v390_v62 }
 0x3b0   : > { %v2417_v19 = vperm.slane %v2009_v52, %v5739_v22  ;;  %v2419_v11 = vperm.slane %v2011_v63, %v5742_v5  ;;  %v2432_v34 = vsel %vm2431_vm5, %v2389_v32, %v2430_v54  ;;  %v6778_v5 = vlaneseq  ;;  %v392_v63 = vld [vmem:[%s4902_s11 + $0x1c] sm:$0xff]  }
 0x3b2   : > { %v2418_v30 = vsel %vm2198_vm14, %v2417_v19, %v2416_v38  ;;  %v6156_v27 = vshrl.u32 %v6778_v5, 7  ;;  %v3231_v38 = vunpack.c.h.bf16 %v390_v62  ;;  %v3233_v5 = vunpack.c.h.bf16 %v392_v63 }
 0x3b3   : > { %v2420_v51 = vsel %vm2202_vm15, %v2419_v11, %v2418_v30 }
 0x3b4   : > { %v2434_v35 = vsel %vm2433_vm6, %v2420_v51, %v2432_v34  ;;  %4357 = vset.pattern.permute.xlu1 %v6156_v27  ;;  %v6160_v1 = vadd.s32 16, %v6156_v27  ;;  %v6163_v2 = vadd.s32 8, %v6156_v27  ;;  %v6178_v12 = vadd.s32 72, %v6156_v27 }
 0x3b5   : > { %v2436_v60 = vsel %vm2014_vm7, %v2434_v35, -1e+30  ;;  %v6181_v50 = vadd.s32 24, %v6156_v27  ;;  %v6184_v18 = vadd.s32 32, %v6156_v27  ;;  %v6190_v36 = vadd.s32 112, %v6156_v27 }
 0x3b6   : > { %2437 = vmax.xlane.f32.xlu2 %v2436_v60  ;;  %4359 = vset.pattern.permute.xlu0 %v6160_v1  ;;  %v6193_v39 = vadd.s32 40, %v6156_v27  ;;  %v6196_v41 = vadd.s32 48, %v6156_v27  ;;  %v6202_v9 = vadd.s32 56, %v6156_v27  ;;  %v6205_v23 = vadd.s32 64, %v6156_v27 }
 0x3b7   : > { %4358 = vset.pattern.permute.xlu2 %v6163_v2  ;;  %v6215_v7 = vadd.s32 80, %v6156_v27  ;;  %v6218_v6 = vadd.s32 88, %v6156_v27  ;;  %v6225_v49 = vadd.s32 104, %v6156_v27  ;;  %v6228_v33 = vadd.s32 96, %v6156_v27 }
 0x3b8   : > { %v6235_v20 = vadd.s32 120, %v6156_v27  ;;  %v3232_v34 = vunpack.c.l.bf16 %v392_v63 }
 0x429   : > { %v2438_v22 = vpop.xlane.xlu2 %2437 }
 0x42a   : > { %v2439_v0 = vsub.f32 %v2436_v60, %v2438_v22 }
 0x42c   : > { %v2440_v13 = vmul.f32 1.442695, %v2439_v0 }
 0x42e   : > { %4488 = vpow2.f32 %v2440_v13 }
 0x434   : > { %v4489_v57 = vpop.eup %4488 }
 0x435   : > { %2442 = vadd.xlane.f32.xlu0 %v4489_v57 }
 0x4a8   : > { %v2443_v17 = vpop.xlane.xlu0 %2442 }
 0x4a9   : > { %4490 = vrcp.f32 %v2443_v17 }
 0x4af   : > { %v4491_v14 = vpop.eup %4490 }
 0x4b0   : > { %v2445_v61 = vmul.f32 %v4491_v14, %v2443_v17 }
 0x4b2   : > { %v2446_v31 = vsub.f32 2.0, %v2445_v61 }
 0x4b4   : > { %v2447_v59 = vmul.f32 %v4491_v14, %v2446_v31 }
 0x4b6   : > { %v6168_v24 = vmul.f32 %v4489_v57, %v2447_v59  ;;  %v394_v57 = vld [vmem:[%s4902_s11 + $0x24] sm:$0xff]  }
 0x4b7   : > { %v3234_v17 = vunpack.c.l.bf16 %v394_v57  ;;  %v3235_v31 = vunpack.c.h.bf16 %v394_v57 }
 0x4b8   : > { %v2449_v55 = vperm.slane %v6168_v24, 0  ;;  %3649 = vst [vmem:[%s6173_s2] sm:$0xff] %v6168_v24  ;;  %v6211_v48 = vperm.slane %v6168_v24, 1  ;;  %v6241_v25 = vperm.slane %v6168_v24, 2  ;;  %v6265_v32 = vperm.slane %v6168_v24, 3 }
 0x4ba   : > { %2466 = vperm.xlu0 %4359, %v2449_v55   ;;  %2460 = vperm.xlu2 %4358, %v2449_v55  }
 0x4bb   : > { %2454 = vperm.xlu1 %4357, %v2449_v55  }
 0x4c2   : > { %4366 = vset.pattern.permute.xlu0 %v6178_v12  ;;  %4360 = vset.pattern.permute.xlu2 %v6181_v50 }
 0x4c3   : > { %4361 = vset.pattern.permute.xlu1 %v6184_v18 }
 0x4ca   : > { %2508 = vperm.xlu0 %4366, %v2449_v55   ;;  %2472 = vperm.xlu2 %4360, %v2449_v55  }
 0x4cb   : > { %2478 = vperm.xlu1 %4361, %v2449_v55  }
 0x4d2   : > { %4371 = vset.pattern.permute.xlu0 %v6190_v36  ;;  %4362 = vset.pattern.permute.xlu2 %v6193_v39 }
 0x4d3   : > { %4363 = vset.pattern.permute.xlu1 %v6196_v41 }
 0x4da   : > { %2538 = vperm.xlu0 %4371, %v2449_v55   ;;  %2484 = vperm.xlu2 %4362, %v2449_v55  }
 0x4db   : > { %2490 = vperm.xlu1 %4363, %v2449_v55  }
 0x4e2   : > { %4376 = vset.pattern.permute.xlu0 %v6181_v50  ;;  %4364 = vset.pattern.permute.xlu2 %v6202_v9 }
 0x4e3   : > { %4365 = vset.pattern.permute.xlu1 %v6205_v23 }
 0x4ea   : > { %2569 = vperm.xlu0 %4376, %v6211_v48   ;;  %2496 = vperm.xlu2 %4364, %v2449_v55  }
 0x4eb   : > { %2502 = vperm.xlu1 %4365, %v2449_v55  }
 0x4f2   : > { %4381 = vset.pattern.permute.xlu0 %v6205_v23  ;;  %4367 = vset.pattern.permute.xlu2 %v6215_v7 }
 0x4f3   : > { %4368 = vset.pattern.permute.xlu1 %v6218_v6 }
 0x4fa   : > { %2599 = vperm.xlu0 %4381, %v6211_v48   ;;  %2514 = vperm.xlu2 %4367, %v2449_v55  }
 0x4fb   : > { %2520 = vperm.xlu1 %4368, %v2449_v55  }
 0x502   : > { %4386 = vset.pattern.permute.xlu0 %v6225_v49  ;;  %4369 = vset.pattern.permute.xlu2 %v6228_v33 }
 0x503   : > { %4370 = vset.pattern.permute.xlu1 %v6225_v49 }
 0x50a   : > { %2629 = vperm.xlu0 %4386, %v6211_v48   ;;  %2526 = vperm.xlu2 %4369, %v2449_v55  }
 0x50b   : > { %2532 = vperm.xlu1 %4370, %v2449_v55  }
 0x512   : > { %4391 = vset.pattern.permute.xlu0 %v6160_v1  ;;  %4372 = vset.pattern.permute.xlu2 %v6235_v20 }
 0x513   : > { %4373 = vset.pattern.permute.xlu1 %v6156_v27 }
 0x514   : > { %v2461_v37 = vpop.permute.xlu2 %2460 }
 0x515   : > { %v3354_v53 = vmul.f32 %v3226_v43, %v2461_v37  ;;  %v396_v43 = vld [vmem:[%s4902_s11 + $0x2c] sm:$0xf] }
 0x51a   : > { %2660 = vperm.xlu0 %4391, %v6241_v25   ;;  %2544 = vperm.xlu2 %4372, %v2449_v55  }
 0x51b   : > { %2551 = vperm.xlu1 %4373, %v6211_v48  }
 0x522   : > { %4396 = vset.pattern.permute.xlu0 %v6202_v9  ;;  %4374 = vset.pattern.permute.xlu2 %v6163_v2 }
 0x523   : > { %4375 = vset.pattern.permute.xlu1 %v6160_v1 }
 0x524   : > { %v2473_v28 = vpop.permute.xlu2 %2472 }
 0x525   : > { %v3356_v42 = vmul.f32 %v3228_v15, %v2473_v28  ;;  %v3236_v28 = vunpack.c.l.bf16 %v396_v43 }
 0x52a   : > { %2690 = vperm.xlu0 %4396, %v6241_v25   ;;  %2557 = vperm.xlu2 %4374, %v6211_v48  }
 0x52b   : > { %2563 = vperm.xlu1 %4375, %v6211_v48  }
 0x52c   : > { %v2467_v56 = vpop.permute.xlu0 %2466 }
 0x52d   : > { %v2455_v29 = vpop.permute.xlu1 %2454  ;;  %v3355_v58 = vmul.f32 %v3227_v8, %v2467_v56 }
 0x52e   : > { %v3353_v16 = vmul.f32 %v3225_v47, %v2455_v29 }
 0x530   : > { %v3481_v3 = vadd.f32 %v3354_v53, %v3353_v16  ;;  %v397_v16 = vld [vmem:[%s4902_s11 + $0x30] sm:$0xff]  }
 0x531   : > { %v3237_v53 = vunpack.c.l.bf16 %v397_v16 }
 0x532   : > { %4401 = vset.pattern.permute.xlu0 %v6228_v33  ;;  %4377 = vset.pattern.permute.xlu2 %v6184_v18  ;;  %v3482_v21 = vadd.f32 %v3481_v3, %v3355_v58 }
 0x533   : > { %4378 = vset.pattern.permute.xlu1 %v6193_v39 }
 0x534   : > { %v2485_v52 = vpop.permute.xlu2 %2484  ;;  %v3483_v19 = vadd.f32 %v3482_v21, %v3356_v42  ;;  %v3238_v21 = vunpack.c.h.bf16 %v397_v16  ;;  %v406_v16 = vld [vmem:[%s4902_s11 + $0x54] sm:$0xf] }
 0x535   : > { %v3358_v11 = vmul.f32 %v3230_v26, %v2485_v52 }
 0x53a   : > { %2720 = vperm.xlu0 %4401, %v6241_v25   ;;  %2575 = vperm.xlu2 %4377, %v6211_v48  }
 0x53b   : > { %2581 = vperm.xlu1 %4378, %v6211_v48  }
 0x53c   : > { %v2509_v14 = vpop.permute.xlu0 %2508 }
 0x53d   : > { %v2479_v45 = vpop.permute.xlu1 %2478  ;;  %v3362_v37 = vmul.f32 %v3234_v17, %v2509_v14 }
 0x53e   : > { %v3357_v40 = vmul.f32 %v3229_v10, %v2479_v45  ;;  %v6290_v10 = vperm.slane %v6168_v24, 4  ;;  %v399_v45 = vld [vmem:[%s4902_s11 + $0x38] sm:$0xff]  }
 0x53f   : > { %v3239_v62 = vunpack.c.l.bf16 %v399_v45 }
 0x540   : > { %v3484_v54 = vadd.f32 %v3483_v19, %v3357_v40  ;;  %v3240_v40 = vunpack.c.h.bf16 %v399_v45 }
 0x542   : > { %4406 = vset.pattern.permute.xlu0 %v6163_v2  ;;  %4379 = vset.pattern.permute.xlu2 %v6196_v41  ;;  %v3485_v60 = vadd.f32 %v3484_v54, %v3358_v11 }
 0x543   : > { %4380 = vset.pattern.permute.xlu1 %v6202_v9 }
 0x544   : > { %v2497_v30 = vpop.permute.xlu2 %2496 }
 0x545   : > { %v3360_v22 = vmul.f32 %v3232_v34, %v2497_v30  ;;  %v401_v30 = vld [vmem:[%s4902_s11 + $0x40] sm:$0xf] }
 0x54a   : > { %2751 = vperm.xlu0 %4406, %v6265_v32   ;;  %2587 = vperm.xlu2 %4379, %v6211_v48  }
 0x54b   : > { %2593 = vperm.xlu1 %4380, %v6211_v48  }
 0x54c   : > { %v2539_v52 = vpop.permute.xlu0 %2538 }
 0x54d   : > { %v2491_v51 = vpop.permute.xlu1 %2490  ;;  %v3367_v63 = vmul.f32 %v3239_v62, %v2539_v52  ;;  %v409_v62 = vld [vmem:[%s4902_s11 + $0x60] sm:$0xff]  }
 0x54e   : > { %v3359_v35 = vmul.f32 %v3231_v38, %v2491_v51 }
 0x550   : > { %v3486_v0 = vadd.f32 %v3485_v60, %v3359_v35  ;;  %v3241_v35 = vunpack.c.l.bf16 %v401_v30 }
 0x552   : > { %4411 = vset.pattern.permute.xlu0 %v6196_v41  ;;  %4382 = vset.pattern.permute.xlu2 %v6178_v12  ;;  %v3487_v13 = vadd.f32 %v3486_v0, %v3360_v22 }
 0x553   : > { %4383 = vset.pattern.permute.xlu1 %v6215_v7 }
 0x554   : > { %v2515_v55 = vpop.permute.xlu2 %2514 }
 0x555   : > { %v3363_v44 = vmul.f32 %v3235_v31, %v2515_v55 }
 0x55a   : > { %2781 = vperm.xlu0 %4411, %v6265_v32   ;;  %2605 = vperm.xlu2 %4382, %v6211_v48  }
 0x55b   : > { %2611 = vperm.xlu1 %4383, %v6211_v48  }
 0x55d   : > { %v2503_v61 = vpop.permute.xlu1 %2502 }
 0x55e   : > { %v3361_v59 = vmul.f32 %v3233_v5, %v2503_v61  ;;  %v404_v5 = vld [vmem:[%s4902_s11 + $0x4c] sm:$0xff]   ;;  %v2570_v61 = vpop.permute.xlu0 %2569 }
 0x55f   : > { %v3244_v14 = vunpack.c.l.bf16 %v404_v5 }
 0x560   : > { %v3488_v46 = vadd.f32 %v3487_v13, %v3361_v59  ;;  %v3245_v59 = vunpack.c.h.bf16 %v404_v5 }
 0x562   : > { %v3489_v47 = vadd.f32 %v3488_v46, %v3362_v37  ;;  %4416 = vset.pattern.permute.xlu0 %v6218_v6  ;;  %4384 = vset.pattern.permute.xlu2 %v6218_v6  ;;  %v3372_v46 = vmul.f32 %v3244_v14, %v2570_v61 }
 0x563   : > { %4385 = vset.pattern.permute.xlu1 %v6228_v33 }
 0x564   : > { %v3490_v29 = vadd.f32 %v3489_v47, %v3363_v44  ;;  %v2527_v8 = vpop.permute.xlu2 %2526 }
 0x565   : > { %v3365_v3 = vmul.f32 %v3237_v53, %v2527_v8  ;;  %v3246_v53 = vunpack.c.l.bf16 %v406_v16 }
 0x56a   : > { %2811 = vperm.xlu0 %4416, %v6265_v32   ;;  %2617 = vperm.xlu2 %4384, %v6211_v48  }
 0x56b   : > { %2623 = vperm.xlu1 %4385, %v6211_v48  }
 0x56d   : > { %v2521_v4 = vpop.permute.xlu1 %2520 }
 0x56e   : > { %v3364_v56 = vmul.f32 %v3236_v28, %v2521_v4  ;;  %v407_v28 = vld [vmem:[%s4902_s11 + $0x58] sm:$0xff]  }
 0x56f   : > { %v3247_v8 = vunpack.c.l.bf16 %v407_v28  ;;  %v3248_v52 = vunpack.c.h.bf16 %v407_v28 }
 0x570   : > { %v3491_v15 = vadd.f32 %v3490_v29, %v3364_v56 }
 0x572   : > { %4421 = vset.pattern.permute.xlu0 %v6156_v27  ;;  %4387 = vset.pattern.permute.xlu2 %v6190_v36  ;;  %v3492_v58 = vadd.f32 %v3491_v15, %v3365_v3 }
 0x573   : > { %4388 = vset.pattern.permute.xlu1 %v6235_v20 }
 0x574   : > { %v2545_v19 = vpop.permute.xlu2 %2544 }
 0x575   : > { %v3368_v38 = vmul.f32 %v3240_v40, %v2545_v19  ;;  %v2600_v40 = vpop.permute.xlu0 %2599  ;;  %v3250_v19 = vunpack.c.h.bf16 %v409_v62 }
 0x57a   : > { %2842 = vperm.xlu0 %4421, %v6290_v10   ;;  %2635 = vperm.xlu2 %4387, %v6211_v48  }
 0x57b   : > { %2641 = vperm.xlu1 %4388, %v6211_v48   ;;  %v402_v48 = vld [vmem:[%s4902_s11 + $0x44] sm:$0xff]  }
 0x57c   : > { %v3242_v51 = vunpack.c.l.bf16 %v402_v48  ;;  %v3243_v17 = vunpack.c.h.bf16 %v402_v48 }
 0x57d   : > { %v2533_v42 = vpop.permute.xlu1 %2532 }
 0x57e   : > { %v3366_v26 = vmul.f32 %v3238_v21, %v2533_v42  ;;  %v6325_v21 = vperm.slane %v6168_v24, 5  ;;  %v3249_v42 = vunpack.c.l.bf16 %v409_v62 }
 0x580   : > { %v3493_v54 = vadd.f32 %v3492_v58, %v3366_v26 }
 0x582   : > { %v3494_v11 = vadd.f32 %v3493_v54, %v3367_v63  ;;  %4426 = vset.pattern.permute.xlu0 %v6193_v39  ;;  %4389 = vset.pattern.permute.xlu2 %v6156_v27 }
 0x583   : > { %4390 = vset.pattern.permute.xlu1 %v6163_v2 }
 0x584   : > { %v6299_v34 = vadd.f32 %v3494_v11, %v3368_v38  ;;  %v2558_v60 = vpop.permute.xlu2 %2557  ;;  %v3377_v38 = vmul.f32 %v3249_v42, %v2600_v40 }
 0x585   : > { %v3370_v0 = vmul.f32 %v3242_v51, %v2558_v60  ;;  %v412_v60 = vld [vmem:[%s4902_s11 + $0x6c] sm:$0xff]  }
 0x58a   : > { %2872 = vperm.xlu0 %4426, %v6290_v10   ;;  %2648 = vperm.xlu2 %4389, %v6241_v25  }
 0x58b   : > { %2654 = vperm.xlu1 %4390, %v6241_v25  }
 0x58d   : > { %v2552_v22 = vpop.permute.xlu1 %2551 }
 0x58e   : > { %v3369_v13 = vmul.f32 %v3241_v35, %v2552_v22  ;;  %v411_v35 = vld [vmem:[%s4902_s11 + $0x68] sm:$0xf] }
 0x58f   : > { %v3251_v22 = vunpack.c.l.bf16 %v411_v35 }
 0x590   : > { %v3502_v57 = vadd.f32 %v3370_v0, %v3369_v13  ;;  %v3252_v0 = vunpack.c.l.bf16 %v412_v60 }
 0x592   : > { %4431 = vset.pattern.permute.xlu0 %v6215_v7  ;;  %4392 = vset.pattern.permute.xlu2 %v6181_v50 }
 0x593   : > { %4393 = vset.pattern.permute.xlu1 %v6184_v18 }
 0x594   : > { %v2576_v37 = vpop.permute.xlu2 %2575 }
 0x595   : > { %v3373_v47 = vmul.f32 %v3245_v59, %v2576_v37  ;;  %v3253_v59 = vunpack.c.h.bf16 %v412_v60  ;;  %v2630_v37 = vpop.permute.xlu0 %2629 }
 0x59a   : > { %2902 = vperm.xlu0 %4431, %v6290_v10   ;;  %2666 = vperm.xlu2 %4392, %v6241_v25  }
 0x59b   : > { %2672 = vperm.xlu1 %4393, %v6241_v25  }
 0x59d   : > { %v2564_v31 = vpop.permute.xlu1 %2563 }
 0x59e   : > { %v3371_v55 = vmul.f32 %v3243_v17, %v2564_v31  ;;  %v414_v31 = vld [vmem:[%s4902_s11 + $0x74] sm:$0xff]  }
 0x5a0   : > { %v3503_v44 = vadd.f32 %v3502_v57, %v3371_v55  ;;  %v3254_v55 = vunpack.c.l.bf16 %v414_v31 }
 0x5a2   : > { %v3504_v29 = vadd.f32 %v3503_v44, %v3372_v46  ;;  %4436 = vset.pattern.permute.xlu0 %v6235_v20  ;;  %4394 = vset.pattern.permute.xlu2 %v6193_v39  ;;  %v3255_v44 = vunpack.c.h.bf16 %v414_v31 }
 0x5a3   : > { %4395 = vset.pattern.permute.xlu1 %v6196_v41 }
 0x5a4   : > { %v3505_v43 = vadd.f32 %v3504_v29, %v3373_v47  ;;  %v2588_v4 = vpop.permute.xlu2 %2587 }
 0x5a5   : > { %v3375_v15 = vmul.f32 %v3247_v8, %v2588_v4  ;;  %v416_v4 = vld [vmem:[%s4902_s11 + $0x7c] sm:$0xf] }
 0x5aa   : > { %2932 = vperm.xlu0 %4436, %v6290_v10   ;;  %2678 = vperm.xlu2 %4394, %v6241_v25  }
 0x5ab   : > { %2684 = vperm.xlu1 %4395, %v6241_v25  }
 0x5ad   : > { %v2582_v56 = vpop.permute.xlu1 %2581 }
 0x5ae   : > { %v3374_v3 = vmul.f32 %v3246_v53, %v2582_v56  ;;  %v6351_v56 = vperm.slane %v6168_v24, 6 }
 0x5b0   : > { %v3506_v58 = vadd.f32 %v3505_v43, %v3374_v3  ;;  %v3382_v43 = vmul.f32 %v3254_v55, %v2630_v37  ;;  %v3496_v3 = vrot.slane %v6299_v34, 4 }
 0x5b2   : > { %4441 = vset.pattern.permute.xlu0 %v6184_v18  ;;  %4397 = vset.pattern.permute.xlu2 %v6205_v23  ;;  %v3507_v45 = vadd.f32 %v3506_v58, %v3375_v15  ;;  %v3256_v15 = vunpack.c.l.bf16 %v416_v4  ;;  %v3497_v58 = vadd.f32 %v3496_v3, %v6299_v34  ;;  %v419_v34 = vld [vmem:[%s4902_s11 + $0x88] sm:$0xff]  }
 0x5b3   : > { %4398 = vset.pattern.permute.xlu1 %v6178_v12  ;;  %v3259_v60 = vunpack.c.l.bf16 %v419_v34 }
 0x5b4   : > { %v2606_v54 = vpop.permute.xlu2 %2605 }
 0x5b5   : > { %v3378_v48 = vmul.f32 %v3250_v19, %v2606_v54 }
 0x5ba   : > { %2963 = vperm.xlu0 %4441, %v6325_v21   ;;  %2696 = vperm.xlu2 %4397, %v6241_v25  }
 0x5bb   : > { %2702 = vperm.xlu1 %4398, %v6241_v25  }
 0x5bd   : > { %v2594_v26 = vpop.permute.xlu1 %2593 }
 0x5be   : > { %v3376_v63 = vmul.f32 %v3248_v52, %v2594_v26  ;;  %v3498_v52 = vrot.slane %v3497_v58, 2 }
 0x5c0   : > { %v3508_v11 = vadd.f32 %v3507_v45, %v3376_v63  ;;  %v3499_v26 = vadd.f32 %v3498_v52, %v3497_v58  ;;  %v417_v63 = vld [vmem:[%s4902_s11 + $0x80] sm:$0xff]  }
 0x5c1   : > { %v424_v58 = vld [vmem:[%s4902_s11 + $0x9c] sm:$0xff]  }
 0x5c2   : > { %v3509_v30 = vadd.f32 %v3508_v11, %v3377_v38  ;;  %4446 = vset.pattern.permute.xlu0 %v6178_v12  ;;  %4399 = vset.pattern.permute.xlu2 %v6215_v7  ;;  %v3500_v38 = vrot.slane %v3499_v26, 1 }
 0x5c3   : > { %4400 = vset.pattern.permute.xlu1 %v6218_v6 }
 0x5c4   : > { %v3510_v51 = vadd.f32 %v3509_v30, %v3378_v48  ;;  %v2618_v13 = vpop.permute.xlu2 %2617  ;;  %v3257_v48 = vunpack.c.l.bf16 %v417_v63  ;;  %v3501_v35 = vadd.f32 %v3500_v38, %v3499_v26 }
 0x5c5   : > { %v3380_v17 = vmul.f32 %v3252_v0, %v2618_v13  ;;  %v2661_v0 = vpop.permute.xlu0 %2660 }
 0x5c6   : > { %v3387_v31 = vmul.f32 %v3259_v60, %v2661_v0 }
 0x5ca   : > { %2993 = vperm.xlu0 %4446, %v6325_v21   ;;  %2708 = vperm.xlu2 %4399, %v6241_v25  }
 0x5cb   : > { %2714 = vperm.xlu1 %4400, %v6241_v25  }
 0x5cd   : > { %v2612_v57 = vpop.permute.xlu1 %2611  ;;  %v2691_v52 = vpop.permute.xlu0 %2690 }
 0x5ce   : > { %v3379_v5 = vmul.f32 %v3251_v22, %v2612_v57 }
 0x5d0   : > { %v3511_v14 = vadd.f32 %v3510_v51, %v3379_v5  ;;  %v3258_v51 = vunpack.c.h.bf16 %v417_v63 }
 0x5d2   : > { %4451 = vset.pattern.permute.xlu0 %v6190_v36  ;;  %4402 = vset.pattern.permute.xlu2 %v6225_v49  ;;  %v3512_v61 = vadd.f32 %v3511_v14, %v3380_v17  ;;  %v3260_v17 = vunpack.c.h.bf16 %v419_v34  ;;  %v427_v34 = vld [vmem:[%s4902_s11 + $0xa8] sm:$0xff]  }
 0x5d3   : > { %4403 = vset.pattern.permute.xlu1 %v6190_v36 }
 0x5d4   : > { %v2636_v29 = vpop.permute.xlu2 %2635 }
 0x5d5   : > { %v3383_v28 = vmul.f32 %v3255_v44, %v2636_v29  ;;  %v421_v44 = vld [vmem:[%s4902_s11 + $0x90] sm:$0xf] }
 0x5d6   : > { %v3261_v29 = vunpack.c.l.bf16 %v421_v44 }
 0x5da   : > { %3023 = vperm.xlu0 %4451, %v6325_v21   ;;  %2726 = vperm.xlu2 %4402, %v6241_v25  }
 0x5db   : > { %2732 = vperm.xlu1 %4403, %v6241_v25  }
 0x5dd   : > { %v2624_v46 = vpop.permute.xlu1 %2623 }
 0x5de   : > { %v3381_v47 = vmul.f32 %v3253_v59, %v2624_v46 }
 0x5e0   : > { %v3513_v16 = vadd.f32 %v3512_v61, %v3381_v47  ;;  %v422_v47 = vld [vmem:[%s4902_s11 + $0x94] sm:$0xff]  }
 0x5e2   : > { %v3514_v53 = vadd.f32 %v3513_v16, %v3382_v43  ;;  %4456 = vset.pattern.permute.xlu0 %v6181_v50  ;;  %4404 = vset.pattern.permute.xlu2 %v6235_v20  ;;  %v3262_v43 = vunpack.c.l.bf16 %v422_v47 }
 0x5e3   : > { %4405 = vset.pattern.permute.xlu1 %v6156_v27 }
 0x5e4   : > { %v3515_v8 = vadd.f32 %v3514_v53, %v3383_v28  ;;  %v2649_v54 = vpop.permute.xlu2 %2648 }
 0x5e5   : > { %v3385_v57 = vmul.f32 %v3257_v48, %v2649_v54 }
 0x5ea   : > { %3054 = vperm.xlu0 %4456, %v6351_v56   ;;  %2738 = vperm.xlu2 %4404, %v6241_v25  }
 0x5eb   : > { %2745 = vperm.xlu1 %4405, %v6265_v32  }
 0x5ed   : > { %v2642_v45 = vpop.permute.xlu1 %2641 }
 0x5ee   : > { %v3384_v62 = vmul.f32 %v3256_v15, %v2642_v45  ;;  %v6381_v15 = vperm.slane %v6168_v24, 7  ;;  %v3263_v45 = vunpack.c.h.bf16 %v422_v47 }
 0x5f0   : > { %v3516_v42 = vadd.f32 %v3515_v8, %v3384_v62  ;;  %v3264_v62 = vunpack.c.l.bf16 %v424_v58 }
 0x5f2   : > { %v3517_v40 = vrot.slane %v3516_v42, 4  ;;  %4461 = vset.pattern.permute.xlu0 %v6205_v23  ;;  %4407 = vset.pattern.permute.xlu2 %v6160_v1 }
 0x5f3   : > { %4408 = vset.pattern.permute.xlu1 %v6181_v50 }
 0x5f4   : > { %v3518_v19 = vadd.f32 %v3517_v40, %v3516_v42  ;;  %v2667_v61 = vpop.permute.xlu2 %2666  ;;  %v3265_v40 = vunpack.c.h.bf16 %v424_v58 }
 0x5f5   : > { %v3388_v55 = vmul.f32 %v3260_v17, %v2667_v61  ;;  %v3268_v17 = vunpack.c.h.bf16 %v427_v34  ;;  %v2721_v61 = vpop.permute.xlu0 %2720 }
 0x5f6   : > { %v3519_v25 = vrot.slane %v3518_v19, 2 }
 0x5f8   : > { %v3520_v11 = vadd.f32 %v3519_v25, %v3518_v19  ;;  %v3392_v25 = vmul.f32 %v3264_v62, %v2691_v52 }
 0x5fa   : > { %v3521_v30 = vrot.slane %v3520_v11, 1  ;;  %3084 = vperm.xlu0 %4461, %v6351_v56   ;;  %2757 = vperm.xlu2 %4407, %v6265_v32  }
 0x5fb   : > { %2763 = vperm.xlu1 %4408, %v6265_v32  }
 0x5fc   : > { %v3522_v22 = vadd.f32 %v3521_v30, %v3520_v11  ;;  %v426_v11 = vld [vmem:[%s4902_s11 + $0xa4] sm:$0xf]  ;;  %v3267_v30 = vunpack.c.l.bf16 %v427_v34 }
 0x5fd   : > { %v2655_v13 = vpop.permute.xlu1 %2654  ;;  %v3266_v48 = vunpack.c.l.bf16 %v426_v11 }
 0x5fe   : > { %v6367_v5 = vsel %vm2421_vm0, %v3522_v22, %v3501_v35  ;;  %v3386_v14 = vmul.f32 %v3258_v51, %v2655_v13 }
 0x600   : > { %v3523_v59 = vadd.f32 %v3386_v14, %v3385_v57  ;;  %v429_v57 = vld [vmem:[%s4902_s11 + $0xb0] sm:$0xff]  }
 0x601   : > { %v3269_v14 = vunpack.c.l.bf16 %v429_v57 }
 0x602   : > { %v3524_v37 = vadd.f32 %v3523_v59, %v3387_v31  ;;  %4466 = vset.pattern.permute.xlu0 %v6225_v49  ;;  %4409 = vset.pattern.permute.xlu2 %v6184_v18  ;;  %v3270_v59 = vunpack.c.h.bf16 %v429_v57  ;;  %v437_v57 = vld [vmem:[%s4902_s11 + $0xd0] sm:$0xff]  }
 0x603   : > { %4410 = vset.pattern.permute.xlu1 %v6193_v39 }
 0x604   : > { %v3525_v46 = vadd.f32 %v3524_v37, %v3388_v55  ;;  %v2679_v16 = vpop.permute.xlu2 %2678 }
 0x605   : > { %v3390_v8 = vmul.f32 %v3262_v43, %v2679_v16  ;;  %v431_v16 = vld [vmem:[%s4902_s11 + $0xb8] sm:$0xf] }
 0x60a   : > { %3114 = vperm.xlu0 %4466, %v6351_v56   ;;  %2769 = vperm.xlu2 %4409, %v6265_v32  }
 0x60b   : > { %2775 = vperm.xlu1 %4410, %v6265_v32  }
 0x60d   : > { %v2673_v28 = vpop.permute.xlu1 %2672 }
 0x60e   : > { %v3389_v53 = vmul.f32 %v3261_v29, %v2673_v28  ;;  %v432_v28 = vld [vmem:[%s4902_s11 + $0xbc] sm:$0xff]  }
 0x610   : > { %v3526_v4 = vadd.f32 %v3525_v46, %v3389_v53  ;;  %v3397_v46 = vmul.f32 %v3269_v14, %v2721_v61  ;;  %v3271_v53 = vunpack.c.l.bf16 %v431_v16  ;;  %v3277_v14 = vunpack.c.l.bf16 %v437_v57 }
 0x612   : > { %4471 = vset.pattern.permute.xlu0 %v6160_v1  ;;  %4412 = vset.pattern.permute.xlu2 %v6202_v9  ;;  %v3527_v3 = vadd.f32 %v3526_v4, %v3390_v8  ;;  %v3272_v8 = vunpack.c.l.bf16 %v432_v28 }
 0x613   : > { %4413 = vset.pattern.permute.xlu1 %v6205_v23 }
 0x614   : > { %v2697_v19 = vpop.permute.xlu2 %2696 }
 0x615   : > { %v3393_v24 = vmul.f32 %v3265_v40, %v2697_v19 }
 0x61a   : > { %3145 = vperm.xlu0 %4471, %v6381_v15   ;;  %2787 = vperm.xlu2 %4412, %v6265_v32  }
 0x61b   : > { %2793 = vperm.xlu1 %4413, %v6265_v32  }
 0x61d   : > { %v2685_v42 = vpop.permute.xlu1 %2684 }
 0x61e   : > { %v3391_v26 = vmul.f32 %v3263_v45, %v2685_v42 }
 0x620   : > { %v3528_v63 = vadd.f32 %v3527_v3, %v3391_v26  ;;  %v434_v26 = vld [vmem:[%s4902_s11 + $0xc4] sm:$0xff]  }
 0x622   : > { %v3529_v54 = vadd.f32 %v3528_v63, %v3392_v25  ;;  %4476 = vset.pattern.permute.xlu0 %v6202_v9  ;;  %4414 = vset.pattern.permute.xlu2 %v6178_v12  ;;  %v3274_v25 = vunpack.c.l.bf16 %v434_v26 }
 0x623   : > { %4415 = vset.pattern.permute.xlu1 %v6215_v7 }
 0x624   : > { %v3530_v38 = vadd.f32 %v3529_v54, %v3393_v24  ;;  %v2709_v51 = vpop.permute.xlu2 %2708  ;;  %v2752_v24 = vpop.permute.xlu0 %2751 }
 0x625   : > { %v3395_v22 = vmul.f32 %v3267_v30, %v2709_v51 }
 0x62a   : > { %3175 = vperm.xlu0 %4476, %v6381_v15   ;;  %2799 = vperm.xlu2 %4414, %v6265_v32  }
 0x62b   : > { %2805 = vperm.xlu1 %4415, %v6265_v32  }
 0x62d   : > { %v2703_v35 = vpop.permute.xlu1 %2702 }
 0x62e   : > { %v3394_v60 = vmul.f32 %v3266_v48, %v2703_v35  ;;  %v3402_v48 = vmul.f32 %v3274_v25, %v2752_v24 }
 0x630   : > { %v3531_v0 = vadd.f32 %v3530_v38, %v3394_v60  ;;  %v3275_v38 = vunpack.c.h.bf16 %v434_v26 }
 0x632   : > { %4481 = vset.pattern.permute.xlu0 %v6228_v33  ;;  %4417 = vset.pattern.permute.xlu2 %v6228_v33  ;;  %v3532_v13 = vadd.f32 %v3531_v0, %v3395_v22 }
 0x633   : > { %4418 = vset.pattern.permute.xlu1 %v6225_v49 }
 0x634   : > { %v2727_v37 = vpop.permute.xlu2 %2726 }
 0x635   : > { %v3398_v47 = vmul.f32 %v3270_v59, %v2727_v37 }
 0x63a   : > { %3205 = vperm.xlu0 %4481, %v6381_v15   ;;  %2817 = vperm.xlu2 %4417, %v6265_v32  }
 0x63b   : > { %2823 = vperm.xlu1 %4418, %v6265_v32  }
 0x63d   : > { %v2715_v31 = vpop.permute.xlu1 %2714 }
 0x63e   : > { %v3396_v55 = vmul.f32 %v3268_v17, %v2715_v31 }
 0x640   : > { %v3533_v44 = vadd.f32 %v3532_v13, %v3396_v55  ;;  %v436_v13 = vld [vmem:[%s4902_s11 + $0xcc] sm:$0xf] }
 0x641   : > { %v3276_v17 = vunpack.c.l.bf16 %v436_v13 }
 0x642   : > { %v3534_v29 = vadd.f32 %v3533_v44, %v3397_v46  ;;  %4419 = vset.pattern.permute.xlu2 %v6190_v36  ;;  %4485 = vset.pattern.permute.xlu0 %v6235_v20  ;;  %v439_v46 = vld [vmem:[%s4902_s11 + $0xd8] sm:$0xff]   ;;  %v3278_v44 = vunpack.c.h.bf16 %v437_v57 }
 0x643   : > { %4420 = vset.pattern.permute.xlu1 %v6235_v20  ;;  %v3280_v16 = vunpack.c.h.bf16 %v439_v46 }
 0x644   : > { %v3535_v43 = vadd.f32 %v3534_v29, %v3398_v47  ;;  %v2739_v4 = vpop.permute.xlu2 %2738  ;;  %v3279_v47 = vunpack.c.l.bf16 %v439_v46  ;;  %v2782_v29 = vpop.permute.xlu0 %2781 }
 0x645   : > { %v3400_v45 = vmul.f32 %v3272_v8, %v2739_v4 }
 0x646   : > { %v3407_v8 = vmul.f32 %v3279_v47, %v2782_v29 }
 0x64a   : > { %2829 = vperm.xlu2 %4419, %v6265_v32  }
 0x64b   : > { %2835 = vperm.xlu1 %4420, %v6265_v32   ;;  %v3273_v32 = vunpack.c.h.bf16 %v432_v28 }
 0x64d   : > { %v2733_v3 = vpop.permute.xlu1 %2732 }
 0x64e   : > { %v3399_v58 = vmul.f32 %v3271_v53, %v2733_v3 }
 0x650   : > { %v3536_v62 = vadd.f32 %v3535_v43, %v3399_v58 }
 0x652   : > { %v3537_v52 = vadd.f32 %v3536_v62, %v3400_v45  ;;  %4422 = vset.pattern.permute.xlu2 %v6163_v2  ;;  %v441_v62 = vld [vmem:[%s4902_s11 + $0xe0] sm:$0xf] }
 0x653   : > { %4423 = vset.pattern.permute.xlu1 %v6160_v1 }
 0x654   : > { %v3538_v42 = vrot.slane %v3537_v52, 4  ;;  %v2758_v11 = vpop.permute.xlu2 %2757 }
 0x655   : > { %v3403_v60 = vmul.f32 %v3275_v38, %v2758_v11 }
 0x656   : > { %v3539_v40 = vadd.f32 %v3538_v42, %v3537_v52  ;;  %v442_v52 = vld [vmem:[%s4902_s11 + $0xe4] sm:$0xff]   ;;  %v3281_v42 = vunpack.c.l.bf16 %v441_v62 }
 0x657   : > { %v3283_v38 = vunpack.c.h.bf16 %v442_v52 }
 0x658   : > { %v3540_v19 = vrot.slane %v3539_v40, 2 }
 0x65a   : > { %v3541_v63 = vadd.f32 %v3540_v19, %v3539_v40  ;;  %2848 = vperm.xlu2 %4422, %v6290_v10   ;;  %v3282_v40 = vunpack.c.l.bf16 %v442_v52 }
 0x65b   : > { %2854 = vperm.xlu1 %4423, %v6290_v10  }
 0x65c   : > { %v3542_v54 = vrot.slane %v3541_v63, 1 }
 0x65d   : > { %v2746_v34 = vpop.permute.xlu1 %2745 }
 0x65e   : > { %v3543_v30 = vadd.f32 %v3542_v54, %v3541_v63  ;;  %v3401_v51 = vmul.f32 %v3273_v32, %v2746_v34  ;;  %v444_v54 = vld [vmem:[%s4902_s11 + $0xec] sm:$0xff]   ;;  %v2812_v34 = vpop.permute.xlu0 %2811 }
 0x65f   : > { %v3284_v11 = vunpack.c.l.bf16 %v444_v54 }
 0x660   : > { %v6416_v35 = vsel %vm2423_vm1, %v3543_v30, %v6367_v5  ;;  %v3544_v22 = vadd.f32 %v3402_v48, %v3401_v51  ;;  %v3285_v30 = vunpack.c.h.bf16 %v444_v54 }
 0x662   : > { %4424 = vset.pattern.permute.xlu2 %v6181_v50  ;;  %v3545_v0 = vadd.f32 %v3544_v22, %v3403_v60  ;;  %v3412_v22 = vmul.f32 %v3284_v11, %v2812_v34 }
 0x663   : > { %4425 = vset.pattern.permute.xlu1 %v6184_v18 }
 0x664   : > { %v2770_v61 = vpop.permute.xlu2 %2769 }
 0x665   : > { %v3405_v59 = vmul.f32 %v3277_v14, %v2770_v61  ;;  %v446_v14 = vld [vmem:[%s4902_s11 + $0xf4] sm:$0xf]  ;;  %v447_v61 = vld [vmem:[%s4902_s11 + $0xf8] sm:$0xff]  }
 0x66a   : > { %2860 = vperm.xlu2 %4424, %v6290_v10  }
 0x66b   : > { %2866 = vperm.xlu1 %4425, %v6290_v10  }
 0x66d   : > { %v2764_v31 = vpop.permute.xlu1 %2763 }
 0x66e   : > { %v3404_v5 = vmul.f32 %v3276_v17, %v2764_v31  ;;  %v3286_v31 = vunpack.c.l.bf16 %v446_v14 }
 0x670   : > { %v3546_v55 = vadd.f32 %v3545_v0, %v3404_v5  ;;  %v3287_v5 = vunpack.c.l.bf16 %v447_v61 }
 0x672   : > { %4427 = vset.pattern.permute.xlu2 %v6196_v41  ;;  %v3547_v37 = vadd.f32 %v3546_v55, %v3405_v59 }
 0x673   : > { %4428 = vset.pattern.permute.xlu1 %v6202_v9 }
 0x674   : > { %v2788_v53 = vpop.permute.xlu2 %2787 }
 0x675   : > { %v3408_v3 = vmul.f32 %v3280_v16, %v2788_v53  ;;  %v2843_v16 = vpop.permute.xlu0 %2842 }
 0x67a   : > { %2878 = vperm.xlu2 %4427, %v6290_v10  }
 0x67b   : > { %2884 = vperm.xlu1 %4428, %v6290_v10  }
 0x67d   : > { %v2776_v43 = vpop.permute.xlu1 %2775 }
 0x67e   : > { %v3406_v28 = vmul.f32 %v3278_v44, %v2776_v43 }
 0x680   : > { %v3548_v4 = vadd.f32 %v3547_v37, %v3406_v28  ;;  %v449_v37 = vld [vmem:[%s4902_s11 + $0x100] sm:$0xff]  }
 0x681   : > { %v3289_v29 = vunpack.c.l.bf16 %v449_v37  ;;  %v3290_v43 = vunpack.c.h.bf16 %v449_v37 }
 0x682   : > { %v3549_v58 = vadd.f32 %v3548_v4, %v3407_v8  ;;  %4429 = vset.pattern.permute.xlu2 %v6205_v23 }
 0x683   : > { %4430 = vset.pattern.permute.xlu1 %v6178_v12  ;;  %v3417_v8 = vmul.f32 %v3289_v29, %v2843_v16 }
 0x684   : > { %v3550_v45 = vadd.f32 %v3549_v58, %v3408_v3  ;;  %v2800_v26 = vpop.permute.xlu2 %2799  ;;  %v3288_v3 = vunpack.c.h.bf16 %v447_v61 }
 0x685   : > { %v3410_v63 = vmul.f32 %v3282_v40, %v2800_v26  ;;  %v451_v26 = vld [vmem:[%s4902_s11 + $0x108] sm:$0xf] }
 0x68a   : > { %2890 = vperm.xlu2 %4429, %v6290_v10  }
 0x68b   : > { %2896 = vperm.xlu1 %4430, %v6290_v10  }
 0x68d   : > { %v2794_v19 = vpop.permute.xlu1 %2793 }
 0x68e   : > { %v3409_v25 = vmul.f32 %v3281_v42, %v2794_v19 }
 0x690   : > { %v3551_v32 = vadd.f32 %v3550_v45, %v3409_v25  ;;  %v452_v25 = vld [vmem:[%s4902_s11 + $0x10c] sm:$0xff]  }
 0x691   : > { %v3292_v54 = vunpack.c.l.bf16 %v452_v25 }
 0x692   : > { %4432 = vset.pattern.permute.xlu2 %v6218_v6  ;;  %v3552_v24 = vadd.f32 %v3551_v32, %v3410_v63  ;;  %v3291_v32 = vunpack.c.l.bf16 %v451_v26 }
 0x693   : > { %4433 = vset.pattern.permute.xlu1 %v6228_v33 }
 0x694   : > { %v2818_v60 = vpop.permute.xlu2 %2817 }
 0x695   : > { %v3413_v13 = vmul.f32 %v3285_v30, %v2818_v60 }
 0x69a   : > { %2908 = vperm.xlu2 %4432, %v6290_v10  }
 0x69b   : > { %2914 = vperm.xlu1 %4433, %v6290_v10  }
 0x69d   : > { %v2806_v48 = vpop.permute.xlu1 %2805 }
 0x69e   : > { %v3411_v51 = vmul.f32 %v3283_v38, %v2806_v48 }
 0x6a0   : > { %v3553_v0 = vadd.f32 %v3552_v24, %v3411_v51 }
 0x6a2   : > { %v3554_v57 = vadd.f32 %v3553_v0, %v3412_v22  ;;  %4434 = vset.pattern.permute.xlu2 %v6225_v49  ;;  %v454_v22 = vld [vmem:[%s4902_s11 + $0x114] sm:$0xf]  ;;  %v3293_v0 = vunpack.c.h.bf16 %v452_v25 }
 0x6a3   : > { %4435 = vset.pattern.permute.xlu1 %v6190_v36 }
 0x6a4   : > { %v3555_v17 = vadd.f32 %v3554_v57, %v3413_v13  ;;  %v2830_v59 = vpop.permute.xlu2 %2829  ;;  %v455_v13 = vld [vmem:[%s4902_s11 + $0x118] sm:$0xff]   ;;  %v3294_v57 = vunpack.c.l.bf16 %v454_v22 }
 0x6a5   : > { %v3415_v44 = vmul.f32 %v3287_v5, %v2830_v59  ;;  %v3295_v14 = vunpack.c.l.bf16 %v455_v13 }
 0x6aa   : > { %2920 = vperm.xlu2 %4434, %v6290_v10  }
 0x6ab   : > { %2926 = vperm.xlu1 %4435, %v6290_v10  }
 0x6ad   : > { %v2824_v55 = vpop.permute.xlu1 %2823 }
 0x6ae   : > { %v3414_v46 = vmul.f32 %v3286_v31, %v2824_v55 }
 0x6b0   : > { %v3556_v47 = vadd.f32 %v3555_v17, %v3414_v46  ;;  %v2873_v17 = vpop.permute.xlu0 %2872 }
 0x6b1   : > { %v3422_v5 = vmul.f32 %v3294_v57, %v2873_v17 }
 0x6b2   : > { %4437 = vset.pattern.permute.xlu2 %v6156_v27  ;;  %v3557_v28 = vadd.f32 %v3556_v47, %v3415_v44  ;;  %v457_v44 = vld [vmem:[%s4902_s11 + $0x120] sm:$0xff]   ;;  %v3296_v47 = vunpack.c.h.bf16 %v455_v13  ;;  %v464_v13 = vld [vmem:[%s4902_s11 + $0x13c] sm:$0xf] }
 0x6b3   : > { %4438 = vset.pattern.permute.xlu1 %v6163_v2  ;;  %v3297_v29 = vunpack.c.l.bf16 %v457_v44  ;;  %v3304_v17 = vunpack.c.l.bf16 %v464_v13  ;;  %v474_v13 = vld [vmem:[%s4902_s11 + $0x164] sm:$0xf] }
 0x6b4   : > { %v2849_v53 = vpop.permute.xlu2 %2848 }
 0x6b5   : > { %v3418_v10 = vmul.f32 %v3290_v43, %v2849_v53 }
 0x6b7   : > { %v3565_v4 = vadd.f32 %v3418_v10, %v3417_v8 }
 0x6ba   : > { %2939 = vperm.xlu2 %4437, %v6325_v21  }
 0x6bb   : > { %2945 = vperm.xlu1 %4438, %v6325_v21  }
 0x6bd   : > { %v2836_v58 = vpop.permute.xlu1 %2835 }
 0x6be   : > { %v3416_v45 = vmul.f32 %v3288_v3, %v2836_v58  ;;  %v3298_v3 = vunpack.c.h.bf16 %v457_v44  ;;  %v460_v58 = vld [vmem:[%s4902_s11 + $0x12c] sm:$0xff]  }
 0x6c0   : > { %v3558_v62 = vadd.f32 %v3557_v28, %v3416_v45 }
 0x6c2   : > { %v3559_v52 = vrot.slane %v3558_v62, 4  ;;  %4439 = vset.pattern.permute.xlu2 %v6160_v1 }
 0x6c3   : > { %4440 = vset.pattern.permute.xlu1 %v6181_v50 }
 0x6c4   : > { %v3560_v42 = vadd.f32 %v3559_v52, %v3558_v62  ;;  %v2861_v38 = vpop.permute.xlu2 %2860  ;;  %v2903_v62 = vpop.permute.xlu0 %2902 }
 0x6c5   : > { %v3420_v30 = vmul.f32 %v3292_v54, %v2861_v38  ;;  %v462_v54 = vld [vmem:[%s4902_s11 + $0x134] sm:$0xff]   ;;  %v3301_v38 = vunpack.c.h.bf16 %v460_v58 }
 0x6c6   : > { %v3561_v40 = vrot.slane %v3560_v42, 2  ;;  %v3303_v57 = vunpack.c.h.bf16 %v462_v54 }
 0x6c8   : > { %v3562_v19 = vadd.f32 %v3561_v40, %v3560_v42  ;;  %v3300_v42 = vunpack.c.l.bf16 %v460_v58 }
 0x6ca   : > { %v3563_v63 = vrot.slane %v3562_v19, 1  ;;  %2951 = vperm.xlu2 %4439, %v6325_v21  }
 0x6cb   : > { %2957 = vperm.xlu1 %4440, %v6325_v21  }
 0x6cc   : > { %v3564_v24 = vadd.f32 %v3563_v63, %v3562_v19 }
 0x6cd   : > { %v2855_v11 = vpop.permute.xlu1 %2854 }
 0x6ce   : > { %v6459_v34 = vsel %vm2425_vm2, %v3564_v24, %v6416_v35  ;;  %v3419_v48 = vmul.f32 %v3291_v32, %v2855_v11  ;;  %v3302_v11 = vunpack.c.l.bf16 %v462_v54 }
 0x6d0   : > { %v3566_v51 = vadd.f32 %v3565_v4, %v3419_v48  ;;  %v459_v4 = vld [vmem:[%s4902_s11 + $0x128] sm:$0xf] }
 0x6d1   : > { %v3299_v45 = vunpack.c.l.bf16 %v459_v4 }
 0x6d2   : > { %4442 = vset.pattern.permute.xlu2 %v6193_v39  ;;  %v3567_v60 = vadd.f32 %v3566_v51, %v3420_v30 }
 0x6d3   : > { %4443 = vset.pattern.permute.xlu1 %v6196_v41  ;;  %v3427_v19 = vmul.f32 %v3299_v45, %v2903_v62 }
 0x6d4   : > { %v2879_v31 = vpop.permute.xlu2 %2878 }
 0x6d5   : > { %v3423_v55 = vmul.f32 %v3295_v14, %v2879_v31 }
 0x6da   : > { %2969 = vperm.xlu2 %4442, %v6325_v21  }
 0x6db   : > { %2975 = vperm.xlu1 %4443, %v6325_v21  }
 0x6dd   : > { %v2867_v35 = vpop.permute.xlu1 %2866 }
 0x6de   : > { %v3421_v61 = vmul.f32 %v3293_v0, %v2867_v35  ;;  %v2933_v35 = vpop.permute.xlu0 %2932 }
 0x6df   : > { %v3432_v31 = vmul.f32 %v3304_v17, %v2933_v35  ;;  %v475_v35 = vld [vmem:[%s4902_s11 + $0x168] sm:$0xff]  }
 0x6e0   : > { %v3568_v59 = vadd.f32 %v3567_v60, %v3421_v61 }
 0x6e2   : > { %v3569_v37 = vadd.f32 %v3568_v59, %v3422_v5  ;;  %4444 = vset.pattern.permute.xlu2 %v6202_v9 }
 0x6e3   : > { %4445 = vset.pattern.permute.xlu1 %v6205_v23 }
 0x6e4   : > { %v3570_v46 = vadd.f32 %v3569_v37, %v3423_v55  ;;  %v2891_v43 = vpop.permute.xlu2 %2890  ;;  %v465_v37 = vld [vmem:[%s4902_s11 + $0x140] sm:$0xff]  }
 0x6e5   : > { %v3425_v53 = vmul.f32 %v3297_v29, %v2891_v43  ;;  %v3305_v44 = vunpack.c.l.bf16 %v465_v37 }
 0x6e6   : > { %v2964_v45 = vpop.permute.xlu0 %2963 }
 0x6ea   : > { %2981 = vperm.xlu2 %4444, %v6325_v21  }
 0x6eb   : > { %2987 = vperm.xlu1 %4445, %v6325_v21  }
 0x6ed   : > { %v2885_v16 = vpop.permute.xlu1 %2884 }
 0x6ee   : > { %v3424_v28 = vmul.f32 %v3296_v47, %v2885_v16 }
 0x6f0   : > { %v3571_v8 = vadd.f32 %v3570_v46, %v3424_v28  ;;  %v467_v46 = vld [vmem:[%s4902_s11 + $0x148] sm:$0xff]  }
 0x6f1   : > { %v3307_v47 = vunpack.c.l.bf16 %v467_v46  ;;  %v3308_v4 = vunpack.c.h.bf16 %v467_v46 }
 0x6f2   : > { %4447 = vset.pattern.permute.xlu2 %v6215_v7  ;;  %v3572_v10 = vadd.f32 %v3571_v8, %v3425_v53 }
 0x6f3   : > { %4448 = vset.pattern.permute.xlu1 %v6218_v6 }
 0x6f4   : > { %v2909_v26 = vpop.permute.xlu2 %2908 }
 0x6f5   : > { %v3428_v63 = vmul.f32 %v3300_v42, %v2909_v26 }
 0x6fa   : > { %2999 = vperm.xlu2 %4447, %v6325_v21  }
 0x6fb   : > { %3005 = vperm.xlu1 %4448, %v6325_v21  }
 0x6fd   : > { %v2897_v52 = vpop.permute.xlu1 %2896 }
 0x6fe   : > { %v3426_v40 = vmul.f32 %v3298_v3, %v2897_v52  ;;  %v470_v3 = vld [vmem:[%s4902_s11 + $0x154] sm:$0xff]  }
 0x6ff   : > { %v3310_v52 = vunpack.c.l.bf16 %v470_v3  ;;  %v3311_v54 = vunpack.c.h.bf16 %v470_v3 }
 0x700   : > { %v3573_v25 = vadd.f32 %v3572_v10, %v3426_v40  ;;  %v469_v10 = vld [vmem:[%s4902_s11 + $0x150] sm:$0xf] }
 0x701   : > { %v3309_v58 = vunpack.c.l.bf16 %v469_v10 }
 0x702   : > { %v3574_v32 = vadd.f32 %v3573_v25, %v3427_v19  ;;  %4449 = vset.pattern.permute.xlu2 %v6228_v33 }
 0x703   : > { %4450 = vset.pattern.permute.xlu1 %v6225_v49  ;;  %v3437_v26 = vmul.f32 %v3309_v58, %v2964_v45 }
 0x704   : > { %v3575_v24 = vadd.f32 %v3574_v32, %v3428_v63  ;;  %v2921_v48 = vpop.permute.xlu2 %2920 }
 0x705   : > { %v3430_v60 = vmul.f32 %v3302_v11, %v2921_v48 }
 0x70a   : > { %3011 = vperm.xlu2 %4449, %v6325_v21  }
 0x70b   : > { %3017 = vperm.xlu1 %4450, %v6325_v21  }
 0x70d   : > { %v2915_v30 = vpop.permute.xlu1 %2914 }
 0x70e   : > { %v3429_v51 = vmul.f32 %v3301_v38, %v2915_v30 }
 0x710   : > { %v3576_v22 = vadd.f32 %v3575_v24, %v3429_v51  ;;  %v472_v24 = vld [vmem:[%s4902_s11 + $0x15c] sm:$0xff]  }
 0x711   : > { %v3312_v38 = vunpack.c.l.bf16 %v472_v24 }
 0x712   : > { %4452 = vset.pattern.permute.xlu2 %v6235_v20  ;;  %v3577_v0 = vadd.f32 %v3576_v22, %v3430_v60 }
 0x713   : > { %4453 = vset.pattern.permute.xlu1 %v6156_v27 }
 0x714   : > { %v2940_v55 = vpop.permute.xlu2 %2939 }
 0x715   : > { %v3433_v16 = vmul.f32 %v3305_v44, %v2940_v55 }
 0x71a   : > { %3029 = vperm.xlu2 %4452, %v6325_v21   ;;  %v3306_v21 = vunpack.c.h.bf16 %v465_v37 }
 0x71b   : > { %3036 = vperm.xlu1 %4453, %v6351_v56  }
 0x71d   : > { %v2927_v14 = vpop.permute.xlu1 %2926 }
 0x71e   : > { %v3431_v61 = vmul.f32 %v3303_v57, %v2927_v14  ;;  %v3313_v57 = vunpack.c.h.bf16 %v472_v24  ;;  %v3314_v14 = vunpack.c.l.bf16 %v474_v13  ;;  %v485_v13 = vld [vmem:[%s4902_s11 + $0x190] sm:$0xff]  }
 0x720   : > { %v3578_v5 = vadd.f32 %v3577_v0, %v3431_v61  ;;  %v2994_v61 = vpop.permute.xlu0 %2993 }
 0x721   : > { %v3442_v44 = vmul.f32 %v3314_v14, %v2994_v61  ;;  %v3325_v14 = vunpack.c.l.bf16 %v485_v13 }
 0x722   : > { %v3579_v59 = vadd.f32 %v3578_v5, %v3432_v31  ;;  %4454 = vset.pattern.permute.xlu2 %v6163_v2  ;;  %v3315_v5 = vunpack.c.l.bf16 %v475_v35 }
 0x723   : > { %4455 = vset.pattern.permute.xlu1 %v6160_v1 }
 0x724   : > { %v2952_v29 = vpop.permute.xlu2 %2951  ;;  %v3580_v0 = vrot.slane %v3579_v59, 4 }
 0x725   : > { %v3435_v53 = vmul.f32 %v3307_v47, %v2952_v29 }
 0x72a   : > { %3042 = vperm.xlu2 %4454, %v6351_v56  }
 0x72b   : > { %3048 = vperm.xlu1 %4455, %v6351_v56  }
 0x72d   : > { %v2946_v43 = vpop.permute.xlu1 %2945 }
 0x72e   : > { %v3434_v28 = vmul.f32 %v3306_v21, %v2946_v43 }
 0x730   : > { %v3586_v8 = vadd.f32 %v3434_v28, %v3433_v16  ;;  %v477_v28 = vld [vmem:[%s4902_s11 + $0x170] sm:$0xff]  }
 0x732   : > { %4457 = vset.pattern.permute.xlu2 %v6184_v18  ;;  %v3587_v1 = vadd.f32 %v3586_v8, %v3435_v53  ;;  %v3316_v53 = vunpack.c.h.bf16 %v475_v35 }
 0x733   : > { %4458 = vset.pattern.permute.xlu1 %v6193_v39 }
 0x734   : > { %v2970_v40 = vpop.permute.xlu2 %2969 }
 0x735   : > { %v3438_v25 = vmul.f32 %v3310_v52, %v2970_v40  ;;  %v3318_v52 = vunpack.c.h.bf16 %v477_v28  ;;  %v3024_v40 = vpop.permute.xlu0 %3023 }
 0x73a   : > { %3060 = vperm.xlu2 %4457, %v6351_v56  }
 0x73b   : > { %3066 = vperm.xlu1 %4458, %v6351_v56  }
 0x73d   : > { %v2958_v62 = vpop.permute.xlu1 %2957 }
 0x73e   : > { %v3436_v42 = vmul.f32 %v3308_v4, %v2958_v62  ;;  %v479_v62 = vld [vmem:[%s4902_s11 + $0x178] sm:$0xf] }
 0x740   : > { %v3588_v19 = vadd.f32 %v3587_v1, %v3436_v42  ;;  %v3317_v1 = vunpack.c.l.bf16 %v477_v28  ;;  %v480_v42 = vld [vmem:[%s4902_s11 + $0x17c] sm:$0xff]  }
 0x742   : > { %v3589_v63 = vadd.f32 %v3588_v19, %v3437_v26  ;;  %4459 = vset.pattern.permute.xlu2 %v6196_v41  ;;  %v3320_v19 = vunpack.c.l.bf16 %v480_v42 }
 0x743   : > { %4460 = vset.pattern.permute.xlu1 %v6202_v9  ;;  %v3581_v9 = vadd.f32 %v3580_v0, %v3579_v59 }
 0x744   : > { %v3590_v32 = vadd.f32 %v3589_v63, %v3438_v25  ;;  %v2982_v11 = vpop.permute.xlu2 %2981 }
 0x745   : > { %v3440_v51 = vmul.f32 %v3312_v38, %v2982_v11  ;;  %v3582_v17 = vrot.slane %v3581_v9, 2 }
 0x747   : > { %v3583_v37 = vadd.f32 %v3582_v17, %v3581_v9  ;;  %v3055_v17 = vpop.permute.xlu0 %3054 }
 0x749   : > { %v3584_v29 = vrot.slane %v3583_v37, 1 }
 0x74a   : > { %3072 = vperm.xlu2 %4459, %v6351_v56  }
 0x74b   : > { %3078 = vperm.xlu1 %4460, %v6351_v56   ;;  %v3585_v16 = vadd.f32 %v3584_v29, %v3583_v37 }
 0x74d   : > { %v2976_v48 = vpop.permute.xlu1 %2975  ;;  %v6518_v8 = vsel %vm2427_vm3, %v3585_v16, %v6459_v34  ;;  %v3319_v34 = vunpack.c.l.bf16 %v479_v62 }
 0x74e   : > { %v3439_v30 = vmul.f32 %v3311_v54, %v2976_v48  ;;  %v482_v48 = vld [vmem:[%s4902_s11 + $0x184] sm:$0xff]  }
 0x750   : > { %v3591_v60 = vadd.f32 %v3590_v32, %v3439_v30  ;;  %v3447_v32 = vmul.f32 %v3319_v34, %v3024_v40  ;;  %v3322_v30 = vunpack.c.l.bf16 %v482_v48 }
 0x752   : > { %4462 = vset.pattern.permute.xlu2 %v6178_v12  ;;  %v3592_v22 = vadd.f32 %v3591_v60, %v3440_v51 }
 0x753   : > { %4463 = vset.pattern.permute.xlu1 %v6215_v7 }
 0x754   : > { %v3000_v46 = vpop.permute.xlu2 %2999 }
 0x755   : > { %v3443_v47 = vmul.f32 %v3315_v5, %v3000_v46 }
 0x75a   : > { %3090 = vperm.xlu2 %4462, %v6351_v56  }
 0x75b   : > { %3096 = vperm.xlu1 %4463, %v6351_v56  }
 0x75d   : > { %v2988_v31 = vpop.permute.xlu1 %2987 }
 0x75e   : > { %v3441_v55 = vmul.f32 %v3313_v57, %v2988_v31 }
 0x760   : > { %v3593_v21 = vadd.f32 %v3592_v22, %v3441_v55 }
 0x762   : > { %v3594_v59 = vadd.f32 %v3593_v21, %v3442_v44  ;;  %4464 = vset.pattern.permute.xlu2 %v6218_v6 }
 0x763   : > { %4465 = vset.pattern.permute.xlu1 %v6228_v33 }
 0x764   : > { %v3595_v43 = vadd.f32 %v3594_v59, %v3443_v47  ;;  %v3012_v10 = vpop.permute.xlu2 %3011 }
 0x765   : > { %v3445_v58 = vmul.f32 %v3317_v1, %v3012_v10 }
 0x76a   : > { %3102 = vperm.xlu2 %4464, %v6351_v56  }
 0x76b   : > { %3108 = vperm.xlu1 %4465, %v6351_v56  }
 0x76d   : > { %v3006_v4 = vpop.permute.xlu1 %3005 }
 0x76e   : > { %v3444_v3 = vmul.f32 %v3316_v53, %v3006_v4 }
 0x770   : > { %v3596_v33 = vadd.f32 %v3595_v43, %v3444_v3 }
 0x772   : > { %4467 = vset.pattern.permute.xlu2 %v6190_v36  ;;  %v3597_v45 = vadd.f32 %v3596_v33, %v3445_v58 }
 0x773   : > { %4468 = vset.pattern.permute.xlu1 %v6235_v20 }
 0x774   : > { %v3030_v63 = vpop.permute.xlu2 %3029 }
 0x775   : > { %v3448_v54 = vmul.f32 %v3320_v19, %v3030_v63 }
 0x77a   : > { %3120 = vperm.xlu2 %4467, %v6351_v56  }
 0x77b   : > { %3126 = vperm.xlu1 %4468, %v6351_v56   ;;  %v3321_v56 = vunpack.c.h.bf16 %v480_v42 }
 0x77d   : > { %v3018_v26 = vpop.permute.xlu1 %3017 }
 0x77e   : > { %v3446_v25 = vmul.f32 %v3318_v52, %v3018_v26 }
 0x780   : > { %v3598_v24 = vadd.f32 %v3597_v45, %v3446_v25 }
 0x782   : > { %v3599_v38 = vadd.f32 %v3598_v24, %v3447_v32  ;;  %4469 = vset.pattern.permute.xlu2 %v6156_v27  ;;  %v484_v27 = vld [vmem:[%s4902_s11 + $0x18c] sm:$0xf] }
 0x783   : > { %4470 = vset.pattern.permute.xlu1 %v6163_v2  ;;  %v3323_v2 = vunpack.c.h.bf16 %v482_v48  ;;  %v3324_v57 = vunpack.c.l.bf16 %v484_v27 }
 0x784   : > { %v3600_v11 = vadd.f32 %v3599_v38, %v3448_v54  ;;  %v3043_v51 = vpop.permute.xlu2 %3042 }
 0x785   : > { %v3450_v22 = vmul.f32 %v3322_v30, %v3043_v51  ;;  %v3452_v5 = vmul.f32 %v3324_v57, %v3055_v17 }
 0x78a   : > { %3133 = vperm.xlu2 %4469, %v6381_v15  }
 0x78b   : > { %3139 = vperm.xlu1 %4470, %v6381_v15  }
 0x78d   : > { %v3037_v60 = vpop.permute.xlu1 %3036 }
 0x78e   : > { %v3449_v0 = vmul.f32 %v3321_v56, %v3037_v60 }
 0x790   : > { %v3607_v9 = vadd.f32 %v3450_v22, %v3449_v0 }
 0x792   : > { %4472 = vset.pattern.permute.xlu2 %v6181_v50 }
 0x793   : > { %4473 = vset.pattern.permute.xlu1 %v6184_v18  ;;  %v3601_v18 = vrot.slane %v3600_v11, 4 }
 0x794   : > { %v3061_v31 = vpop.permute.xlu2 %3060 }
 0x795   : > { %v3453_v37 = vmul.f32 %v3325_v14, %v3061_v31  ;;  %v3602_v44 = vadd.f32 %v3601_v18, %v3600_v11 }
 0x79a   : > { %3151 = vperm.xlu2 %4472, %v6381_v15  }
 0x79b   : > { %3157 = vperm.xlu1 %4473, %v6381_v15  }
 0x79d   : > { %v3049_v35 = vpop.permute.xlu1 %3048 }
 0x79e   : > { %v3451_v61 = vmul.f32 %v3323_v2, %v3049_v35 }
 0x7a0   : > { %v3608_v55 = vadd.f32 %v3607_v9, %v3451_v61 }
 0x7a2   : > { %v3609_v46 = vadd.f32 %v3608_v55, %v3452_v5  ;;  %4474 = vset.pattern.permute.xlu2 %v6193_v39  ;;  %v3603_v39 = vrot.slane %v3602_v44, 2 }
 0x7a3   : > { %4475 = vset.pattern.permute.xlu1 %v6196_v41 }
 0x7a4   : > { %v3610_v50 = vadd.f32 %v3609_v46, %v3453_v37  ;;  %v3604_v41 = vadd.f32 %v3603_v39, %v3602_v44 }
 0x7a6   : > { %v3605_v21 = vrot.slane %v3604_v41, 1 }
 0x7aa   : > { %3163 = vperm.xlu2 %4474, %v6381_v15  }
 0x7ab   : > { %3169 = vperm.xlu1 %4475, %v6381_v15  }
 0x7b2   : > { %4477 = vset.pattern.permute.xlu2 %v6205_v23  ;;  %v3606_v23 = vadd.f32 %v3605_v21, %v3604_v41 }
 0x7b3   : > { %4478 = vset.pattern.permute.xlu1 %v6178_v12 }
 0x7b4   : > { %v6551_v12 = vsel %vm2429_vm4, %v3606_v23, %v6518_v8 }
 0x7ba   : > { %3181 = vperm.xlu2 %4477, %v6381_v15  }
 0x7bb   : > { %3187 = vperm.xlu1 %4478, %v6381_v15  }
 0x7c2   : > { %4479 = vset.pattern.permute.xlu2 %v6215_v7 }
 0x7c3   : > { %4480 = vset.pattern.permute.xlu1 %v6218_v6 }
 0x7ca   : > { %3193 = vperm.xlu2 %4479, %v6381_v15  }
 0x7cb   : > { %3199 = vperm.xlu1 %4480, %v6381_v15  }
 0x7d2   : > { %4482 = vset.pattern.permute.xlu2 %v6225_v49 }
 0x7d3   : > { %4483 = vset.pattern.permute.xlu1 %v6190_v36 }
 0x7da   : > { %3211 = vperm.xlu2 %4482, %v6381_v15  }
 0x7db   : > { %3217 = vperm.xlu1 %4483, %v6381_v15  }
 0x7e2   : > { %4484 = vset.pattern.permute.xlu2 %v6235_v20 }
 0x7e3   : > { %4640 = shalt.err (!%p4637_p9)
}
 0x7e4   : > { %4291 = dma.vmem_to_hbm [thread:$0]  (%p4841_p3), %s3700_s18, 128, %s3702_s19, %s3673_s12   ;;  %v3067_v36 = vpop.permute.xlu1 %3066  ;;  %v3326_v7 = vunpack.c.h.bf16 %v485_v13  ;;  %v487_v6 = vld [vmem:[%s4902_s11 + $0x198] sm:$0xff]   ;;  %v3073_v59 = vpop.permute.xlu2 %3072  ;;  %v489_v16 = vld [vmem:[%s4902_s11 + $0x1a0] sm:$0xf]  ;;  %v490_v4 = vld [vmem:[%s4902_s11 + $0x1a4] sm:$0xff]  }
 0x7e5   : > { %v3327_v20 = vunpack.c.l.bf16 %v487_v6  ;;  %v3328_v47 = vunpack.c.h.bf16 %v487_v6  ;;  %v3329_v8 = vunpack.c.l.bf16 %v489_v16  ;;  %v3085_v10 = vpop.permute.xlu0 %3084  ;;  %v3330_v45 = vunpack.c.l.bf16 %v490_v4  ;;  %v492_v42 = vld [vmem:[%s4902_s11 + $0x1ac] sm:$0xff]   ;;  %v494_v54 = vld [vmem:[%s4902_s11 + $0x1b4] sm:$0xf]  ;;  %v495_v51 = vld [vmem:[%s4902_s11 + $0x1b8] sm:$0xff]   ;;  %s375_s2 = scalar_lea.vmem [#allocation10], %s3863_s17  ;;  %s3668_s26 = scalar_lea.sflag [#allocation4], %s4898_s8 }
 0x7e6   : > { %v3454_v49 = vmul.f32 %v3326_v7, %v3067_v36  ;;  %v3331_v62 = vunpack.c.h.bf16 %v490_v4  ;;  %v3332_v26 = vunpack.c.l.bf16 %v492_v42  ;;  %v3333_v25 = vunpack.c.h.bf16 %v492_v42  ;;  %v497_v14 = vld [vmem:[%s4902_s11 + $0x1c0] sm:$0xff]   ;;  %v499_v46 = vld [vmem:[%s4902_s11 + $0x1c8] sm:$0xf]  ;;  %v500_v23 = vld [vmem:[%s4902_s11 + $0x1cc] sm:$0xff]   ;;  %s3685_s29 = sshll.u32 %s375_s2, 4  ;;  %s4661_s17 = scalar_lea.hbm %s6638_s6, 16  ;;  %s3686_s29 = int_to_ptr.vmem [resolvable:$true] %s3685_s29 }
 0x7e7   : > { %v3455_v28 = vmul.f32 %v3327_v20, %v3073_v59  ;;  %v3457_v33 = vmul.f32 %v3329_v8, %v3085_v10  ;;  %v3334_v48 = vunpack.c.l.bf16 %v494_v54  ;;  %v3335_v0 = vunpack.c.l.bf16 %v495_v51 }
 0x7e8   : > { %v3611_v43 = vadd.f32 %v3610_v50, %v3454_v49  ;;  %v3336_v27 = vunpack.c.h.bf16 %v495_v51  ;;  %v3338_v5 = vunpack.c.h.bf16 %v497_v14  ;;  %v3337_v37 = vunpack.c.l.bf16 %v497_v14 }
 0x7e9   : > { %v3339_v44 = vunpack.c.l.bf16 %v499_v46  ;;  %v3340_v20 = vunpack.c.l.bf16 %v500_v23 }
 0x7ea   : > { %3223 = vperm.xlu2 %4484, %v6381_v15   ;;  %v3612_v1 = vadd.f32 %v3611_v43, %v3455_v28  ;;  %v502_v43 = vld [vmem:[%s4902_s11 + $0x1d4] sm:$0xff]  }
 0x7eb   : > { %v3343_v4 = vunpack.c.h.bf16 %v502_v43 }
 0x7ec   : > { %v3079_v29 = vpop.permute.xlu1 %3078  ;;  %v3091_v15 = vpop.permute.xlu2 %3090 }
 0x7ed   : > { %v3456_v53 = vmul.f32 %v3328_v47, %v3079_v29  ;;  %v3458_v34 = vmul.f32 %v3330_v45, %v3091_v15  ;;  %v3115_v56 = vpop.permute.xlu0 %3114  ;;  %v3341_v47 = vunpack.c.h.bf16 %v500_v23 }
 0x7ee   : > { %v3462_v22 = vmul.f32 %v3334_v48, %v3115_v56  ;;  %v507_v48 = vld [vmem:[%s4902_s11 + $0x1e8] sm:$0xff]  }
 0x7ef   : > { %v3613_v3 = vadd.f32 %v3612_v1, %v3456_v53  ;;  %v3342_v1 = vunpack.c.l.bf16 %v502_v43 }
 0x7f1   : > { %v3614_v52 = vadd.f32 %v3613_v3, %v3457_v33 }
 0x7f3   : > { %v3615_v19 = vadd.f32 %v3614_v52, %v3458_v34 }
 0x7f4   : > { %v3097_v58 = vpop.permute.xlu1 %3096  ;;  %v3103_v63 = vpop.permute.xlu2 %3102 }
 0x7f5   : > { %v3459_v40 = vmul.f32 %v3331_v62, %v3097_v58  ;;  %v3460_v38 = vmul.f32 %v3332_v26, %v3103_v63  ;;  %v3146_v41 = vpop.permute.xlu0 %3145  ;;  %v504_v58 = vld [vmem:[%s4902_s11 + $0x1dc] sm:$0xf]  ;;  %v505_v26 = vld [vmem:[%s4902_s11 + $0x1e0] sm:$0xff]  }
 0x7f6   : > { %v3467_v49 = vmul.f32 %v3339_v44, %v3146_v41  ;;  %v3344_v52 = vunpack.c.l.bf16 %v504_v58  ;;  %v3346_v54 = vunpack.c.h.bf16 %v505_v26 }
 0x7f7   : > { %v3616_v24 = vadd.f32 %v3615_v19, %v3459_v40 }
 0x7f9   : > { %v3617_v30 = vadd.f32 %v3616_v24, %v3460_v38  ;;  %v3345_v24 = vunpack.c.l.bf16 %v505_v26 }
 0x7fc   : > { %v3109_v32 = vpop.permute.xlu1 %3108  ;;  %v3121_v9 = vpop.permute.xlu2 %3120 }
 0x7fd   : > { %v3461_v11 = vmul.f32 %v3333_v25, %v3109_v32  ;;  %v3463_v57 = vmul.f32 %v3335_v0, %v3121_v9  ;;  %v3176_v34 = vpop.permute.xlu0 %3175  ;;  %v3348_v0 = vunpack.c.h.bf16 %v507_v48 }
 0x7fe   : > { %v3472_v32 = vmul.f32 %v3344_v52, %v3176_v34 }
 0x7ff   : > { %v3618_v60 = vadd.f32 %v3617_v30, %v3461_v11 }
 0x801   : > { %v3619_v13 = vadd.f32 %v3618_v60, %v3462_v22  ;;  %v3347_v60 = vunpack.c.l.bf16 %v507_v48 }
 0x803   : > { %v3620_v35 = vadd.f32 %v3619_v13, %v3463_v57 }
 0x804   : > { %v3127_v2 = vpop.permute.xlu1 %3126  ;;  %v3134_v61 = vpop.permute.xlu2 %3133 }
 0x805   : > { %v3464_v17 = vmul.f32 %v3336_v27, %v3127_v2  ;;  %v3465_v39 = vmul.f32 %v3337_v37, %v3134_v61  ;;  %v509_v2 = vld [vmem:[%s4902_s11 + $0x1f0] sm:$0xf]  ;;  %v3206_v14 = vpop.permute.xlu0 %3205  ;;  %v510_v61 = vld [vmem:[%s4902_s11 + $0x1f4] sm:$0xff]   ;;  %v512_v37 = vld [vmem:[%s4902_s11 + $0x1fc] sm:$0xf]  ;;  %s3683_s11 = scalar_lea.hbm %s6638_s6, %s4172_s21 }
 0x806   : > { %v3352_v44 = vunpack.c.l.bf16 %v512_v37  ;;  %s3687_s22 = sshll.u32 %s3683_s11, 4  ;;  %s3688_s22 = int_to_ptr.hbm [resolvable:$true] %s3687_s22 }
 0x807   : > { %v3621_v31 = vadd.f32 %v3620_v35, %v3464_v17  ;;  %v3349_v17 = vunpack.c.l.bf16 %v509_v2  ;;  %s4655_s18 = sshra.s32 %s3688_s22, 4  ;;  %s4656_s18 = int_to_ptr.hbm [resolvable:$true] %s4655_s18 }
 0x808   : > { %s4657_s28 = scalar_lea.hbm %s4656_s18, 8  ;;  %p4662_p5 = scmp.lt.s32.totalorder %s4656_s18, %s6638_s6 }
 0x809   : > { %v3622_v50 = vrot.slane %v3621_v31, 4  ;;  %p4658_p12 = scmp.ne.s32.totalorder %s4656_s18, %s4657_s28  ;;  %p4663_p7 = scmp.lt.s32.totalorder %s4661_s17, %s4657_s28 }
 0x80b   : > { %v3623_v21 = vadd.f32 %v3622_v50, %v3621_v31  ;;  %v3351_v50 = vunpack.c.h.bf16 %v510_v61  ;;  %p4659_p13 = pnand %p4658_p12, %p4841_p3  ;;  %p4664_p1 = por %p4663_p7, %p4662_p5 }
 0x80c   : > { %v3140_v55 = vpop.permute.xlu1 %3139  ;;  %v3152_v36 = vpop.permute.xlu2 %3151 }
 0x80d   : > { %v3466_v18 = vmul.f32 %v3338_v5, %v3140_v55  ;;  %v3624_v59 = vrot.slane %v3623_v21, 2  ;;  %v3468_v16 = vmul.f32 %v3340_v20, %v3152_v36  ;;  %v3477_v5 = vmul.f32 %v3349_v17, %v3206_v14  ;;  %p4660_p0 = pneg %p4659_p13 }
 0x80e   : > { %v3350_v55 = vunpack.c.l.bf16 %v510_v61 }
 0x80f   : > { %v3628_v7 = vadd.f32 %v3466_v18, %v3465_v39  ;;  %v3625_v53 = vadd.f32 %v3624_v59, %v3623_v21  ;;  %p4665_p4 = pnand %p4664_p1, %p4660_p0 }
 0x811   : > { %v3629_v29 = vadd.f32 %v3628_v7, %v3467_v49  ;;  %v3626_v33 = vrot.slane %v3625_v53, 1 }
 0x813   : > { %v3630_v10 = vadd.f32 %v3629_v29, %v3468_v16  ;;  %v3627_v40 = vadd.f32 %v3626_v33, %v3625_v53 }
 0x814   : > { %v3158_v6 = vpop.permute.xlu1 %3157  ;;  %v3164_v8 = vpop.permute.xlu2 %3163 }
 0x815   : > { %v3469_v28 = vmul.f32 %v3341_v47, %v3158_v6  ;;  %v3470_v45 = vmul.f32 %v3342_v1, %v3164_v8  ;;  %v3663_v38 = vsel %vm2431_vm5, %v3627_v40, %v6551_v12 }
 0x817   : > { %v3631_v15 = vadd.f32 %v3630_v10, %v3469_v28 }
 0x819   : > { %v3632_v42 = vadd.f32 %v3631_v15, %v3470_v45 }
 0x81c   : > { %v3182_v19 = vpop.permute.xlu2 %3181 }
 0x81d   : > { %v3170_v3 = vpop.permute.xlu1 %3169  ;;  %v3473_v30 = vmul.f32 %v3345_v24, %v3182_v19 }
 0x81e   : > { %v3471_v62 = vmul.f32 %v3343_v4, %v3170_v3 }
 0x820   : > { %v3633_v25 = vadd.f32 %v3632_v42, %v3471_v62 }
 0x822   : > { %v3634_v11 = vadd.f32 %v3633_v25, %v3472_v32 }
 0x824   : > { %v3194_v51 = vpop.permute.xlu2 %3193  ;;  %v3635_v22 = vadd.f32 %v3634_v11, %v3473_v30 }
 0x825   : > { %v3475_v13 = vmul.f32 %v3347_v60, %v3194_v51 }
 0x82d   : > { %v3188_v63 = vpop.permute.xlu1 %3187 }
 0x82e   : > { %v3474_v56 = vmul.f32 %v3346_v54, %v3188_v63 }
 0x830   : > { %v3636_v27 = vadd.f32 %v3635_v22, %v3474_v56 }
 0x832   : > { %v3637_v35 = vadd.f32 %v3636_v27, %v3475_v13 }
 0x834   : > { %v3212_v12 = vpop.permute.xlu2 %3211 }
 0x835   : > { %v3478_v18 = vmul.f32 %v3350_v55, %v3212_v12 }
 0x83d   : > { %v3200_v9 = vpop.permute.xlu1 %3199 }
 0x83e   : > { %v3476_v57 = vmul.f32 %v3348_v0, %v3200_v9 }
 0x840   : > { %v3638_v31 = vadd.f32 %v3637_v35, %v3476_v57 }
 0x842   : > { %v3639_v46 = vadd.f32 %v3638_v31, %v3477_v5 }
 0x844   : > { %v3224_v39 = vpop.permute.xlu2 %3223  ;;  %v3640_v21 = vadd.f32 %v3639_v46, %v3478_v18 }
 0x845   : > { %v3480_v36 = vmul.f32 %v3352_v44, %v3224_v39 }
 0x84d   : > { %v3218_v41 = vpop.permute.xlu1 %3217 }
 0x84e   : > { %v3479_v23 = vmul.f32 %v3351_v50, %v3218_v41 }
 0x850   : > { %v3641_v7 = vadd.f32 %v3640_v21, %v3479_v23 }
 0x852   : > { %v3642_v6 = vadd.f32 %v3641_v7, %v3480_v36 }
 0x854   : > { %v3643_v49 = vrot.slane %v3642_v6, 4 }
 0x856   : > { %v3644_v20 = vadd.f32 %v3643_v49, %v3642_v6 }
 0x858   : > { %v3645_v47 = vrot.slane %v3644_v20, 2 }
 0x85a   : > { %v3646_v59 = vadd.f32 %v3645_v47, %v3644_v20 }
 0x85c   : > { %v3647_v29 = vrot.slane %v3646_v59, 1 }
 0x85e   : > { %v3648_v43 = vadd.f32 %v3647_v29, %v3646_v59 }
 0x860   : > { %v3664_v16 = vsel %vm2433_vm6, %v3648_v43, %v3663_v38 }
 0x861   : > { %3666 = vst [vmem:[%s375_s2] sm:$0xff] %v3664_v16 }
 0x862   : > { %4668 = shalt.err (!%p4665_p4)
}
 0x863   : > { %4290 = dma.vmem_to_hbm [thread:$0]  (%p4841_p3), %s3686_s29, 128, %s3688_s22, %s3668_s26  }
 0x864 PF: > { %s3713_s20 = sand.u32 1, %s4711_s24   ;;  %p6780_p8 = scmp.ge.s32.totalorder %s4723_s27, 2 }
 0x865   : > { %s3714_s13 = scalar_lea.sflag [#allocation4], %s3713_s20 }
 0x866   : > { %p4309_p2 = pnand %p6780_p8, %p4804_p6 }
 0x868   : > { %p4310_p10 = pneg %p4309_p2 }
 0x86a   : > { %4702 = dma.done.wait (%p4310_p10), %s3714_s13, 128  }
 0x86b   : > { %4704 = vsyncadd (%p4310_p10), %s3714_s13, 4294967168  ;;  %s3724_s30 = scalar_lea.sflag [#allocation12], %s3713_s20 }
 0x86c   : > { %4706 = dma.done.wait (%p4310_p10), %s3724_s30, 128  }
 0x86d   : > { %4708 = vsyncadd (%p4310_p10), %s3724_s30, 4294967168  ;;  %s6781_s27 = sld [smem:[#allocation21_spill]]  ;;  %s6784_s24 = smov %s4715_s25 }
 0x86e   : > { %s6782_s14 = sld [smem:[#allocation19_spill]] }
 0x86f   : > { %s6783_s26 = sld [smem:[#allocation22_spill]] }
 0x873   : > { %p28_p3 = scmp.ge.s32.totalorder %s6781_s27, 4  }
 0x874   : > { %s6785_s25 = smov %s6782_s14 }
 0x875   :  { %30 = sbr.rel (!%p28_p3) target bundleno = 13 (0xd), region = 127 }
 0x87a   :  { %3730 = vsyncpa [#allocation3], 1 }
 0x87b   :  { %3732 = vsyncpa [#allocation3 + $0x1], 1 }
 0x87c   :  { %3733 = vsyncpa [#allocation6], 1 }
 0x87d   :  { %3735 = vsyncpa [#allocation6 + $0x1], 1 }
 0x87e   :  { %3736 = vsyncpa [#allocation9], 1 }
 0x87f   :  { %3737 = vsyncpa [#allocation4], 1 }
 0x880   :  { %3739 = vsyncpa [#allocation4 + $0x1], 1 }
 0x881   :  { %3740 = vsyncpa [#allocation12], 1 }
 0x882   :  { %3742 = vsyncpa [#allocation12 + $0x1], 1 }

</bundles_post_ra>
